<compile_context>
chip_gen: v7x
topology: tpu7x:2x2x1
jax: 0.10.0
libtpu: 0.0.40
codegen_flags: <defaults>
</compile_context>

<pallas_src>
import jax
import jax.numpy as jnp
import numpy as np
from jax.experimental import pallas as pl
from jax.experimental.pallas import tpu as pltpu

_VMEM_LIMIT = 32 * 1024 * 1024      # safe scoped-VMEM cap on v5e/v6e/v7x
_BLOCK_BYTES = 2 * 1024 * 1024      # target bytes for the main input block


def _row_tile(n, target):
    """Largest divisor of n that is <= target."""
    t = max(1, min(target, n))
    while n % t:
        t -= 1
    return t


def _even_row_tile(n, target):
    """Largest even divisor of n that is <= target (n must be even)."""
    assert n % 2 == 0
    t = max(2, min(target, n))
    t -= t % 2
    while n % t:
        t -= 2
    return t


# ------------------------ kernel A: fused PAN head ---------------------------
#   y1 = up @ A + up2x(x @ B)   with A, B pre-folded 1x1 chains.
def _pan_head_kernel(up_ref, x_ref, wa_ref, wb_ref, o_ref):
    # up_ref: (1, tl, 2, W2, C)   high-res rows, even/odd row pairs split out
    # x_ref : (1, tl, Wx, C)      matching low-res rows
    # wa_ref: (C, C2)             folded  w_conv2 @ wc1[:C2]
    # wb_ref: (C, C2)             folded  w_conv1 @ wc1[C2:]
    # o_ref : (1, tl, 2, W2, C2)
    _, tl, _, W2, C2 = o_ref.shape
    _, _, Wx, C = x_ref.shape

    # low-res branch: x @ B, W-doubled once (single interleave relayout).
    low = jnp.dot(x_ref[0].reshape(tl * Wx, C), wb_ref[...],
                  preferred_element_type=jnp.float32).reshape(tl, Wx, C2)
    low_w2 = jnp.concatenate([low, low], axis=-1).reshape(tl, W2, C2)

    # H-doubling of the nearest-2x upsample is free: the same low_w2 slab is
    # added to both the even- and odd-row slabs of the output.
    for a in range(2):
        ya = jnp.dot(up_ref[0, :, a:a + 1, :, :].reshape(tl * W2, C),
                     wa_ref[...],
                     preferred_element_type=jnp.float32).reshape(tl, W2, C2)
        o_ref[0, :, a:a + 1, :, :] = (
            (ya + low_w2).reshape(tl, 1, W2, C2).astype(o_ref.dtype))


def _pan_head(x, up, wa, wb, *, block_bytes=_BLOCK_BYTES):
    """x: [N,Hx,Wx,C] NHWC; up: [N,2Hx,2Wx,C] NHWC -> [N,2Hx,2Wx,C/2]."""
    N, Hx, Wx, C = x.shape
    _, H2, W2, _ = up.shape
    assert H2 == 2 * Hx and W2 == 2 * Wx
    C2 = wa.shape[1]
    itemsize = jnp.dtype(up.dtype).itemsize
    tl = _row_tile(Hx, max(1, block_bytes // (2 * W2 * C * itemsize)))
    up5 = up.reshape(N, Hx, 2, W2, C)       # free: splits adjacent H2 -> (Hx,2)
    grid = (N, Hx // tl)
    out5 = pl.pallas_call(
        _pan_head_kernel,
        out_shape=jax.ShapeDtypeStruct((N, Hx, 2, W2, C2), up.dtype),
        grid_spec=pltpu.PrefetchScalarGridSpec(
            num_scalar_prefetch=0,
            grid=grid,
            in_specs=[
                pl.BlockSpec((1, tl, 2, W2, C), lambda n, r: (n, r, 0, 0, 0)),
                pl.BlockSpec((1, tl, Wx, C), lambda n, r: (n, r, 0, 0)),
                pl.BlockSpec((C, C2), lambda n, r: (0, 0)),
                pl.BlockSpec((C, C2), lambda n, r: (0, 0)),
            ],
            out_specs=pl.BlockSpec((1, tl, 2, W2, C2),
                                   lambda n, r: (n, r, 0, 0, 0)),
        ),
        compiler_params=pltpu.CompilerParams(
            dimension_semantics=("parallel", "parallel"),
            vmem_limit_bytes=_VMEM_LIMIT),
    )(up5, x, wa, wb)
    return out5.reshape(N, H2, W2, C2)      # free: merges (Hx,2) -> H2


# ------------- kernel B: 3x3(pad=1) conv with the 1x1 folded in --------------
def _pan_conv_block_kernel(xm_ref, xh_ref, w_ref, o_ref):
    # xm_ref: (1, th, W+2, Cin)  main rows of the pre-padded input tile
    # xh_ref: (1, 2,  W+2, Cin)  exactly the 2-row bottom halo
    # w_ref : (9, Cin, Cout)     3x3 weights with the trailing 1x1 folded in
    # o_ref : (1, th, W, Cout)
    _, th, W, _ = o_ref.shape
    Cin = xm_ref.shape[-1]

    xt = jnp.concatenate([xm_ref[0], xh_ref[0]], axis=0)     # (th+2, W+2, Cin)
    acc = None
    for kx in range(3):
        # One shifted column slab per kx, reused across the 3 ky taps.
        # TODO(synk): pltpu.roll(axis=-2) + aligned prefix slice would move
        # this shift onto the otherwise-idle XLU slot.
        col = xt[:, kx:kx + W, :]                            # (th+2, W, Cin)
        for ky in range(3):
            d = jnp.dot(col[ky:ky + th].reshape(th * W, Cin),
                        w_ref[3 * ky + kx],
                        preferred_element_type=jnp.float32)
            acc = d if acc is None else acc + d
    o_ref[...] = acc.reshape(o_ref.shape).astype(o_ref.dtype)


def _pan_conv_block(y, w3f, *, block_bytes=_BLOCK_BYTES):
    """y: [N,H,W,Cin] NHWC; fused 3x3(pad1)+1x1 (folded weights) -> Cout."""
    N, H, W, Cin = y.shape
    Cout = w3f.shape[-1]
    Wp = W + 2
    itemsize = jnp.dtype(y.dtype).itemsize
    th = _even_row_tile(H, max(2, block_bytes // (Wp * Cin * itemsize)))
    halo_blk = th // 2                      # block-index multiplier, 2-row halo
    # TODO(synk): fold this pad into the kernel (in-kernel zero borders).
    y_pad = jnp.pad(y, ((0, 0), (1, 1), (1, 1), (0, 0)))
    grid = (N, H // th)
    return pl.pallas_call(
        _pan_conv_block_kernel,
        out_shape=jax.ShapeDtypeStruct((N, H, W, Cout), y.dtype),
        grid_spec=pltpu.PrefetchScalarGridSpec(
            num_scalar_prefetch=0,
            grid=grid,
            in_specs=[
                pl.BlockSpec((1, th, Wp, Cin), lambda n, r: (n, r, 0, 0)),
                pl.BlockSpec((1, 2, Wp, Cin),
                             lambda n, r: (n, (r + 1) * halo_blk, 0, 0)),
                pl.BlockSpec((9, Cin, Cout), lambda n, r: (0, 0, 0)),
            ],
            out_specs=pl.BlockSpec((1, th, W, Cout), lambda n, r: (n, r, 0, 0)),
        ),
        compiler_params=pltpu.CompilerParams(
            dimension_semantics=("parallel", "parallel"),
            vmem_limit_bytes=_VMEM_LIMIT),
    )(y_pad, y_pad, w3f)


# ------------------------ parameter preparation (hoisted) ---------------------
def prepare_pan_params(p, compute_dtype=None):
    """One-time PyTorch-OIHW -> kernel-ready folded weights (folds in fp32)."""
    def mat(w):                      # [Cout, Cin, 1, 1] -> [Cin, Cout]
        return jnp.asarray(w[:, :, 0, 0], jnp.float32).T

    def k3(w):                       # [Cout, Cin, 3, 3] -> [3, 3, Cin, Cout]
        return jnp.transpose(jnp.asarray(w, jnp.float32), (2, 3, 1, 0))

    C = p["w_conv1"].shape[1]
    C2 = C // 2
    wc1 = mat(p["w_c1"])                                   # (C, C2)
    prep = {
        # head: y1 = up @ wa + up2x(x @ wb)    (exact: act/norm/drop are None)
        "wa": mat(p["w_conv2"]) @ wc1[:C2],
        "wb": mat(p["w_conv1"]) @ wc1[C2:],
        # conv blocks: trailing 1x1 folded into the 3x3 -> (9, Cin, Cout)
        "w3a": jnp.einsum("hwic,co->hwio", k3(p["w_c2"]),
                          mat(p["w_c3"])).reshape(9, C2, C2),
        "w3b": jnp.einsum("hwic,co->hwio", k3(p["w_c4"]),
                          mat(p["w_c5"])).reshape(9, C2, C2),
    }
    if compute_dtype is not None:    # e.g. jnp.bfloat16 on v6e/v7x
        prep = {k: v.astype(compute_dtype) for k, v in prep.items()}
    return prep


# ------------------------------ PAN forward -----------------------------------
def pan_forward(x_nchw, up_nchw, prep):
    """PAN.forward(x, up). Inputs/outputs NCHW; kernels run in NHWC."""
    cdt = prep["wa"].dtype
    x = jnp.transpose(x_nchw, (0, 2, 3, 1)).astype(cdt)
    up = jnp.transpose(up_nchw, (0, 2, 3, 1)).astype(cdt)

    y = _pan_head(x, up, prep["wa"], prep["wb"])           # [N,H2,W2,C/2]
    y = _pan_conv_block(y, prep["w3a"])                    # 3x3 + folded 1x1
    y = _pan_conv_block(y, prep["w3b"])                    # 3x3 + folded 1x1
    return jnp.transpose(y, (0, 3, 1, 2))


# --------------------------- pure-JAX reference -------------------------------
def _conv_ref(x, w, padding):
    return jax.lax.conv_general_dilated(
        x, w, (1, 1), padding, dimension_numbers=("NCHW", "OIHW", "NCHW"),
        precision=jax.lax.Precision.HIGHEST)


def pan_reference(x, up, p):
    out = _conv_ref(x, p["w_conv1"], "VALID")
    out = jnp.repeat(jnp.repeat(out, 2, axis=2), 2, axis=3)
    branch = _conv_ref(up, p["w_conv2"], "VALID")
    cat = jnp.concatenate([branch, out], axis=1)
    y = _conv_ref(cat, p["w_c1"], "VALID")
    y = _conv_ref(y, p["w_c2"], ((1, 1), (1, 1)))
    y = _conv_ref(y, p["w_c3"], "VALID")
    y = _conv_ref(y, p["w_c4"], ((1, 1), (1, 1)))
    y = _conv_ref(y, p["w_c5"], "VALID")
    return y


# ------------------------------------ main ------------------------------------
if __name__ == "__main__":
    key = jax.random.PRNGKey(0)
    keys = jax.random.split(key, 9)

    # Lane-dense config: C/2 = 128 keeps every output block a multiple of 128
    # lanes (unmasked stores) and gives MXU-friendly contraction depths.
    N, C, Hx, Wx = 2, 256, 8, 8          # x is the low-res feature map
    C2 = C // 2

    x = jax.random.normal(keys[0], (N, C, Hx, Wx), jnp.float32)
    up = jax.random.normal(keys[1], (N, C, 2 * Hx, 2 * Wx), jnp.float32)

    def conv_w(k, cout, cin, ksz):
        scale = 1.0 / np.sqrt(cin * ksz * ksz)
        return scale * jax.random.normal(k, (cout, cin, ksz, ksz), jnp.float32)

    params = {
        "w_conv1": conv_w(keys[2], C2, C, 1),   # conv1: C -> C/2, 1x1
        "w_conv2": conv_w(keys[3], C2, C, 1),   # conv2: C -> C/2, 1x1
        "w_c1":    conv_w(keys[4], C2, C, 1),   # convs[0]: C -> C/2, 1x1
        "w_c2":    conv_w(keys[5], C, C2, 3),   # convs[1]: C/2 -> C, 3x3 pad 1
        "w_c3":    conv_w(keys[6], C2, C, 1),   # convs[2]: C -> C/2, 1x1
        "w_c4":    conv_w(keys[7], C, C2, 3),   # convs[3]: C/2 -> C, 3x3 pad 1
        "w_c5":    conv_w(keys[8], C2, C, 1),   # convs[4]: C -> C/2, 1x1
    }

    # fp32 for the tight self-test; production: compute_dtype=jnp.bfloat16
    prep = prepare_pan_params(params)
    out = jax.block_until_ready(jax.jit(pan_forward)(x, up, prep))

    ref = pan_reference(x, up, params)
    assert out.shape == (N, C2, 2 * Hx, 2 * Wx), out.shape
    np.testing.assert_allclose(np.asarray(out), np.asarray(ref),
                               rtol=5e-3, atol=5e-3)

    print("KERNEL_OK")
</pallas_src>

<mosaic_0001>
module attributes {stable_mosaic.version = 11 : i64} {
  func.func @_pan_head_kernel(%arg0: i32, %arg1: i32, %arg2: memref<1x8x2x16x256xf32, #tpu.memory_space<vmem>>, %arg3: memref<1x8x8x256xf32, #tpu.memory_space<vmem>>, %arg4: memref<256x128xf32, #tpu.memory_space<vmem>>, %arg5: memref<256x128xf32, #tpu.memory_space<vmem>>, %arg6: memref<1x8x2x16x128xf32, #tpu.memory_space<vmem>>) attributes {dimension_semantics = [#tpu.dimension_semantics<parallel>, #tpu.dimension_semantics<parallel>], iteration_bounds = array<i64: 2, 1>, scalar_prefetch = 0 : i64, scratch_operands = 0 : i64, tpu.core_type = #tpu.core_type<tc>, window_params = [{transform_indices = @transform_0, window_bounds = array<i64: 1, 8, 2, 16, 256>}, {transform_indices = @transform_1, window_bounds = array<i64: 1, 8, 8, 256>}, {pipeline_mode = #tpu.pipeline_mode<synchronous>, transform_indices = @transform_2, window_bounds = array<i64: 256, 128>}, {pipeline_mode = #tpu.pipeline_mode<synchronous>, transform_indices = @transform_3, window_bounds = array<i64: 256, 128>}, {transform_indices = @transform_4, window_bounds = array<i64: 1, 8, 2, 16, 128>}]} {
    %c0 = arith.constant 0 : index
    %c0_0 = arith.constant 0 : index
    %c0_1 = arith.constant 0 : index
    %c0_2 = arith.constant 0 : index
    %0 = vector.load %arg3[%c0, %c0_0, %c0_1, %c0_2] : memref<1x8x8x256xf32, #tpu.memory_space<vmem>>, vector<1x8x8x256xf32>
    %1 = vector.shape_cast %0 : vector<1x8x8x256xf32> to vector<8x8x256xf32>
    %2 = vector.shape_cast %1 : vector<8x8x256xf32> to vector<64x256xf32>
    %c0_3 = arith.constant 0 : index
    %c0_4 = arith.constant 0 : index
    %3 = vector.load %arg5[%c0_3, %c0_4] : memref<256x128xf32, #tpu.memory_space<vmem>>, vector<256x128xf32>
    %cst = arith.constant dense<0.000000e+00> : vector<64x128xf32>
    %4 = tpu.matmul %2, %3, %cst {dimension_numbers = #tpu.dot_dimension_numbers<[1], [0], [0], [1], [0, 0, 1, 1], [], []>} : vector<64x256xf32>, vector<256x128xf32>, vector<64x128xf32> -> vector<64x128xf32>
    %5 = vector.shape_cast %4 : vector<64x128xf32> to vector<8x8x128xf32>
    %6 = tpu.concatenate %5, %5 in 2 : vector<8x8x128xf32>, vector<8x8x128xf32> -> vector<8x8x256xf32>
    %7 = vector.shape_cast %6 : vector<8x8x256xf32> to vector<8x16x128xf32>
    %c0_5 = arith.constant 0 : index
    %c0_6 = arith.constant 0 : index
    %c0_7 = arith.constant 0 : index
    %c0_8 = arith.constant 0 : index
    %c0_9 = arith.constant 0 : index
    %8 = vector.load %arg2[%c0_5, %c0_6, %c0_7, %c0_8, %c0_9] : memref<1x8x2x16x256xf32, #tpu.memory_space<vmem>>, vector<1x8x1x16x256xf32>
    %9 = vector.shape_cast %8 : vector<1x8x1x16x256xf32> to vector<8x1x16x256xf32>
    %10 = vector.shape_cast %9 : vector<8x1x16x256xf32> to vector<128x256xf32>
    %c0_10 = arith.constant 0 : index
    %c0_11 = arith.constant 0 : index
    %11 = vector.load %arg4[%c0_10, %c0_11] : memref<256x128xf32, #tpu.memory_space<vmem>>, vector<256x128xf32>
    %cst_12 = arith.constant dense<0.000000e+00> : vector<128x128xf32>
    %12 = tpu.matmul %10, %11, %cst_12 {dimension_numbers = #tpu.dot_dimension_numbers<[1], [0], [0], [1], [0, 0, 1, 1], [], []>} : vector<128x256xf32>, vector<256x128xf32>, vector<128x128xf32> -> vector<128x128xf32>
    %13 = vector.shape_cast %12 : vector<128x128xf32> to vector<8x16x128xf32>
    %14 = arith.addf %13, %7 : vector<8x16x128xf32>
    %15 = vector.shape_cast %14 : vector<8x16x128xf32> to vector<8x1x16x128xf32>
    %c0_13 = arith.constant 0 : index
    %c0_14 = arith.constant 0 : index
    %c0_15 = arith.constant 0 : index
    %c0_16 = arith.constant 0 : index
    %c0_17 = arith.constant 0 : index
    %16 = vector.load %arg6[%c0_13, %c0_14, %c0_15, %c0_16, %c0_17] : memref<1x8x2x16x128xf32, #tpu.memory_space<vmem>>, vector<1x8x1x16x128xf32>
    %17 = vector.shape_cast %16 : vector<1x8x1x16x128xf32> to vector<8x1x16x128xf32>
    %18 = vector.shape_cast %15 : vector<8x1x16x128xf32> to vector<1x8x1x16x128xf32>
    tpu.vector_store %arg6[%c0_13, %c0_14, %c0_15, %c0_16, %c0_17], %18 {strides = array<i32>} : memref<1x8x2x16x128xf32, #tpu.memory_space<vmem>>, vector<1x8x1x16x128xf32>,
    %c0_18 = arith.constant 0 : index
    %c0_19 = arith.constant 0 : index
    %c1 = arith.constant 1 : index
    %c0_20 = arith.constant 0 : index
    %c0_21 = arith.constant 0 : index
    %19 = vector.load %arg2[%c0_18, %c0_19, %c1, %c0_20, %c0_21] : memref<1x8x2x16x256xf32, #tpu.memory_space<vmem>>, vector<1x8x1x16x256xf32>
    %20 = vector.shape_cast %19 : vector<1x8x1x16x256xf32> to vector<8x1x16x256xf32>
    %21 = vector.shape_cast %20 : vector<8x1x16x256xf32> to vector<128x256xf32>
    %c0_22 = arith.constant 0 : index
    %c0_23 = arith.constant 0 : index
    %22 = vector.load %arg4[%c0_22, %c0_23] : memref<256x128xf32, #tpu.memory_space<vmem>>, vector<256x128xf32>
    %cst_24 = arith.constant dense<0.000000e+00> : vector<128x128xf32>
    %23 = tpu.matmul %21, %22, %cst_24 {dimension_numbers = #tpu.dot_dimension_numbers<[1], [0], [0], [1], [0, 0, 1, 1], [], []>} : vector<128x256xf32>, vector<256x128xf32>, vector<128x128xf32> -> vector<128x128xf32>
    %24 = vector.shape_cast %23 : vector<128x128xf32> to vector<8x16x128xf32>
    %25 = arith.addf %24, %7 : vector<8x16x128xf32>
    %26 = vector.shape_cast %25 : vector<8x16x128xf32> to vector<8x1x16x128xf32>
    %c0_25 = arith.constant 0 : index
    %c0_26 = arith.constant 0 : index
    %c1_27 = arith.constant 1 : index
    %c0_28 = arith.constant 0 : index
    %c0_29 = arith.constant 0 : index
    %27 = vector.load %arg6[%c0_25, %c0_26, %c1_27, %c0_28, %c0_29] : memref<1x8x2x16x128xf32, #tpu.memory_space<vmem>>, vector<1x8x1x16x128xf32>
    %28 = vector.shape_cast %27 : vector<1x8x1x16x128xf32> to vector<8x1x16x128xf32>
    %29 = vector.shape_cast %26 : vector<8x1x16x128xf32> to vector<1x8x1x16x128xf32>
    tpu.vector_store %arg6[%c0_25, %c0_26, %c1_27, %c0_28, %c0_29], %29 {strides = array<i32>} : memref<1x8x2x16x128xf32, #tpu.memory_space<vmem>>, vector<1x8x1x16x128xf32>,
    return
  }
  func.func @transform_0(%arg0: i32, %arg1: i32) -> (i32, i32, i32, i32, i32) {
    %c0_i32 = arith.constant 0 : i32
    %c0_i32_0 = arith.constant 0 : i32
    %c0_i32_1 = arith.constant 0 : i32
    %c0_i32_2 = arith.constant 0 : i32
    return %arg0, %arg1, %c0_i32, %c0_i32_0, %c0_i32_1 : i32, i32, i32, i32, i32
  }
  func.func @transform_1(%arg0: i32, %arg1: i32) -> (i32, i32, i32, i32) {
    %c0_i32 = arith.constant 0 : i32
    %c0_i32_0 = arith.constant 0 : i32
    %c0_i32_1 = arith.constant 0 : i32
    return %arg0, %arg1, %c0_i32, %c0_i32_0 : i32, i32, i32, i32
  }
  func.func @transform_2(%arg0: i32, %arg1: i32) -> (i32, i32) {
    %c0_i32 = arith.constant 0 : i32
    %c0_i32_0 = arith.constant 0 : i32
    %c0_i32_1 = arith.constant 0 : i32
    return %c0_i32, %c0_i32_0 : i32, i32
  }
  func.func @transform_3(%arg0: i32, %arg1: i32) -> (i32, i32) {
    %c0_i32 = arith.constant 0 : i32
    %c0_i32_0 = arith.constant 0 : i32
    %c0_i32_1 = arith.constant 0 : i32
    return %c0_i32, %c0_i32_0 : i32, i32
  }
  func.func @transform_4(%arg0: i32, %arg1: i32) -> (i32, i32, i32, i32, i32) {
    %c0_i32 = arith.constant 0 : i32
    %c0_i32_0 = arith.constant 0 : i32
    %c0_i32_1 = arith.constant 0 : i32
    %c0_i32_2 = arith.constant 0 : i32
    return %arg0, %arg1, %c0_i32, %c0_i32_0, %c0_i32_1 : i32, i32, i32, i32, i32
  }
}

module attributes {stable_mosaic.version = 11 : i64} {
  func.func @_pan_conv_block_kernel(%arg0: i32, %arg1: i32, %arg2: memref<1x16x18x128xf32, #tpu.memory_space<vmem>>, %arg3: memref<1x2x18x128xf32, #tpu.memory_space<vmem>>, %arg4: memref<9x128x128xf32, #tpu.memory_space<vmem>>, %arg5: memref<1x16x16x128xf32, #tpu.memory_space<vmem>>) attributes {dimension_semantics = [#tpu.dimension_semantics<parallel>, #tpu.dimension_semantics<parallel>], iteration_bounds = array<i64: 2, 1>, scalar_prefetch = 0 : i64, scratch_operands = 0 : i64, tpu.core_type = #tpu.core_type<tc>, window_params = [{transform_indices = @transform_0, window_bounds = array<i64: 1, 16, 18, 128>}, {transform_indices = @transform_1, window_bounds = array<i64: 1, 2, 18, 128>}, {pipeline_mode = #tpu.pipeline_mode<synchronous>, transform_indices = @transform_2, window_bounds = array<i64: 9, 128, 128>}, {transform_indices = @transform_3, window_bounds = array<i64: 1, 16, 16, 128>}]} {
    %c0 = arith.constant 0 : index
    %c0_0 = arith.constant 0 : index
    %c0_1 = arith.constant 0 : index
    %c0_2 = arith.constant 0 : index
    %0 = vector.load %arg2[%c0, %c0_0, %c0_1, %c0_2] : memref<1x16x18x128xf32, #tpu.memory_space<vmem>>, vector<1x16x18x128xf32>
    %1 = vector.shape_cast %0 : vector<1x16x18x128xf32> to vector<16x18x128xf32>
    %c0_3 = arith.constant 0 : index
    %c0_4 = arith.constant 0 : index
    %c0_5 = arith.constant 0 : index
    %c0_6 = arith.constant 0 : index
    %2 = vector.load %arg3[%c0_3, %c0_4, %c0_5, %c0_6] : memref<1x2x18x128xf32, #tpu.memory_space<vmem>>, vector<1x2x18x128xf32>
    %3 = vector.shape_cast %2 : vector<1x2x18x128xf32> to vector<2x18x128xf32>
    %4 = tpu.concatenate %1, %3 in 0 : vector<16x18x128xf32>, vector<2x18x128xf32> -> vector<18x18x128xf32>
    %5 = vector.extract_strided_slice %4 {offsets = [0, 0, 0], sizes = [18, 16, 128], strides = [1, 1, 1]} : vector<18x18x128xf32> to vector<18x16x128xf32>
    %6 = vector.extract_strided_slice %5 {offsets = [0, 0, 0], sizes = [16, 16, 128], strides = [1, 1, 1]} : vector<18x16x128xf32> to vector<16x16x128xf32>
    %7 = vector.shape_cast %6 : vector<16x16x128xf32> to vector<256x128xf32>
    %c0_7 = arith.constant 0 : index
    %c0_8 = arith.constant 0 : index
    %c0_9 = arith.constant 0 : index
    %8 = vector.load %arg4[%c0_7, %c0_8, %c0_9] : memref<9x128x128xf32, #tpu.memory_space<vmem>>, vector<1x128x128xf32>
    %9 = vector.shape_cast %8 : vector<1x128x128xf32> to vector<128x128xf32>
    %cst = arith.constant dense<0.000000e+00> : vector<256x128xf32>
    %10 = tpu.matmul %7, %9, %cst {dimension_numbers = #tpu.dot_dimension_numbers<[1], [0], [0], [1], [0, 0, 1, 1], [], []>} : vector<256x128xf32>, vector<128x128xf32>, vector<256x128xf32> -> vector<256x128xf32>
    %11 = vector.extract_strided_slice %5 {offsets = [1, 0, 0], sizes = [16, 16, 128], strides = [1, 1, 1]} : vector<18x16x128xf32> to vector<16x16x128xf32>
    %12 = vector.shape_cast %11 : vector<16x16x128xf32> to vector<256x128xf32>
    %c3 = arith.constant 3 : index
    %c0_10 = arith.constant 0 : index
    %c0_11 = arith.constant 0 : index
    %13 = vector.load %arg4[%c3, %c0_10, %c0_11] : memref<9x128x128xf32, #tpu.memory_space<vmem>>, vector<1x128x128xf32>
    %14 = vector.shape_cast %13 : vector<1x128x128xf32> to vector<128x128xf32>
    %cst_12 = arith.constant dense<0.000000e+00> : vector<256x128xf32>
    %15 = tpu.matmul %12, %14, %cst_12 {dimension_numbers = #tpu.dot_dimension_numbers<[1], [0], [0], [1], [0, 0, 1, 1], [], []>} : vector<256x128xf32>, vector<128x128xf32>, vector<256x128xf32> -> vector<256x128xf32>
    %16 = arith.addf %10, %15 : vector<256x128xf32>
    %17 = vector.extract_strided_slice %5 {offsets = [2, 0, 0], sizes = [16, 16, 128], strides = [1, 1, 1]} : vector<18x16x128xf32> to vector<16x16x128xf32>
    %18 = vector.shape_cast %17 : vector<16x16x128xf32> to vector<256x128xf32>
    %c6 = arith.constant 6 : index
    %c0_13 = arith.constant 0 : index
    %c0_14 = arith.constant 0 : index
    %19 = vector.load %arg4[%c6, %c0_13, %c0_14] : memref<9x128x128xf32, #tpu.memory_space<vmem>>, vector<1x128x128xf32>
    %20 = vector.shape_cast %19 : vector<1x128x128xf32> to vector<128x128xf32>
    %cst_15 = arith.constant dense<0.000000e+00> : vector<256x128xf32>
    %21 = tpu.matmul %18, %20, %cst_15 {dimension_numbers = #tpu.dot_dimension_numbers<[1], [0], [0], [1], [0, 0, 1, 1], [], []>} : vector<256x128xf32>, vector<128x128xf32>, vector<256x128xf32> -> vector<256x128xf32>
    %22 = arith.addf %16, %21 : vector<256x128xf32>
    %23 = vector.extract_strided_slice %4 {offsets = [0, 1, 0], sizes = [18, 16, 128], strides = [1, 1, 1]} : vector<18x18x128xf32> to vector<18x16x128xf32>
    %24 = vector.extract_strided_slice %23 {offsets = [0, 0, 0], sizes = [16, 16, 128], strides = [1, 1, 1]} : vector<18x16x128xf32> to vector<16x16x128xf32>
    %25 = vector.shape_cast %24 : vector<16x16x128xf32> to vector<256x128xf32>
    %c1 = arith.constant 1 : index
    %c0_16 = arith.constant 0 : index
    %c0_17 = arith.constant 0 : index
    %26 = vector.load %arg4[%c1, %c0_16, %c0_17] : memref<9x128x128xf32, #tpu.memory_space<vmem>>, vector<1x128x128xf32>
    %27 = vector.shape_cast %26 : vector<1x128x128xf32> to vector<128x128xf32>
    %cst_18 = arith.constant dense<0.000000e+00> : vector<256x128xf32>
    %28 = tpu.matmul %25, %27, %cst_18 {dimension_numbers = #tpu.dot_dimension_numbers<[1], [0], [0], [1], [0, 0, 1, 1], [], []>} : vector<256x128xf32>, vector<128x128xf32>, vector<256x128xf32> -> vector<256x128xf32>
    %29 = arith.addf %22, %28 : vector<256x128xf32>
    %30 = vector.extract_strided_slice %23 {offsets = [1, 0, 0], sizes = [16, 16, 128], strides = [1, 1, 1]} : vector<18x16x128xf32> to vector<16x16x128xf32>
    %31 = vector.shape_cast %30 : vector<16x16x128xf32> to vector<256x128xf32>
    %c4 = arith.constant 4 : index
    %c0_19 = arith.constant 0 : index
    %c0_20 = arith.constant 0 : index
    %32 = vector.load %arg4[%c4, %c0_19, %c0_20] : memref<9x128x128xf32, #tpu.memory_space<vmem>>, vector<1x128x128xf32>
    %33 = vector.shape_cast %32 : vector<1x128x128xf32> to vector<128x128xf32>
    %cst_21 = arith.constant dense<0.000000e+00> : vector<256x128xf32>
    %34 = tpu.matmul %31, %33, %cst_21 {dimension_numbers = #tpu.dot_dimension_numbers<[1], [0], [0], [1], [0, 0, 1, 1], [], []>} : vector<256x128xf32>, vector<128x128xf32>, vector<256x128xf32> -> vector<256x128xf32>
    %35 = arith.addf %29, %34 : vector<256x128xf32>
    %36 = vector.extract_strided_slice %23 {offsets = [2, 0, 0], sizes = [16, 16, 128], strides = [1, 1, 1]} : vector<18x16x128xf32> to vector<16x16x128xf32>
    %37 = vector.shape_cast %36 : vector<16x16x128xf32> to vector<256x128xf32>
    %c7 = arith.constant 7 : index
    %c0_22 = arith.constant 0 : index
    %c0_23 = arith.constant 0 : index
    %38 = vector.load %arg4[%c7, %c0_22, %c0_23] : memref<9x128x128xf32, #tpu.memory_space<vmem>>, vector<1x128x128xf32>
    %39 = vector.shape_cast %38 : vector<1x128x128xf32> to vector<128x128xf32>
    %cst_24 = arith.constant dense<0.000000e+00> : vector<256x128xf32>
    %40 = tpu.matmul %37, %39, %cst_24 {dimension_numbers = #tpu.dot_dimension_numbers<[1], [0], [0], [1], [0, 0, 1, 1], [], []>} : vector<256x128xf32>, vector<128x128xf32>, vector<256x128xf32> -> vector<256x128xf32>
    %41 = arith.addf %35, %40 : vector<256x128xf32>
    %42 = vector.extract_strided_slice %4 {offsets = [0, 2, 0], sizes = [18, 16, 128], strides = [1, 1, 1]} : vector<18x18x128xf32> to vector<18x16x128xf32>
    %43 = vector.extract_strided_slice %42 {offsets = [0, 0, 0], sizes = [16, 16, 128], strides = [1, 1, 1]} : vector<18x16x128xf32> to vector<16x16x128xf32>
    %44 = vector.shape_cast %43 : vector<16x16x128xf32> to vector<256x128xf32>
    %c2 = arith.constant 2 : index
    %c0_25 = arith.constant 0 : index
    %c0_26 = arith.constant 0 : index
    %45 = vector.load %arg4[%c2, %c0_25, %c0_26] : memref<9x128x128xf32, #tpu.memory_space<vmem>>, vector<1x128x128xf32>
    %46 = vector.shape_cast %45 : vector<1x128x128xf32> to vector<128x128xf32>
    %cst_27 = arith.constant dense<0.000000e+00> : vector<256x128xf32>
    %47 = tpu.matmul %44, %46, %cst_27 {dimension_numbers = #tpu.dot_dimension_numbers<[1], [0], [0], [1], [0, 0, 1, 1], [], []>} : vector<256x128xf32>, vector<128x128xf32>, vector<256x128xf32> -> vector<256x128xf32>
    %48 = arith.addf %41, %47 : vector<256x128xf32>
    %49 = vector.extract_strided_slice %42 {offsets = [1, 0, 0], sizes = [16, 16, 128], strides = [1, 1, 1]} : vector<18x16x128xf32> to vector<16x16x128xf32>
    %50 = vector.shape_cast %49 : vector<16x16x128xf32> to vector<256x128xf32>
    %c5 = arith.constant 5 : index
    %c0_28 = arith.constant 0 : index
    %c0_29 = arith.constant 0 : index
    %51 = vector.load %arg4[%c5, %c0_28, %c0_29] : memref<9x128x128xf32, #tpu.memory_space<vmem>>, vector<1x128x128xf32>
    %52 = vector.shape_cast %51 : vector<1x128x128xf32> to vector<128x128xf32>
    %cst_30 = arith.constant dense<0.000000e+00> : vector<256x128xf32>
    %53 = tpu.matmul %50, %52, %cst_30 {dimension_numbers = #tpu.dot_dimension_numbers<[1], [0], [0], [1], [0, 0, 1, 1], [], []>} : vector<256x128xf32>, vector<128x128xf32>, vector<256x128xf32> -> vector<256x128xf32>
    %54 = arith.addf %48, %53 : vector<256x128xf32>
    %55 = vector.extract_strided_slice %42 {offsets = [2, 0, 0], sizes = [16, 16, 128], strides = [1, 1, 1]} : vector<18x16x128xf32> to vector<16x16x128xf32>
    %56 = vector.shape_cast %55 : vector<16x16x128xf32> to vector<256x128xf32>
    %c8 = arith.constant 8 : index
    %c0_31 = arith.constant 0 : index
    %c0_32 = arith.constant 0 : index
    %57 = vector.load %arg4[%c8, %c0_31, %c0_32] : memref<9x128x128xf32, #tpu.memory_space<vmem>>, vector<1x128x128xf32>
    %58 = vector.shape_cast %57 : vector<1x128x128xf32> to vector<128x128xf32>
    %cst_33 = arith.constant dense<0.000000e+00> : vector<256x128xf32>
    %59 = tpu.matmul %56, %58, %cst_33 {dimension_numbers = #tpu.dot_dimension_numbers<[1], [0], [0], [1], [0, 0, 1, 1], [], []>} : vector<256x128xf32>, vector<128x128xf32>, vector<256x128xf32> -> vector<256x128xf32>
    %60 = arith.addf %54, %59 : vector<256x128xf32>
    %61 = vector.shape_cast %60 : vector<256x128xf32> to vector<1x16x16x128xf32>
    %c0_34 = arith.constant 0 : index
    %c0_35 = arith.constant 0 : index
    %c0_36 = arith.constant 0 : index
    %c0_37 = arith.constant 0 : index
    %62 = vector.load %arg5[%c0_34, %c0_35, %c0_36, %c0_37] : memref<1x16x16x128xf32, #tpu.memory_space<vmem>>, vector<1x16x16x128xf32>
    tpu.vector_store %arg5[%c0_34, %c0_35, %c0_36, %c0_37], %61 {strides = array<i32>} : memref<1x16x16x128xf32, #tpu.memory_space<vmem>>, vector<1x16x16x128xf32>,
    return
  }
  func.func @transform_0(%arg0: i32, %arg1: i32) -> (i32, i32, i32, i32) {
    %c0_i32 = arith.constant 0 : i32
    %c0_i32_0 = arith.constant 0 : i32
    %c0_i32_1 = arith.constant 0 : i32
    return %arg0, %arg1, %c0_i32, %c0_i32_0 : i32, i32, i32, i32
  }
  func.func @transform_1(%arg0: i32, %arg1: i32) -> (i32, i32, i32, i32) {
    %c1_i32 = arith.constant 1 : i32
    %0 = arith.addi %arg1, %c1_i32 : i32
    %c8_i32 = arith.constant 8 : i32
    %1 = arith.muli %0, %c8_i32 : i32
    %c0_i32 = arith.constant 0 : i32
    %c0_i32_0 = arith.constant 0 : i32
    %c0_i32_1 = arith.constant 0 : i32
    return %arg0, %1, %c0_i32, %c0_i32_0 : i32, i32, i32, i32
  }
  func.func @transform_2(%arg0: i32, %arg1: i32) -> (i32, i32, i32) {
    %c0_i32 = arith.constant 0 : i32
    %c0_i32_0 = arith.constant 0 : i32
    %c0_i32_1 = arith.constant 0 : i32
    %c0_i32_2 = arith.constant 0 : i32
    return %c0_i32, %c0_i32_0, %c0_i32_1 : i32, i32, i32
  }
  func.func @transform_3(%arg0: i32, %arg1: i32) -> (i32, i32, i32, i32) {
    %c0_i32 = arith.constant 0 : i32
    %c0_i32_0 = arith.constant 0 : i32
    %c0_i32_1 = arith.constant 0 : i32
    return %arg0, %arg1, %c0_i32, %c0_i32_0 : i32, i32, i32, i32
  }
}

module attributes {stable_mosaic.version = 11 : i64} {
  func.func @_pan_conv_block_kernel(%arg0: i32, %arg1: i32, %arg2: memref<1x16x18x128xf32, #tpu.memory_space<vmem>>, %arg3: memref<1x2x18x128xf32, #tpu.memory_space<vmem>>, %arg4: memref<9x128x128xf32, #tpu.memory_space<vmem>>, %arg5: memref<1x16x16x128xf32, #tpu.memory_space<vmem>>) attributes {dimension_semantics = [#tpu.dimension_semantics<parallel>, #tpu.dimension_semantics<parallel>], iteration_bounds = array<i64: 2, 1>, scalar_prefetch = 0 : i64, scratch_operands = 0 : i64, tpu.core_type = #tpu.core_type<tc>, window_params = [{transform_indices = @transform_0, window_bounds = array<i64: 1, 16, 18, 128>}, {transform_indices = @transform_1, window_bounds = array<i64: 1, 2, 18, 128>}, {pipeline_mode = #tpu.pipeline_mode<synchronous>, transform_indices = @transform_2, window_bounds = array<i64: 9, 128, 128>}, {transform_indices = @transform_3, window_bounds = array<i64: 1, 16, 16, 128>}]} {
    %c0 = arith.constant 0 : index
    %c0_0 = arith.constant 0 : index
    %c0_1 = arith.constant 0 : index
    %c0_2 = arith.constant 0 : index
    %0 = vector.load %arg2[%c0, %c0_0, %c0_1, %c0_2] : memref<1x16x18x128xf32, #tpu.memory_space<vmem>>, vector<1x16x18x128xf32>
    %1 = vector.shape_cast %0 : vector<1x16x18x128xf32> to vector<16x18x128xf32>
    %c0_3 = arith.constant 0 : index
    %c0_4 = arith.constant 0 : index
    %c0_5 = arith.constant 0 : index
    %c0_6 = arith.constant 0 : index
    %2 = vector.load %arg3[%c0_3, %c0_4, %c0_5, %c0_6] : memref<1x2x18x128xf32, #tpu.memory_space<vmem>>, vector<1x2x18x128xf32>
    %3 = vector.shape_cast %2 : vector<1x2x18x128xf32> to vector<2x18x128xf32>
    %4 = tpu.concatenate %1, %3 in 0 : vector<16x18x128xf32>, vector<2x18x128xf32> -> vector<18x18x128xf32>
    %5 = vector.extract_strided_slice %4 {offsets = [0, 0, 0], sizes = [18, 16, 128], strides = [1, 1, 1]} : vector<18x18x128xf32> to vector<18x16x128xf32>
    %6 = vector.extract_strided_slice %5 {offsets = [0, 0, 0], sizes = [16, 16, 128], strides = [1, 1, 1]} : vector<18x16x128xf32> to vector<16x16x128xf32>
    %7 = vector.shape_cast %6 : vector<16x16x128xf32> to vector<256x128xf32>
    %c0_7 = arith.constant 0 : index
    %c0_8 = arith.constant 0 : index
    %c0_9 = arith.constant 0 : index
    %8 = vector.load %arg4[%c0_7, %c0_8, %c0_9] : memref<9x128x128xf32, #tpu.memory_space<vmem>>, vector<1x128x128xf32>
    %9 = vector.shape_cast %8 : vector<1x128x128xf32> to vector<128x128xf32>
    %cst = arith.constant dense<0.000000e+00> : vector<256x128xf32>
    %10 = tpu.matmul %7, %9, %cst {dimension_numbers = #tpu.dot_dimension_numbers<[1], [0], [0], [1], [0, 0, 1, 1], [], []>} : vector<256x128xf32>, vector<128x128xf32>, vector<256x128xf32> -> vector<256x128xf32>
    %11 = vector.extract_strided_slice %5 {offsets = [1, 0, 0], sizes = [16, 16, 128], strides = [1, 1, 1]} : vector<18x16x128xf32> to vector<16x16x128xf32>
    %12 = vector.shape_cast %11 : vector<16x16x128xf32> to vector<256x128xf32>
    %c3 = arith.constant 3 : index
    %c0_10 = arith.constant 0 : index
    %c0_11 = arith.constant 0 : index
    %13 = vector.load %arg4[%c3, %c0_10, %c0_11] : memref<9x128x128xf32, #tpu.memory_space<vmem>>, vector<1x128x128xf32>
    %14 = vector.shape_cast %13 : vector<1x128x128xf32> to vector<128x128xf32>
    %cst_12 = arith.constant dense<0.000000e+00> : vector<256x128xf32>
    %15 = tpu.matmul %12, %14, %cst_12 {dimension_numbers = #tpu.dot_dimension_numbers<[1], [0], [0], [1], [0, 0, 1, 1], [], []>} : vector<256x128xf32>, vector<128x128xf32>, vector<256x128xf32> -> vector<256x128xf32>
    %16 = arith.addf %10, %15 : vector<256x128xf32>
    %17 = vector.extract_strided_slice %5 {offsets = [2, 0, 0], sizes = [16, 16, 128], strides = [1, 1, 1]} : vector<18x16x128xf32> to vector<16x16x128xf32>
    %18 = vector.shape_cast %17 : vector<16x16x128xf32> to vector<256x128xf32>
    %c6 = arith.constant 6 : index
    %c0_13 = arith.constant 0 : index
    %c0_14 = arith.constant 0 : index
    %19 = vector.load %arg4[%c6, %c0_13, %c0_14] : memref<9x128x128xf32, #tpu.memory_space<vmem>>, vector<1x128x128xf32>
    %20 = vector.shape_cast %19 : vector<1x128x128xf32> to vector<128x128xf32>
    %cst_15 = arith.constant dense<0.000000e+00> : vector<256x128xf32>
    %21 = tpu.matmul %18, %20, %cst_15 {dimension_numbers = #tpu.dot_dimension_numbers<[1], [0], [0], [1], [0, 0, 1, 1], [], []>} : vector<256x128xf32>, vector<128x128xf32>, vector<256x128xf32> -> vector<256x128xf32>
    %22 = arith.addf %16, %21 : vector<256x128xf32>
    %23 = vector.extract_strided_slice %4 {offsets = [0, 1, 0], sizes = [18, 16, 128], strides = [1, 1, 1]} : vector<18x18x128xf32> to vector<18x16x128xf32>
    %24 = vector.extract_strided_slice %23 {offsets = [0, 0, 0], sizes = [16, 16, 128], strides = [1, 1, 1]} : vector<18x16x128xf32> to vector<16x16x128xf32>
    %25 = vector.shape_cast %24 : vector<16x16x128xf32> to vector<256x128xf32>
    %c1 = arith.constant 1 : index
    %c0_16 = arith.constant 0 : index
    %c0_17 = arith.constant 0 : index
    %26 = vector.load %arg4[%c1, %c0_16, %c0_17] : memref<9x128x128xf32, #tpu.memory_space<vmem>>, vector<1x128x128xf32>
    %27 = vector.shape_cast %26 : vector<1x128x128xf32> to vector<128x128xf32>
    %cst_18 = arith.constant dense<0.000000e+00> : vector<256x128xf32>
    %28 = tpu.matmul %25, %27, %cst_18 {dimension_numbers = #tpu.dot_dimension_numbers<[1], [0], [0], [1], [0, 0, 1, 1], [], []>} : vector<256x128xf32>, vector<128x128xf32>, vector<256x128xf32> -> vector<256x128xf32>
    %29 = arith.addf %22, %28 : vector<256x128xf32>
    %30 = vector.extract_strided_slice %23 {offsets = [1, 0, 0], sizes = [16, 16, 128], strides = [1, 1, 1]} : vector<18x16x128xf32> to vector<16x16x128xf32>
    %31 = vector.shape_cast %30 : vector<16x16x128xf32> to vector<256x128xf32>
    %c4 = arith.constant 4 : index
    %c0_19 = arith.constant 0 : index
    %c0_20 = arith.constant 0 : index
    %32 = vector.load %arg4[%c4, %c0_19, %c0_20] : memref<9x128x128xf32, #tpu.memory_space<vmem>>, vector<1x128x128xf32>
    %33 = vector.shape_cast %32 : vector<1x128x128xf32> to vector<128x128xf32>
    %cst_21 = arith.constant dense<0.000000e+00> : vector<256x128xf32>
    %34 = tpu.matmul %31, %33, %cst_21 {dimension_numbers = #tpu.dot_dimension_numbers<[1], [0], [0], [1], [0, 0, 1, 1], [], []>} : vector<256x128xf32>, vector<128x128xf32>, vector<256x128xf32> -> vector<256x128xf32>
    %35 = arith.addf %29, %34 : vector<256x128xf32>
    %36 = vector.extract_strided_slice %23 {offsets = [2, 0, 0], sizes = [16, 16, 128], strides = [1, 1, 1]} : vector<18x16x128xf32> to vector<16x16x128xf32>
    %37 = vector.shape_cast %36 : vector<16x16x128xf32> to vector<256x128xf32>
    %c7 = arith.constant 7 : index
    %c0_22 = arith.constant 0 : index
    %c0_23 = arith.constant 0 : index
    %38 = vector.load %arg4[%c7, %c0_22, %c0_23] : memref<9x128x128xf32, #tpu.memory_space<vmem>>, vector<1x128x128xf32>
    %39 = vector.shape_cast %38 : vector<1x128x128xf32> to vector<128x128xf32>
    %cst_24 = arith.constant dense<0.000000e+00> : vector<256x128xf32>
    %40 = tpu.matmul %37, %39, %cst_24 {dimension_numbers = #tpu.dot_dimension_numbers<[1], [0], [0], [1], [0, 0, 1, 1], [], []>} : vector<256x128xf32>, vector<128x128xf32>, vector<256x128xf32> -> vector<256x128xf32>
    %41 = arith.addf %35, %40 : vector<256x128xf32>
    %42 = vector.extract_strided_slice %4 {offsets = [0, 2, 0], sizes = [18, 16, 128], strides = [1, 1, 1]} : vector<18x18x128xf32> to vector<18x16x128xf32>
    %43 = vector.extract_strided_slice %42 {offsets = [0, 0, 0], sizes = [16, 16, 128], strides = [1, 1, 1]} : vector<18x16x128xf32> to vector<16x16x128xf32>
    %44 = vector.shape_cast %43 : vector<16x16x128xf32> to vector<256x128xf32>
    %c2 = arith.constant 2 : index
    %c0_25 = arith.constant 0 : index
    %c0_26 = arith.constant 0 : index
    %45 = vector.load %arg4[%c2, %c0_25, %c0_26] : memref<9x128x128xf32, #tpu.memory_space<vmem>>, vector<1x128x128xf32>
    %46 = vector.shape_cast %45 : vector<1x128x128xf32> to vector<128x128xf32>
    %cst_27 = arith.constant dense<0.000000e+00> : vector<256x128xf32>
    %47 = tpu.matmul %44, %46, %cst_27 {dimension_numbers = #tpu.dot_dimension_numbers<[1], [0], [0], [1], [0, 0, 1, 1], [], []>} : vector<256x128xf32>, vector<128x128xf32>, vector<256x128xf32> -> vector<256x128xf32>
    %48 = arith.addf %41, %47 : vector<256x128xf32>
    %49 = vector.extract_strided_slice %42 {offsets = [1, 0, 0], sizes = [16, 16, 128], strides = [1, 1, 1]} : vector<18x16x128xf32> to vector<16x16x128xf32>
    %50 = vector.shape_cast %49 : vector<16x16x128xf32> to vector<256x128xf32>
    %c5 = arith.constant 5 : index
    %c0_28 = arith.constant 0 : index
    %c0_29 = arith.constant 0 : index
    %51 = vector.load %arg4[%c5, %c0_28, %c0_29] : memref<9x128x128xf32, #tpu.memory_space<vmem>>, vector<1x128x128xf32>
    %52 = vector.shape_cast %51 : vector<1x128x128xf32> to vector<128x128xf32>
    %cst_30 = arith.constant dense<0.000000e+00> : vector<256x128xf32>
    %53 = tpu.matmul %50, %52, %cst_30 {dimension_numbers = #tpu.dot_dimension_numbers<[1], [0], [0], [1], [0, 0, 1, 1], [], []>} : vector<256x128xf32>, vector<128x128xf32>, vector<256x128xf32> -> vector<256x128xf32>
    %54 = arith.addf %48, %53 : vector<256x128xf32>
    %55 = vector.extract_strided_slice %42 {offsets = [2, 0, 0], sizes = [16, 16, 128], strides = [1, 1, 1]} : vector<18x16x128xf32> to vector<16x16x128xf32>
    %56 = vector.shape_cast %55 : vector<16x16x128xf32> to vector<256x128xf32>
    %c8 = arith.constant 8 : index
    %c0_31 = arith.constant 0 : index
    %c0_32 = arith.constant 0 : index
    %57 = vector.load %arg4[%c8, %c0_31, %c0_32] : memref<9x128x128xf32, #tpu.memory_space<vmem>>, vector<1x128x128xf32>
    %58 = vector.shape_cast %57 : vector<1x128x128xf32> to vector<128x128xf32>
    %cst_33 = arith.constant dense<0.000000e+00> : vector<256x128xf32>
    %59 = tpu.matmul %56, %58, %cst_33 {dimension_numbers = #tpu.dot_dimension_numbers<[1], [0], [0], [1], [0, 0, 1, 1], [], []>} : vector<256x128xf32>, vector<128x128xf32>, vector<256x128xf32> -> vector<256x128xf32>
    %60 = arith.addf %54, %59 : vector<256x128xf32>
    %61 = vector.shape_cast %60 : vector<256x128xf32> to vector<1x16x16x128xf32>
    %c0_34 = arith.constant 0 : index
    %c0_35 = arith.constant 0 : index
    %c0_36 = arith.constant 0 : index
    %c0_37 = arith.constant 0 : index
    %62 = vector.load %arg5[%c0_34, %c0_35, %c0_36, %c0_37] : memref<1x16x16x128xf32, #tpu.memory_space<vmem>>, vector<1x16x16x128xf32>
    tpu.vector_store %arg5[%c0_34, %c0_35, %c0_36, %c0_37], %61 {strides = array<i32>} : memref<1x16x16x128xf32, #tpu.memory_space<vmem>>, vector<1x16x16x128xf32>,
    return
  }
  func.func @transform_0(%arg0: i32, %arg1: i32) -> (i32, i32, i32, i32) {
    %c0_i32 = arith.constant 0 : i32
    %c0_i32_0 = arith.constant 0 : i32
    %c0_i32_1 = arith.constant 0 : i32
    return %arg0, %arg1, %c0_i32, %c0_i32_0 : i32, i32, i32, i32
  }
  func.func @transform_1(%arg0: i32, %arg1: i32) -> (i32, i32, i32, i32) {
    %c1_i32 = arith.constant 1 : i32
    %0 = arith.addi %arg1, %c1_i32 : i32
    %c8_i32 = arith.constant 8 : i32
    %1 = arith.muli %0, %c8_i32 : i32
    %c0_i32 = arith.constant 0 : i32
    %c0_i32_0 = arith.constant 0 : i32
    %c0_i32_1 = arith.constant 0 : i32
    return %arg0, %1, %c0_i32, %c0_i32_0 : i32, i32, i32, i32
  }
  func.func @transform_2(%arg0: i32, %arg1: i32) -> (i32, i32, i32) {
    %c0_i32 = arith.constant 0 : i32
    %c0_i32_0 = arith.constant 0 : i32
    %c0_i32_1 = arith.constant 0 : i32
    %c0_i32_2 = arith.constant 0 : i32
    return %c0_i32, %c0_i32_0, %c0_i32_1 : i32, i32, i32
  }
  func.func @transform_3(%arg0: i32, %arg1: i32) -> (i32, i32, i32, i32) {
    %c0_i32 = arith.constant 0 : i32
    %c0_i32_0 = arith.constant 0 : i32
    %c0_i32_1 = arith.constant 0 : i32
    return %arg0, %arg1, %c0_i32, %c0_i32_0 : i32, i32, i32, i32
  }
}

</mosaic_0001>

<bundles_post_ra>
// kernel: pan_forward.3
= control target key start
LH: loop header
LB: loop body
LE: loop exit
PB: predicated region body
PF: predicated region fallthrough
CT: control target
= control target key end

     0   :  { %s2493_s0 = inlined_call_operand.hbm [shape: f32[2,8,2,16,256], index: 0, kind: input, shape index: {}]   ;;  %s2494_s1 = inlined_call_operand.hbm [shape: f32[2,8,8,256], index: 1, kind: input, shape index: {}]   ;;  %s2495_s2 = inlined_call_operand.hbm [shape: f32[256,128], index: 2, kind: input, shape index: {}]   ;;  %s2496_s3 = inlined_call_operand.hbm [shape: f32[256,128], index: 3, kind: input, shape index: {}]   ;;  %s2497_s4 = inlined_call_operand.vmem [shape: f32[2,8,2,16,128], index: 4, kind: output, shape index: {}]  }
   0x1   :  { %2503 = sst [smem:[#allocation13_spill]] %s2493_s0 }
   0x2   :  { %9 = vsyncpa [#allocation3], 0 }
   0x3   :  { %11 = vsyncpa [#allocation3 + $0x1], 0 }
   0x4   :  { %12 = vsyncpa [#allocation5], 0 }
   0x5   :  { %14 = vsyncpa [#allocation5 + $0x1], 0 }
   0x6   :  { %15 = vsyncpa [#allocation8], 0  ;;  %s1959_s15 = smov 0   ;;  %s1961_s16 = smov 0  }
   0x7   :  { %s1963_s17 = smov 0   ;;  %s1965_s18 = smov 0  }
   0x8   :  { %s1967_s19 = smov 0   ;;  %s1969_s20 = smov 0  }
   0x9 LB: > { %s2502_s21 = sadd.s32 4294967295, %s1923_s20   ;;  %p55_p0 = scmp.ne.s32.totalorder %s1907_s16, %s1903_s15  ;;  %s1923_s20 = sphi %s1969_s20, %s21_s20   ;;  %s1919_s19 = sphi %s1967_s19, %s2518_s19   ;;  %s1915_s18 = sphi %s1965_s18, %s2517_s18   ;;  %s1911_s17 = sphi %s1963_s17, %s2516_s17   ;;  %s1907_s16 = sphi %s1961_s16, %s2515_s16   ;;  %s1903_s15 = sphi %s1959_s15, %s2514_s15  }
   0xa   : > { %p1991_p1 = scmp.eq.s32.totalorder %s2502_s21, 0  ;;  %p1261_p2 = scmp.ge.s32.totalorder %s1923_s20, 1 }
   0xb   : > { %p164_p3 = scmp.lt.s32.totalorder %s1923_s20, 3  ;;  %s1925_s25 = smov [#allocation6]  }
   0xc   : > { %s2504_s22 = scalar_select %p1991_p1, 1, 0 }
   0xd   : > { %p1999_p4 = por %p1991_p1, %p55_p0  ;;  %p2003_p5 = pnand %p1261_p2, %p164_p3 }
   0xe   : > { %s176_s26 = sshll.u32 %s1925_s25, 4  ;;  %s1926_s28 = smov [#allocation7]   ;;  %s177_s26 = int_to_ptr.vmem [resolvable:$true] %s176_s26 }
   0xf   : > { %s2505_s23 = scalar_select %p1999_p4, 1, 0 }
  0x10   : > { %s2506_s24 = scalar_select %p2003_p5, 1, 0 }
  0x11   : > { %p1671_p6 = pneg %p2003_p5  ;;  %s189_s29 = sshll.u32 %s1926_s28, 4  ;;  %s2015_s29 = int_to_ptr.vmem [resolvable:$true] %s189_s29 }
  0x12   : > { %s1745_s6 = scalar_lea.hbm %s2495_s2, 4096 }
  0x13   : > { %p2011_p7 = pnand %p1671_p6, %p1991_p1  ;;  %p1746_p8 = scmp.ne.s32.totalorder %s2495_s2, %s1745_s6 }
  0x14   : > { %p1752_p12 = scmp.lt.u32.totalorder %s1745_s6, %s2495_s2 }
  0x15   : > { %p1747_p9 = pneg %p2011_p7 }
  0x17   : > { %p1748_p10 = pnand %p1747_p9, %p1746_p8 }
  0x19   : > { %p1749_p11 = pneg %p1748_p10 }
  0x1b   : > { %p1754_p13 = pnand %p1752_p12, %p1749_p11 }
  0x1d   : > { %1757 = shalt.err (!%p1754_p13)
}
  0x1e   : > { %s1758_s11 = scalar_lea.vmem %s177_s26, 4096  ;;  %p1766_p6 = scmp.lt.s32.totalorder %s177_s26, %s177_s26 }
  0x1f   : > { %p1759_p0 = scmp.ne.s32.totalorder %s177_s26, %s1758_s11  ;;  %p1767_p1 = scmp.lt.s32.totalorder %s1758_s11, %s1758_s11 }
  0x21   : > { %p1761_p2 = pnand %p1759_p0, %p1747_p9  ;;  %p1768_p4 = por %p1767_p1, %p1766_p6 }
  0x23   : > { %p1762_p3 = pneg %p1761_p2 }
  0x25   : > { %p1769_p5 = pnand %p1768_p4, %p1762_p3 }
  0x27   : > { %1772 = shalt.err (!%p1769_p5)
}
  0x28   : > { %s1927_s12 = smov 128   ;;  %s1928_s13 = smov 8  }
  0x29   : > { %1674 = dma.hbm_to_vmem [thread:$0]  (!%p2011_p7), %s2495_s2, 4096, %s177_s26, [#allocation5], %s1927_s12, %s1927_s12, %s1928_s13  }
  0x2a   : > { %s1773_s30 = scalar_lea.hbm %s2496_s3, 4096 }
  0x2b   : > { %p1774_p8 = scmp.ne.s32.totalorder %s2496_s3, %s1773_s30  ;;  %p1780_p5 = scmp.lt.u32.totalorder %s1773_s30, %s2496_s3 }
  0x2d   : > { %p1776_p1 = pnand %p1774_p8, %p1747_p9 }
  0x2f   : > { %p1777_p4 = pneg %p1776_p1 }
  0x31   : > { %p1782_p10 = pnand %p1780_p5, %p1777_p4 }
  0x33   : > { %1785 = shalt.err (!%p1782_p10)
}
  0x34   : > { %s1786_s26 = scalar_lea.vmem %s2015_s29, 4096  ;;  %p1794_p0 = scmp.lt.s32.totalorder %s2015_s29, %s2015_s29 }
  0x35   : > { %p1787_p11 = scmp.ne.s32.totalorder %s2015_s29, %s1786_s26  ;;  %p1795_p2 = scmp.lt.s32.totalorder %s1786_s26, %s1786_s26 }
  0x37   : > { %p1789_p12 = pnand %p1787_p11, %p1747_p9  ;;  %p1796_p3 = por %p1795_p2, %p1794_p0 }
  0x39   : > { %p1790_p13 = pneg %p1789_p12 }
  0x3b   : > { %p1797_p6 = pnand %p1796_p3, %p1790_p13 }
  0x3d   : > { %1800 = shalt.err (!%p1797_p6)
}
  0x3e   : > { %1677 = dma.hbm_to_vmem [thread:$0]  (!%p2011_p7), %s2496_s3, 4096, %s2015_s29, [#allocation8], %s1927_s12, %s1927_s12, %s1928_s13  }
  0x3f   : > { %s33_s11 = sadd.s32 1, %s1919_s19  ;;  %s42_s14 = sadd.s32 1, %s1911_s17 }
  0x40   : > { %p35_p9 = scmp.ge.s32.totalorder %s33_s11, 2  ;;  %p49_p8 = scmp.ne.s32.totalorder %s1911_s17, %s1907_s16 }
  0x41   : > { %p50_p1 = scmp.eq.s32.totalorder %s1923_s20, 0  ;;  %p1687_p4 = scmp.lt.s32.totalorder %s1923_s20, 2 }
  0x42   : > { %s2520_s11 = smov (%p35_p9, %s33_s11), 0  ;;  %s2073_s27 = sand.u32 1, %s1911_s17  }
  0x43   : > { %p51_p5 = por %p50_p1, %p49_p8  ;;  %s37_s15 = ssub.s32 %s1919_s19, %s2520_s11 }
  0x44   : > { %p40_p10 = scmp.eq.s32.totalorder %s37_s15, 0  ;;  %s1265_s25 = sshll.u32 %s2073_s27, 9 }
  0x45   : > { %s1328_s29 = sshll.u32 %s1919_s19, 13  ;;  %s2508_s0 = sld [smem:[#allocation13_spill]] }
  0x46   : > { %s2080_s12 = scalar_select %p40_p10, %s1911_s17, %s42_s14  }
  0x47   : > { %s207_s5 = scalar_lea.vmem [#allocation2], %s1265_s25  ;;  %p2091_p7 = pnand %p1687_p4, %p51_p5 }
  0x48   : > { %s217_s6 = sshll.u32 %s207_s5, 4  ;;  %s227_s8 = sand.u32 1, %s1923_s20   ;;  %s2087_s6 = int_to_ptr.vmem [resolvable:$true] %s217_s6 }
  0x49   : > { %s204_s26 = scalar_lea.sflag [#allocation3], %s2073_s27  ;;  %p1803_p12 = pneg %p2091_p7 }
  0x4b   : > { %s2085_s30 = scalar_lea.hbm %s2508_s0, %s1328_s29  ;;  %s1806_s15 = scalar_lea.hbm %s2508_s0, 16384 }
  0x4c   : > { %s1801_s9 = scalar_lea.hbm %s2085_s30, 8192  ;;  %p1807_p2 = scmp.lt.u32.totalorder %s2085_s30, %s2508_s0 }
  0x4d   : > { %p1802_p11 = scmp.ne.s32.totalorder %s2085_s30, %s1801_s9  ;;  %p1808_p3 = scmp.lt.u32.totalorder %s1806_s15, %s1801_s9 }
  0x4e   : > { %p1810_p9 = scmp.lt.u32.totalorder %s1801_s9, %s2085_s30 }
  0x4f   : > { %p1804_p13 = pnand %p1803_p12, %p1802_p11  ;;  %p1809_p6 = por %p1808_p3, %p1807_p2 }
  0x51   : > { %p1805_p0 = pneg %p1804_p13  ;;  %p1811_p8 = por %p1810_p9, %p1809_p6 }
  0x53   : > { %p1812_p1 = pnand %p1811_p8, %p1805_p0 }
  0x55   : > { %1815 = shalt.err (!%p1812_p1)
}
  0x56   : > { %s1816_s13 = scalar_lea.vmem %s2087_s6, 8192  ;;  %s1929_s28 = smov [#allocation2]  }
  0x57   : > { %p1817_p4 = scmp.ne.s32.totalorder %s2087_s6, %s1816_s13  ;;  %s1821_s5 = sshll.u32 %s1929_s28, 4  ;;  %s1822_s5 = int_to_ptr.vmem [resolvable:$false] %s1821_s5 }
  0x58   : > { %s1823_s10 = scalar_lea.vmem %s1822_s5, 16384  ;;  %p1824_p11 = scmp.lt.s32.totalorder %s2087_s6, %s1822_s5 }
  0x59   : > { %p1819_p5 = pnand %p1817_p4, %p1803_p12  ;;  %p1825_p13 = scmp.lt.s32.totalorder %s1823_s10, %s1816_s13 }
  0x5b   : > { %p1820_p10 = pneg %p1819_p5  ;;  %p1826_p2 = por %p1825_p13, %p1824_p11 }
  0x5d   : > { %p1827_p3 = pnand %p1826_p2, %p1820_p10 }
  0x5f   : > { %1830 = shalt.err (!%p1827_p3)
}
  0x60   : > { %s1930_s9 = smov 256   ;;  %s1931_s14 = smov 16  }
  0x61   : > { %1681 = dma.hbm_to_vmem [thread:$0]  (!%p2091_p7), %s2085_s30, 8192, %s2087_s6, %s204_s26, %s1930_s9, %s1930_s9, %s1931_s14  }
  0x62   : > { %s1268_s15 = sshll.u32 %s2073_s27, 7  ;;  %s1329_s25 = sshll.u32 %s1919_s19, 11 }
  0x63   : > { %s2132_s28 = scalar_lea.hbm %s2494_s1, %s1329_s25  ;;  %s231_s5 = scalar_lea.vmem [#allocation4], %s1268_s15 }
  0x64   : > { %s241_s10 = sshll.u32 %s231_s5, 4  ;;  %s2138_s21 = scalar_lea.sflag [#allocation5], %s227_s8  ;;  %s2134_s10 = int_to_ptr.vmem [resolvable:$true] %s241_s10 }
  0x65   : > { %s1831_s0 = scalar_lea.hbm %s2132_s28, 2048  ;;  %s1836_s6 = scalar_lea.hbm %s2494_s1, 4096 }
  0x66   : > { %p1832_p0 = scmp.ne.s32.totalorder %s2132_s28, %s1831_s0  ;;  %p1837_p8 = scmp.lt.u32.totalorder %s2132_s28, %s2494_s1 }
  0x67   : > { %p1838_p1 = scmp.lt.u32.totalorder %s1836_s6, %s1831_s0  ;;  %p1840_p5 = scmp.lt.u32.totalorder %s1831_s0, %s2132_s28 }
  0x68   : > { %p1834_p6 = pnand %p1832_p0, %p1803_p12 }
  0x69   : > { %p1839_p4 = por %p1838_p1, %p1837_p8 }
  0x6a   : > { %p1835_p9 = pneg %p1834_p6 }
  0x6b   : > { %p1841_p10 = por %p1840_p5, %p1839_p4 }
  0x6d   : > { %p1842_p11 = pnand %p1841_p10, %p1835_p9 }
  0x6f   : > { %1845 = shalt.err (!%p1842_p11)
}
  0x70   : > { %s1846_s8 = scalar_lea.vmem %s2134_s10, 2048  ;;  %s1932_s15 = smov [#allocation4]  }
  0x71   : > { %p1847_p13 = scmp.ne.s32.totalorder %s2134_s10, %s1846_s8  ;;  %s1851_s29 = sshll.u32 %s1932_s15, 4  ;;  %s1852_s29 = int_to_ptr.vmem [resolvable:$false] %s1851_s29 }
  0x72   : > { %s1853_s13 = scalar_lea.vmem %s1852_s29, 4096  ;;  %p1854_p0 = scmp.lt.s32.totalorder %s2134_s10, %s1852_s29 }
  0x73   : > { %p1849_p2 = pnand %p1847_p13, %p1803_p12  ;;  %p1855_p6 = scmp.lt.s32.totalorder %s1853_s13, %s1846_s8 }
  0x75   : > { %p1850_p3 = pneg %p1849_p2  ;;  %p1856_p8 = por %p1855_p6, %p1854_p0 }
  0x77   : > { %p1857_p1 = pnand %p1856_p8, %p1850_p3 }
  0x79   : > { %1860 = shalt.err (!%p1857_p1)
}
  0x7a   : > { %1684 = dma.hbm_to_vmem [thread:$0]  (!%p2091_p7), %s2132_s28, 2048, %s2134_s10, %s2138_s21, %s1930_s9, %s1930_s9, %s1931_s14  }
  0x7b   : > { %p2510_p12 = scmp.ne.s32.totalorder %s2506_s24, 0 }
  0x7c   : > { %s255_s0 = sand.u32 (!%p2510_p12), 1, %s1907_s16   ;;  %p2511_p9 = scmp.ne.s32.totalorder (!%p2510_p12), %s2505_s23, 0 }
  0x7d   : > { %253 = sbr.rel (%p2510_p12) target bundleno = 473 (0x1d9), region = 36  ;;  %s1272_s5 = sshll.u32 (!%p2510_p12), %s255_s0, 9 }
  0x7e   : > { %s256_s27 = scalar_lea.sflag (!%p2510_p12), [#allocation3], %s255_s0  ;;  %s2170_s30 = scalar_lea.vmem (!%p2510_p12), [#allocation2], %s1272_s5 }
  0x84   : > { %1886 = dma.done.wait (%p2511_p9), %s256_s27, 8192  }
  0x85   : > { %1888 = vsyncadd (%p2511_p9), %s256_s27, 4294959104  ;;  %s2512_s7 = sadd.s32 4294967295, %s1923_s20   ;;  %s1273_s21 = sshll.u32 %s255_s0, 7 }
  0x86   : > { %s264_s6 = sand.u32 1, %s2512_s7   ;;  %s2178_s24 = scalar_lea.vmem [#allocation4], %s1273_s21 }
  0x87   : > { %s265_s9 = scalar_lea.sflag [#allocation5], %s264_s6 }
  0x88   : > { %1890 = dma.done.wait (%p2511_p9), %s265_s9, 2048  }
  0x89   : > { %1892 = vsyncadd (%p2511_p9), %s265_s9, 4294965248  ;;  %p2513_p7 = scmp.ne.s32.totalorder %s2504_s22, 0 }
  0x8b   : > { %1894 = dma.done.wait (%p2513_p7), [#allocation5], 4096  }
  0x8c   : > { %1896 = vsyncadd (%p2513_p7), [#allocation5], 4294963200 }
  0x8d   : > { %1898 = dma.done.wait (%p2513_p7), [#allocation8], 4096  }
  0x8e   : > { %1900 = vsyncadd (%p2513_p7), [#allocation8], 4294963200  ;;  %v356_v0 = vld [vmem:[#allocation7 + $0x80] sm:$0xff]  ;;  %v357_v1 = vld [vmem:[#allocation7 + $0x88] sm:$0xff]  ;;  %p314_p4 = scmp.lt.s32.totalorder %s1915_s18, 1 }
  0x8f   : > { %v677_v2 = vld [vmem:[#allocation6 + $0x80] sm:$0xff]  ;;  %v1547_v3 = vpack.c.bf16 %v357_v1, %v356_v0  ;;  %v678_v4 = vld [vmem:[#allocation6 + $0x88] sm:$0xff]  ;;  %v358_v11 = vld [vmem:[#allocation7 + $0x90] sm:$0xff] }
  0x90   : > { %v340_v5 = vld [vmem:[#allocation7] sm:$0xff]  ;;  %v341_v6 = vld [vmem:[#allocation7 + $0x8] sm:$0xff]  ;;  %v2192_v7 = vpack.c.bf16 %v678_v4, %v677_v2  ;;  %v359_v13 = vld [vmem:[#allocation7 + $0x98] sm:$0xff]  ;;  %s2522_s18 = smov (!%p314_p4, %s1915_s18), 1 }
  0x91   : > { %v1549_v8 = vpack.c.bf16 %v341_v6, %v340_v5  ;;  %v661_v9 = vld [vmem:[#allocation6] sm:$0xff]  ;;  %v662_v10 = vld [vmem:[#allocation6 + $0x8] sm:$0xff]  ;;  %1548 = vmatprep.subr.bf16.mxu0 %v1547_v3  ;;  %v679_v14 = vld [vmem:[#allocation6 + $0x90] sm:$0xff]  ;;  %v1551_v16 = vpack.c.bf16 %v359_v13, %v358_v11  ;;  %s1330_s22 = sshll.u32 %s2522_s18, 8 }
  0x92   : > { %v2194_v12 = vpack.c.bf16 %v662_v10, %v661_v9  ;;  %v680_v15 = vld [vmem:[#allocation6 + $0x98] sm:$0xff]  ;;  %1580 = vmatprep.subr.bf16.mxu1 %v2192_v7  ;;  %v342_v18 = vld [vmem:[#allocation7 + $0x10] sm:$0xff]  ;;  %v360_v23 = vld [vmem:[#allocation7 + $0xa0] sm:$0xff]  ;;  %s2365_s28 = scalar_lea.vmem %s2497_s4, %s1330_s22 }
  0x93   : > { %1550 = vmatpush3.bf16.msra.mxu0 %v1549_v8  ;;  %v2197_v17 = vpack.c.bf16 %v680_v15, %v679_v14  ;;  %v343_v19 = vld [vmem:[#allocation7 + $0x18] sm:$0xff]  ;;  %v663_v20 = vld [vmem:[#allocation6 + $0x10] sm:$0xff]  ;;  %v361_v24 = vld [vmem:[#allocation7 + $0xa8] sm:$0xff] }
  0x94   : > { %1582 = vmatpush3.bf16.msra.mxu1 %v2194_v12  ;;  %v1553_v21 = vpack.c.bf16 %v343_v19, %v342_v18  ;;  %v664_v22 = vld [vmem:[#allocation6 + $0x18] sm:$0xff]  ;;  %1552 = vmatprep.subr.bf16.mxu0 %v1551_v16  ;;  %v1555_v26 = vpack.c.bf16 %v361_v24, %v360_v23  ;;  %v681_v27 = vld [vmem:[#allocation6 + $0xa0] sm:$0xff]  ;;  %v682_v28 = vld [vmem:[#allocation6 + $0xa8] sm:$0xff] }
  0x95   : > { %1584 = vmatprep.subr.bf16.mxu1 %v2197_v17  ;;  %v2201_v25 = vpack.c.bf16 %v664_v22, %v663_v20  ;;  %v344_v29 = vld [vmem:[#allocation7 + $0x20] sm:$0xff]  ;;  %v2203_v30 = vpack.c.bf16 %v682_v28, %v681_v27  ;;  %v345_v31 = vld [vmem:[#allocation7 + $0x28] sm:$0xff]  ;;  %v362_v35 = vld [vmem:[#allocation7 + $0xb0] sm:$0xff] }
  0x96   : > { %v665_v32 = vld [vmem:[#allocation6 + $0x20] sm:$0xff]  ;;  %v666_v33 = vld [vmem:[#allocation6 + $0x28] sm:$0xff]  ;;  %v1557_v34 = vpack.c.bf16 %v345_v31, %v344_v29  ;;  %v363_v36 = vld [vmem:[#allocation7 + $0xb8] sm:$0xff] }
  0x97   : > { %1554 = vmatpush3.bf16.msra.mxu0 %v1553_v21  ;;  %v683_v37 = vld [vmem:[#allocation6 + $0xb0] sm:$0xff]  ;;  %v2206_v38 = vpack.c.bf16 %v666_v33, %v665_v32  ;;  %v1559_v39 = vpack.c.bf16 %v363_v36, %v362_v35  ;;  %v684_v40 = vld [vmem:[#allocation6 + $0xb8] sm:$0xff]  ;;  %v364_v46 = vld [vmem:[#allocation7 + $0xc0] sm:$0xff] }
  0x98   : > { %1586 = vmatpush3.bf16.msra.mxu1 %v2201_v25  ;;  %1556 = vmatprep.subr.bf16.mxu0 %v1555_v26  ;;  %v346_v41 = vld [vmem:[#allocation7 + $0x30] sm:$0xff]  ;;  %v347_v42 = vld [vmem:[#allocation7 + $0x38] sm:$0xff]  ;;  %v2209_v43 = vpack.c.bf16 %v684_v40, %v683_v37  ;;  %v365_v47 = vld [vmem:[#allocation7 + $0xc8] sm:$0xff] }
  0x99   : > { %1588 = vmatprep.subr.bf16.mxu1 %v2203_v30  ;;  %v667_v44 = vld [vmem:[#allocation6 + $0x30] sm:$0xff]  ;;  %v668_v45 = vld [vmem:[#allocation6 + $0x38] sm:$0xff]  ;;  %v685_v48 = vld [vmem:[#allocation6 + $0xc0] sm:$0xff]  ;;  %v1561_v50 = vpack.c.bf16 %v347_v42, %v346_v41  ;;  %v1563_v52 = vpack.c.bf16 %v365_v47, %v364_v46 }
  0x9a   : > { %v686_v49 = vld [vmem:[#allocation6 + $0xc8] sm:$0xff]  ;;  %v2212_v51 = vpack.c.bf16 %v668_v45, %v667_v44  ;;  %v348_v53 = vld [vmem:[#allocation7 + $0x40] sm:$0xff]  ;;  %v366_v58 = vld [vmem:[#allocation7 + $0xd0] sm:$0xff] }
  0x9b   : > { %1558 = vmatpush3.bf16.msra.mxu0 %v1557_v34  ;;  %v349_v54 = vld [vmem:[#allocation7 + $0x48] sm:$0xff]  ;;  %v669_v55 = vld [vmem:[#allocation6 + $0x40] sm:$0xff]  ;;  %v2215_v56 = vpack.c.bf16 %v686_v49, %v685_v48  ;;  %v367_v59 = vld [vmem:[#allocation7 + $0xd8] sm:$0xff] }
  0x9c   : > { %1590 = vmatpush3.bf16.msra.mxu1 %v2206_v38  ;;  %1560 = vmatprep.subr.bf16.mxu0 %v1559_v39  ;;  %v670_v57 = vld [vmem:[#allocation6 + $0x48] sm:$0xff]  ;;  %v687_v60 = vld [vmem:[#allocation6 + $0xd0] sm:$0xff]  ;;  %v688_v61 = vld [vmem:[#allocation6 + $0xd8] sm:$0xff]  ;;  %v1565_v62 = vpack.c.bf16 %v349_v54, %v348_v53  ;;  %v1567_v0 = vpack.c.bf16 %v367_v59, %v366_v58 }
  0x9d   : > { %1592 = vmatprep.subr.bf16.mxu1 %v2209_v43  ;;  %v2218_v63 = vpack.c.bf16 %v670_v57, %v669_v55  ;;  %v350_v1 = vld [vmem:[#allocation7 + $0x50] sm:$0xff]  ;;  %v351_v2 = vld [vmem:[#allocation7 + $0x58] sm:$0xff]  ;;  %v2221_v4 = vpack.c.bf16 %v688_v61, %v687_v60  ;;  %v368_v6 = vld [vmem:[#allocation7 + $0xe0] sm:$0xff] }
  0x9e   : > { %v671_v3 = vld [vmem:[#allocation6 + $0x50] sm:$0xff]  ;;  %v672_v5 = vld [vmem:[#allocation6 + $0x58] sm:$0xff]  ;;  %v369_v8 = vld [vmem:[#allocation7 + $0xe8] sm:$0xff]  ;;  %v1569_v11 = vpack.c.bf16 %v351_v2, %v350_v1 }
  0x9f   : > { %1562 = vmatpush3.bf16.msra.mxu0 %v1561_v50  ;;  %v689_v9 = vld [vmem:[#allocation6 + $0xe0] sm:$0xff]  ;;  %v690_v10 = vld [vmem:[#allocation6 + $0xe8] sm:$0xff]  ;;  %v2224_v15 = vpack.c.bf16 %v672_v5, %v671_v3  ;;  %v1571_v16 = vpack.c.bf16 %v369_v8, %v368_v6  ;;  %v370_v23 = vld [vmem:[#allocation7 + $0xf0] sm:$0xff] }
  0xa0   : > { %1594 = vmatpush3.bf16.msra.mxu1 %v2212_v51  ;;  %1564 = vmatprep.subr.bf16.mxu0 %v1563_v52  ;;  %v352_v13 = vld [vmem:[#allocation7 + $0x60] sm:$0xff]  ;;  %v353_v14 = vld [vmem:[#allocation7 + $0x68] sm:$0xff]  ;;  %v2229_v21 = vpack.c.bf16 %v690_v10, %v689_v9  ;;  %v371_v24 = vld [vmem:[#allocation7 + $0xf8] sm:$0xff] }
  0xa1   : > { %1596 = vmatprep.subr.bf16.mxu1 %v2215_v56  ;;  %v673_v18 = vld [vmem:[#allocation6 + $0x60] sm:$0xff]  ;;  %v325_v19 = vld [vmem:[%s2178_s24 + $0x8] sm:$0xff]  ;;  %v691_v26 = vld [vmem:[#allocation6 + $0xf0] sm:$0xff]  ;;  %v1573_v28 = vpack.c.bf16 %v353_v14, %v352_v13  ;;  %v1575_v31 = vpack.c.bf16 %v371_v24, %v370_v23 }
  0xa2   : > { %v630_v20 = vld [vmem:[%s2170_s30 + $0x8] sm:$0xff]  ;;  %436 = vmatprep.mubr.f32.mxu0 %v325_v19  ;;  %v692_v27 = vld [vmem:[#allocation6 + $0xf8] sm:$0xff]  ;;  %v354_v32 = vld [vmem:[#allocation7 + $0x70] sm:$0xff] }
  0xa3   : > { %1566 = vmatpush3.bf16.msra.mxu0 %v1565_v62  ;;  %v674_v22 = vld [vmem:[#allocation6 + $0x68] sm:$0xff]  ;;  %757 = vmatprep.mubr.f32.mxu1 %v630_v20  ;;  %v355_v33 = vld [vmem:[#allocation7 + $0x78] sm:$0xff]  ;;  %v2235_v34 = vpack.c.bf16 %v692_v27, %v691_v26  ;;  %v675_v35 = vld [vmem:[#allocation6 + $0x70] sm:$0xff] }
  0xa4   : > { %1598 = vmatpush3.bf16.msra.mxu1 %v2218_v63  ;;  %1568 = vmatprep.subr.bf16.mxu0 %v1567_v0  ;;  %v2232_v29 = vpack.c.bf16 %v674_v22, %v673_v18  ;;  %v676_v36 = vld [vmem:[#allocation6 + $0x78] sm:$0xff]  ;;  %v1577_v37 = vpack.c.bf16 %v355_v33, %v354_v32  ;;  %v324_v40 = vld [vmem:[%s2178_s24] sm:$0xff]  ;;  %v326_v45 = vld [vmem:[%s2178_s24 + $0x10] sm:$0xff] }
  0xa5   : > { %1600 = vmatprep.subr.bf16.mxu1 %v2221_v4  ;;  %v2238_v39 = vpack.c.bf16 %v676_v36, %v675_v35  ;;  %v629_v41 = vld [vmem:[%s2170_s30] sm:$0xff]  ;;  %v327_v42 = vld [vmem:[%s2178_s24 + $0x18] sm:$0xff]  ;;  %v631_v46 = vld [vmem:[%s2170_s30 + $0x10] sm:$0xff] }
  0xa6   : > { %v632_v44 = vld [vmem:[%s2170_s30 + $0x18] sm:$0xff]  ;;  %v329_v47 = vld [vmem:[%s2178_s24 + $0x28] sm:$0xff]  ;;  %v328_v48 = vld [vmem:[%s2178_s24 + $0x20] sm:$0xff] }
  0xa7   : > { %1570 = vmatpush3.bf16.msra.mxu0 %v1569_v11  ;;  %v331_v49 = vld [vmem:[%s2178_s24 + $0x38] sm:$0xff]  ;;  %v635_v52 = vld [vmem:[%s2170_s30 + $0x50] sm:$0xff]  ;;  %v333_v53 = vld [vmem:[%s2178_s24 + $0x48] sm:$0xff] }
  0xa8   : > { %1602 = vmatpush3.bf16.msra.mxu1 %v2224_v15  ;;  %1572 = vmatprep.subr.bf16.mxu0 %v1571_v16  ;;  %v636_v50 = vld [vmem:[%s2170_s30 + $0x58] sm:$0xff]  ;;  %v637_v54 = vld [vmem:[%s2170_s30 + $0x80] sm:$0xff]  ;;  %v337_v58 = vld [vmem:[%s2178_s24 + $0x68] sm:$0xff] }
  0xa9   : > { %1604 = vmatprep.subr.bf16.mxu1 %v2229_v21  ;;  %v335_v55 = vld [vmem:[%s2178_s24 + $0x58] sm:$0xff]  ;;  %v642_v59 = vld [vmem:[%s2170_s30 + $0xc8] sm:$0xff]  ;;  %v338_v62 = vld [vmem:[%s2178_s24 + $0x70] sm:$0xff] }
  0xaa   : > { %v640_v57 = vld [vmem:[%s2170_s30 + $0x98] sm:$0xff]  ;;  %v646_v0 = vld [vmem:[%s2170_s30 + $0x108] sm:$0xff]  ;;  %v1278_v2 = vld [vmem:[%s2170_s30 + $0x20] sm:$0xff] }
  0xab   : > { %1574 = vmatpush3.bf16.msra.mxu0 %v1573_v28  ;;  %v339_v60 = vld [vmem:[%s2178_s24 + $0x78] sm:$0xff]  ;;  %v1279_v1 = vld [vmem:[%s2170_s30 + $0x28] sm:$0xff]  ;;  %v645_v3 = vld [vmem:[%s2170_s30 + $0x100] sm:$0xff] }
  0xac   : > { %1606 = vmatpush3.bf16.msra.mxu1 %v2232_v29  ;;  %1576 = vmatprep.subr.bf16.mxu0 %v1575_v31  ;;  %v644_v61 = vld [vmem:[%s2170_s30 + $0xd8] sm:$0xff]  ;;  %v1280_v6 = vld [vmem:[%s2170_s30 + $0x30] sm:$0xff]  ;;  %v1283_v9 = vld [vmem:[%s2170_s30 + $0x68] sm:$0xff] }
  0xad   : > { %1608 = vmatprep.subr.bf16.mxu1 %v2235_v34  ;;  %v648_v5 = vld [vmem:[%s2170_s30 + $0x118] sm:$0xff]  ;;  %v647_v8 = vld [vmem:[%s2170_s30 + $0x110] sm:$0xff]  ;;  %v650_v10 = vld [vmem:[%s2170_s30 + $0x148] sm:$0xff] }
  0xae   : > { %v1282_v11 = vld [vmem:[%s2170_s30 + $0x60] sm:$0xff]  ;;  %v1285_v14 = vld [vmem:[%s2170_s30 + $0x78] sm:$0xff]  ;;  %v1284_v16 = vld [vmem:[%s2170_s30 + $0x70] sm:$0xff] }
  0xaf   : > { %1578 = vmatpush3.bf16.msra.mxu0 %v1577_v37  ;;  %v649_v13 = vld [vmem:[%s2170_s30 + $0x140] sm:$0xff]  ;;  %v651_v18 = vld [vmem:[%s2170_s30 + $0x150] sm:$0xff]  ;;  %v1287_v19 = vld [vmem:[%s2170_s30 + $0xa8] sm:$0xff] }
  0xb0   : > { %1610 = vmatpush3.bf16.msra.mxu1 %v2238_v39  ;;  %1612 = vmatprep.subr.bf16.mxu0 %v2192_v7  ;;  %v654_v20 = vld [vmem:[%s2170_s30 + $0x188] sm:$0xff]  ;;  %v653_v22 = vld [vmem:[%s2170_s30 + $0x180] sm:$0xff]  ;;  %v1289_v23 = vld [vmem:[%s2170_s30 + $0xb8] sm:$0xff] }
  0xb1   : > { %1643 = vmatprep.subr.bf16.mxu1 %v2192_v7  ;;  %v634_v7 = vld [vmem:[%s2170_s30 + $0x48] sm:$0xff]  ;;  %v656_v24 = vld [vmem:[%s2170_s30 + $0x198] sm:$0xff]  ;;  %v1288_v26 = vld [vmem:[%s2170_s30 + $0xb0] sm:$0xff] }
  0xb2   : > { %437 = vmatmul.mubr.f32.vlgmr.msra.gmra.mrb[0].mxu0 %v324_v40  ;;  %v655_v27 = vld [vmem:[%s2170_s30 + $0x190] sm:$0xff]  ;;  %v1291_v28 = vld [vmem:[%s2170_s30 + $0xe8] sm:$0xff]  ;;  %v1290_v31 = vld [vmem:[%s2170_s30 + $0xe0] sm:$0xff] }
  0xb3   : > { %758 = vmatmul.mubr.f32.vlgmr.msra.gmra.mrb[0].mxu1 %v629_v41  ;;  %1614 = vmatpush3.bf16.msra.mxu0 %v2194_v12  ;;  %v657_v32 = vld [vmem:[%s2170_s30 + $0x1c0] sm:$0xff]  ;;  %v1293_v33 = vld [vmem:[%s2170_s30 + $0xf8] sm:$0xff]  ;;  %v1292_v35 = vld [vmem:[%s2170_s30 + $0xf0] sm:$0xff] }
  0xb4   : > { %1651 = vmatpush3.bf16.msra.mxu1 %v2194_v12  ;;  %441 = vmatprep.mubr.f32.mxu0 %v327_v42  ;;  %v633_v12 = vld [vmem:[%s2170_s30 + $0x40] sm:$0xff]  ;;  %v659_v36 = vld [vmem:[%s2170_s30 + $0x1d0] sm:$0xff]  ;;  %v1295_v37 = vld [vmem:[%s2170_s30 + $0x128] sm:$0xff] }
  0xb5   : > { %762 = vmatprep.mubr.f32.mxu1 %v632_v44  ;;  %1616 = vmatprep.subr.bf16.mxu0 %v2197_v17  ;;  %v1294_v40 = vld [vmem:[%s2170_s30 + $0x120] sm:$0xff]  ;;  %v1297_v42 = vld [vmem:[%s2170_s30 + $0x138] sm:$0xff] }
  0xb6   : > { %442 = vmatmul.mubr.f32.gmra.mrb[2].mxu0 %v326_v45  ;;  %1644 = vmatprep.subr.bf16.mxu1 %v2197_v17  ;;  %v330_v17 = vld [vmem:[%s2178_s24 + $0x30] sm:$0xff]  ;;  %v1302_v41 = vld [vmem:[%s2170_s30 + $0x1a0] sm:$0xff]  ;;  %v1305_v44 = vld [vmem:[%s2170_s30 + $0x1b8] sm:$0xff] }
  0xb7   : > { %763 = vmatmul.mubr.f32.gmra.mrb[2].mxu1 %v631_v46  ;;  %1618 = vmatpush3.bf16.msra.mxu0 %v2201_v25  ;;  %v1296_v45 = vld [vmem:[%s2170_s30 + $0x130] sm:$0xff] }
  0xb8   : > { %446 = vmatprep.mubr.f32.mxu0 %v329_v47  ;;  %767 = vmatprep.mubr.f32.mxu1 %v634_v7  ;;  %v1304_v46 = vld [vmem:[%s2170_s30 + $0x1b0] sm:$0xff]  ;;  %v1299_v47 = vld [vmem:[%s2170_s30 + $0x168] sm:$0xff] }
  0xb9   : > { %1620 = vmatprep.subr.bf16.mxu0 %v2203_v30  ;;  %1652 = vmatpush3.bf16.msra.mxu1 %v2201_v25  ;;  %v638_v25 = vld [vmem:[%s2170_s30 + $0x88] sm:$0xff] }
  0xba   : > { %447 = vmatmul.mubr.f32.gmra.mrb[4].mxu0 %v328_v48  ;;  %1645 = vmatprep.subr.bf16.mxu1 %v2203_v30  ;;  %v332_v30 = vld [vmem:[%s2178_s24 + $0x40] sm:$0xff]  ;;  %v1307_v7 = vld [vmem:[%s2170_s30 + $0x1e8] sm:$0xff] }
  0xbb   : > { %768 = vmatmul.mubr.f32.gmra.mrb[4].mxu1 %v633_v12  ;;  %1622 = vmatpush3.bf16.msra.mxu0 %v2206_v38  ;;  %v1298_v48 = vld [vmem:[%s2170_s30 + $0x160] sm:$0xff] }
  0xbc   : > { %451 = vmatprep.mubr.f32.mxu0 %v331_v49  ;;  %772 = vmatprep.mubr.f32.mxu1 %v636_v50  ;;  %v1306_v12 = vld [vmem:[%s2170_s30 + $0x1e0] sm:$0xff]  ;;  %v1301_v49 = vld [vmem:[%s2170_s30 + $0x178] sm:$0xff] }
  0xbd   : > { %1624 = vmatprep.subr.bf16.mxu0 %v2209_v43  ;;  %1653 = vmatpush3.bf16.msra.mxu1 %v2206_v38  ;;  %v334_v38 = vld [vmem:[%s2178_s24 + $0x50] sm:$0xff]  ;;  %v1309_v50 = vld [vmem:[%s2170_s30 + $0x1f8] sm:$0xff] }
  0xbe   : > { %452 = vmatmul.mubr.f32.gmra.mrb[6].mxu0 %v330_v17  ;;  %1646 = vmatprep.subr.bf16.mxu1 %v2209_v43  ;;  %v639_v43 = vld [vmem:[%s2170_s30 + $0x90] sm:$0xff] }
  0xbf   : > { %773 = vmatmul.mubr.f32.gmra.mrb[6].mxu1 %v635_v52  ;;  %1626 = vmatpush3.bf16.msra.mxu0 %v2212_v51  ;;  %v1300_v17 = vld [vmem:[%s2170_s30 + $0x170] sm:$0xff] }
  0xc0   : > { %456 = vmatprep.mubr.f32.mxu0 %v333_v53  ;;  %777 = vmatprep.mubr.f32.mxu1 %v638_v25  ;;  %v1308_v52 = vld [vmem:[%s2170_s30 + $0x1f0] sm:$0xff]  ;;  %v1933_v53 = vmov 1935823168  }
  0xc1   : > { %1628 = vmatprep.subr.bf16.mxu0 %v2215_v56  ;;  %1654 = vmatpush3.bf16.msra.mxu1 %v2212_v51  ;;  %v336_v51 = vld [vmem:[%s2178_s24 + $0x60] sm:$0xff]  ;;  %v518_v25 = vunpack.c.l.s4 %v1933_v53 }
  0xc2   : > { %457 = vmatmul.mubr.f32.gmra.mrb[8].mxu0 %v332_v30  ;;  %1647 = vmatprep.subr.bf16.mxu1 %v2215_v56  ;;  %v641_v56 = vld [vmem:[%s2170_s30 + $0xc0] sm:$0xff]  ;;  %v520_v30 = vlaneseq }
  0xc3   : > { %778 = vmatmul.mubr.f32.gmra.mrb[8].mxu1 %v637_v54  ;;  %1630 = vmatpush3.bf16.msra.mxu0 %v2218_v63  ;;  %v519_v54 = vunpack.c.0.s8 %v518_v25 }
  0xc4   : > { %461 = vmatprep.mubr.f32.mxu0 %v335_v55  ;;  %782 = vmatprep.mubr.f32.mxu1 %v640_v57  ;;  %v521_v55 = vshrl.u32 %v520_v30, 7 }
  0xc5   : > { %1632 = vmatprep.subr.bf16.mxu0 %v2221_v4  ;;  %1655 = vmatpush3.bf16.msra.mxu1 %v2218_v63  ;;  %v643_v63 = vld [vmem:[%s2170_s30 + $0xd0] sm:$0xff] }
  0xc6   : > { %462 = vmatmul.mubr.f32.gmra.mrb[10].mxu0 %v334_v38  ;;  %1648 = vmatprep.subr.bf16.mxu1 %v2221_v4  ;;  %v1281_v4 = vld [vmem:[%s2170_s30 + $0x38] sm:$0xff] }
  0xc7   : > { %783 = vmatmul.mubr.f32.gmra.mrb[10].mxu1 %v639_v43  ;;  %1634 = vmatpush3.bf16.msra.mxu0 %v2224_v15 }
  0xc8   : > { %466 = vmatprep.mubr.f32.mxu0 %v337_v58  ;;  %787 = vmatprep.mubr.f32.mxu1 %v642_v59  ;;  %v2354_v59 = vsub.s32 %v519_v54, %v521_v55 }
  0xc9   : > { %1636 = vmatprep.subr.bf16.mxu0 %v2229_v21  ;;  %1656 = vmatpush3.bf16.msra.mxu1 %v2224_v15  ;;  %v652_v15 = vld [vmem:[%s2170_s30 + $0x158] sm:$0xff] }
  0xca   : > { %467 = vmatmul.mubr.f32.gmra.mrb[12].mxu0 %v336_v51  ;;  %1649 = vmatprep.subr.bf16.mxu1 %v2229_v21  ;;  %v1286_v21 = vld [vmem:[%s2170_s30 + $0xa0] sm:$0xff] }
  0xcb   : > { %788 = vmatmul.mubr.f32.gmra.mrb[12].mxu1 %v641_v56  ;;  %1638 = vmatpush3.bf16.msra.mxu0 %v2232_v29 }
  0xcc   : > { %471 = vmatprep.mubr.f32.mxu0 %v339_v60  ;;  %792 = vmatprep.mubr.f32.mxu1 %v644_v61 }
  0xcd   : > { %1640 = vmatprep.subr.bf16.mxu0 %v2235_v34  ;;  %1657 = vmatpush3.bf16.msra.mxu1 %v2232_v29  ;;  %v658_v29 = vld [vmem:[%s2170_s30 + $0x1c8] sm:$0xff] }
  0xce   : > { %472 = vmatmul.mubr.f32.gmra.mrb[14].mxu0 %v338_v62  ;;  %1650 = vmatprep.subr.bf16.mxu1 %v2235_v34  ;;  %v660_v34 = vld [vmem:[%s2170_s30 + $0x1d8] sm:$0xff] }
  0xcf   : > { %793 = vmatmul.mubr.f32.gmra.mrb[14].mxu1 %v643_v63  ;;  %1642 = vmatpush3.bf16.msra.mxu0 %v2238_v39 }
  0xd0   : > { %797 = vmatprep.mubr.f32.mxu1 %v646_v0  ;;  %999 = vmatprep.mubr.f32.mxu0 %v1279_v1 }
  0xd1   : > { %1658 = vmatpush3.bf16.msra.mxu1 %v2238_v39  ;;  %v1303_v39 = vld [vmem:[%s2170_s30 + $0x1a8] sm:$0xff] }
  0xd2   : > { %1000 = vmatmul.mubr.f32.vlgmr.msra.gmra.mrb[16].mxu0 %v1278_v2 }
  0xd3   : > { %798 = vmatmul.mubr.f32.gmra.mrb[16].mxu1 %v645_v3  ;;  %1004 = vmatprep.mubr.f32.mxu0 %v1281_v4 }
  0xd4   : > { %802 = vmatprep.mubr.f32.mxu1 %v648_v5 }
  0xd6   : > { %1005 = vmatmul.mubr.f32.gmra.mrb[18].mxu0 %v1280_v6 }
  0xd7   : > { %803 = vmatmul.mubr.f32.gmra.mrb[18].mxu1 %v647_v8  ;;  %1009 = vmatprep.mubr.f32.mxu0 %v1283_v9 }
  0xd8   : > { %807 = vmatprep.mubr.f32.mxu1 %v650_v10 }
  0xda   : > { %1010 = vmatmul.mubr.f32.gmra.mrb[20].mxu0 %v1282_v11 }
  0xdb   : > { %808 = vmatmul.mubr.f32.gmra.mrb[20].mxu1 %v649_v13  ;;  %1014 = vmatprep.mubr.f32.mxu0 %v1285_v14 }
  0xdc   : > { %812 = vmatprep.mubr.f32.mxu1 %v652_v15 }
  0xde   : > { %1015 = vmatmul.mubr.f32.gmra.mrb[22].mxu0 %v1284_v16 }
  0xdf   : > { %813 = vmatmul.mubr.f32.gmra.mrb[22].mxu1 %v651_v18  ;;  %1019 = vmatprep.mubr.f32.mxu0 %v1287_v19 }
  0xe0   : > { %817 = vmatprep.mubr.f32.mxu1 %v654_v20 }
  0xe2   : > { %1020 = vmatmul.mubr.f32.gmra.mrb[24].mxu0 %v1286_v21 }
  0xe3   : > { %818 = vmatmul.mubr.f32.gmra.mrb[24].mxu1 %v653_v22  ;;  %1024 = vmatprep.mubr.f32.mxu0 %v1289_v23 }
  0xe4   : > { %822 = vmatprep.mubr.f32.mxu1 %v656_v24 }
  0xe6   : > { %1025 = vmatmul.mubr.f32.gmra.mrb[26].mxu0 %v1288_v26 }
  0xe7   : > { %823 = vmatmul.mubr.f32.gmra.mrb[26].mxu1 %v655_v27  ;;  %1029 = vmatprep.mubr.f32.mxu0 %v1291_v28 }
  0xe8   : > { %827 = vmatprep.mubr.f32.mxu1 %v658_v29 }
  0xea   : > { %1030 = vmatmul.mubr.f32.gmra.mrb[28].mxu0 %v1290_v31 }
  0xeb   : > { %828 = vmatmul.mubr.f32.gmra.mrb[28].mxu1 %v657_v32  ;;  %1034 = vmatprep.mubr.f32.mxu0 %v1293_v33 }
  0xec   : > { %832 = vmatprep.mubr.f32.mxu1 %v660_v34 }
  0xee   : > { %1035 = vmatmul.mubr.f32.gmra.mrb[30].mxu0 %v1292_v35 }
  0xef   : > { %833 = vmatmul.mubr.f32.gmra.mrb[30].mxu1 %v659_v36  ;;  %1039 = vmatprep.mubr.f32.mxu0 %v1295_v37 }
  0xf0   : > { %1059 = vmatprep.mubr.f32.mxu1 %v1303_v39 }
  0xf2   : > { %1040 = vmatmul.mubr.f32.gmra.mrb[32].mxu0 %v1294_v40 }
  0xf3   : > { %1060 = vmatmul.mubr.f32.vlgmr.msra.gmra.mrb[32].mxu1 %v1302_v41  ;;  %1044 = vmatprep.mubr.f32.mxu0 %v1297_v42 }
  0xf4   : > { %1064 = vmatprep.mubr.f32.mxu1 %v1305_v44 }
  0xf6   : > { %1045 = vmatmul.mubr.f32.gmra.mrb[34].mxu0 %v1296_v45 }
  0xf7   : > { %1065 = vmatmul.mubr.f32.gmra.mrb[34].mxu1 %v1304_v46  ;;  %1049 = vmatprep.mubr.f32.mxu0 %v1299_v47 }
  0xf8   : > { %1069 = vmatprep.mubr.f32.mxu1 %v1307_v7 }
  0xfa   : > { %1050 = vmatmul.mubr.f32.gmra.mrb[36].mxu0 %v1298_v48 }
  0xfb   : > { %1070 = vmatmul.mubr.f32.gmra.mrb[36].mxu1 %v1306_v12  ;;  %1054 = vmatprep.mubr.f32.mxu0 %v1301_v49 }
  0xfc   : > { %1074 = vmatprep.mubr.f32.mxu1 %v1309_v50 }
  0xfe   : > { %1055 = vmatmul.mubr.f32.gmra.mrb[38].mxu0 %v1300_v17 }
  0xff   : > { %1075 = vmatmul.mubr.f32.gmra.mrb[38].mxu1 %v1308_v52 }
 0x185   : > { %v1363_v57 = vpop.f32.mrb[0].mxu0 }
 0x186   : > { %v1419_v38 = vpop.f32.mrb[0].mxu1  ;;  %v1364_v43 = vpop.f32.mrb[1].mxu0 }
 0x187   : > { %v1365_v58 = vadd.f32 %v1364_v43, %v1363_v57  ;;  %v1420_v51 = vpop.f32.mrb[1].mxu1 }
 0x188   : > { %v1421_v56 = vadd.f32 %v1420_v51, %v1419_v38 }
 0x189   : > { %v485_v60 = vcombine.low %v1365_v58, %v1365_v58  ;;  %v486_v61 = vcombine.high %v1365_v58, %v1365_v58  ;;  %v1366_v62 = vpop.f32.mrb[2].mxu0 }
 0x18a   : > { %v1422_v63 = vpop.f32.mrb[2].mxu1  ;;  %v1367_v0 = vpop.f32.mrb[3].mxu0 }
 0x18b   : > { %v2357_v1 = vrot.slane %v485_v60, %v2354_v59  ;;  %v1368_v2 = vadd.f32 %v1367_v0, %v1366_v62  ;;  %v2360_v3 = vrot.slane %v486_v61, %v2354_v59  ;;  %v1423_v4 = vpop.f32.mrb[3].mxu1 }
 0x18c   : > { %v1424_v5 = vadd.f32 %v1423_v4, %v1422_v63 }
 0x18d   : > { %v838_v6 = vadd.f32 %v1421_v56, %v2357_v1  ;;  %v487_v8 = vcombine.low %v1368_v2, %v1368_v2  ;;  %v1369_v9 = vpop.f32.mrb[4].mxu0  ;;  %v488_v18 = vcombine.high %v1368_v2, %v1368_v2 }
 0x18e   : > { %v839_v10 = vadd.f32 %v1424_v5, %v2360_v3  ;;  %v1425_v11 = vpop.f32.mrb[4].mxu1  ;;  %v1370_v13 = vpop.f32.mrb[5].mxu0 }
 0x18f   : > { %854 = vst [vmem:[%s2365_s28] sm:$0xff] %v838_v6  ;;  %v1371_v14 = vadd.f32 %v1370_v13, %v1369_v9  ;;  %v2371_v15 = vrot.slane %v487_v8, %v2354_v59  ;;  %v1426_v16 = vpop.f32.mrb[5].mxu1  ;;  %v2377_v28 = vrot.slane %v488_v18, %v2354_v59 }
 0x190   : > { %855 = vst [vmem:[%s2365_s28 + $0x8] sm:$0xff] %v839_v10  ;;  %v1427_v19 = vadd.f32 %v1426_v16, %v1425_v11 }
 0x191   : > { %v1372_v20 = vpop.f32.mrb[6].mxu0  ;;  %v489_v27 = vcombine.low %v1371_v14, %v1371_v14  ;;  %v490_v37 = vcombine.high %v1371_v14, %v1371_v14 }
 0x192   : > { %v840_v21 = vadd.f32 %v1427_v19, %v2371_v15  ;;  %v1428_v22 = vpop.f32.mrb[6].mxu1  ;;  %v1373_v23 = vpop.f32.mrb[7].mxu0 }
 0x193   : > { %v1374_v24 = vadd.f32 %v1373_v23, %v1372_v20  ;;  %v1429_v26 = vpop.f32.mrb[7].mxu1  ;;  %v2382_v39 = vrot.slane %v489_v27, %v2354_v59  ;;  %v2389_v48 = vrot.slane %v490_v37, %v2354_v59 }
 0x194   : > { %856 = vst [vmem:[%s2365_s28 + $0x20] sm:$0xff] %v840_v21  ;;  %v1430_v29 = vadd.f32 %v1429_v26, %v1428_v22 }
 0x195   : > { %v1375_v31 = vpop.f32.mrb[8].mxu0  ;;  %v491_v7 = vcombine.low %v1374_v24, %v1374_v24  ;;  %v492_v30 = vcombine.high %v1374_v24, %v1374_v24 }
 0x196   : > { %v841_v32 = vadd.f32 %v1430_v29, %v2377_v28  ;;  %v1431_v33 = vpop.f32.mrb[8].mxu1  ;;  %v1376_v34 = vpop.f32.mrb[9].mxu0 }
 0x197   : > { %v1377_v35 = vadd.f32 %v1376_v34, %v1375_v31  ;;  %v1432_v36 = vpop.f32.mrb[9].mxu1  ;;  %v2396_v54 = vrot.slane %v491_v7, %v2354_v59  ;;  %v2403_v61 = vrot.slane %v492_v30, %v2354_v59 }
 0x198   : > { %857 = vst [vmem:[%s2365_s28 + $0x28] sm:$0xff] %v841_v32  ;;  %v1433_v40 = vadd.f32 %v1432_v36, %v1431_v33 }
 0x199   : > { %v1378_v41 = vpop.f32.mrb[10].mxu0  ;;  %v493_v60 = vcombine.low %v1377_v35, %v1377_v35  ;;  %v494_v8 = vcombine.high %v1377_v35, %v1377_v35 }
 0x19a   : > { %v842_v42 = vadd.f32 %v1433_v40, %v2382_v39  ;;  %v1434_v44 = vpop.f32.mrb[10].mxu1  ;;  %v1379_v45 = vpop.f32.mrb[11].mxu0 }
 0x19b   : > { %v2385_v46 = vadd.f32 %v1379_v45, %v1378_v41  ;;  %v1435_v47 = vpop.f32.mrb[11].mxu1  ;;  %v2408_v9 = vrot.slane %v493_v60, %v2354_v59  ;;  %v2417_v22 = vrot.slane %v494_v8, %v2354_v59 }
 0x19c   : > { %858 = vst [vmem:[%s2365_s28 + $0x40] sm:$0xff] %v842_v42  ;;  %v1436_v12 = vadd.f32 %v1435_v47, %v1434_v44 }
 0x19d   : > { %v1381_v49 = vpop.f32.mrb[12].mxu0  ;;  %v495_v21 = vcombine.low %v2385_v46, %v2385_v46  ;;  %v496_v33 = vcombine.high %v2385_v46, %v2385_v46 }
 0x19e   : > { %v843_v50 = vadd.f32 %v1436_v12, %v2389_v48  ;;  %v1437_v17 = vpop.f32.mrb[12].mxu1  ;;  %v1382_v52 = vpop.f32.mrb[13].mxu0 }
 0x19f   : > { %v2392_v53 = vadd.f32 %v1382_v52, %v1381_v49  ;;  %v1438_v25 = vpop.f32.mrb[13].mxu1  ;;  %v2426_v34 = vrot.slane %v495_v21, %v2354_v59  ;;  %v2435_v46 = vrot.slane %v496_v33, %v2354_v59 }
 0x1a0   : > { %859 = vst [vmem:[%s2365_s28 + $0x48] sm:$0xff] %v843_v50  ;;  %v1439_v55 = vadd.f32 %v1438_v25, %v1437_v17 }
 0x1a1   : > { %v1384_v57 = vpop.f32.mrb[14].mxu0  ;;  %v497_v45 = vcombine.low %v2392_v53, %v2392_v53  ;;  %v498_v25 = vcombine.high %v2392_v53, %v2392_v53 }
 0x1a2   : > { %v844_v38 = vadd.f32 %v1439_v55, %v2396_v54  ;;  %v1440_v43 = vpop.f32.mrb[14].mxu1  ;;  %v1385_v58 = vpop.f32.mrb[15].mxu0 }
 0x1a3   : > { %v2399_v51 = vadd.f32 %v1385_v58, %v1384_v57  ;;  %v1441_v56 = vpop.f32.mrb[15].mxu1  ;;  %v607_v30 = vrot.slane %v497_v45, %v2354_v59  ;;  %v614_v53 = vrot.slane %v498_v25, %v2354_v59 }
 0x1a4   : > { %860 = vst [vmem:[%s2365_s28 + $0x60] sm:$0xff] %v844_v38  ;;  %v1442_v62 = vadd.f32 %v1441_v56, %v1440_v43 }
 0x1a5   : > { %v1499_v63 = vpop.f32.mrb[16].mxu0 }
 0x1a6   : > { %v845_v0 = vadd.f32 %v1442_v62, %v2403_v61  ;;  %v1443_v2 = vpop.f32.mrb[16].mxu1  ;;  %v1500_v4 = vpop.f32.mrb[17].mxu0  ;;  %v499_v62 = vcombine.low %v2399_v51, %v2399_v51 }
 0x1a7   : > { %v1444_v5 = vpop.f32.mrb[17].mxu1  ;;  %v1501_v6 = vadd.f32 %v1500_v4, %v1499_v63 }
 0x1a8   : > { %861 = vst [vmem:[%s2365_s28 + $0x68] sm:$0xff] %v845_v0  ;;  %v1445_v10 = vadd.f32 %v1444_v5, %v1443_v2 }
 0x1a9   : > { %v1080_v11 = vadd.f32 %v1501_v6, %v2357_v1  ;;  %v1502_v13 = vpop.f32.mrb[18].mxu0 }
 0x1aa   : > { %v846_v14 = vadd.f32 %v1445_v10, %v2408_v9  ;;  %v1446_v16 = vpop.f32.mrb[18].mxu1  ;;  %v1503_v18 = vpop.f32.mrb[19].mxu0  ;;  %v500_v10 = vcombine.high %v2399_v51, %v2399_v51 }
 0x1ab   : > { %1310 = vst [vmem:[%s2365_s28 + $0x10] sm:$0xff] %v1080_v11  ;;  %v1447_v19 = vpop.f32.mrb[19].mxu1  ;;  %v1504_v20 = vadd.f32 %v1503_v18, %v1502_v13  ;;  %v621_v11 = vrot.slane %v499_v62, %v2354_v59 }
 0x1ac   : > { %862 = vst [vmem:[%s2365_s28 + $0x80] sm:$0xff] %v846_v14  ;;  %v1448_v23 = vadd.f32 %v1447_v19, %v1446_v16 }
 0x1ad   : > { %v1081_v1 = vadd.f32 %v1504_v20, %v2360_v3  ;;  %v1505_v24 = vpop.f32.mrb[20].mxu0 }
 0x1ae   : > { %v847_v26 = vadd.f32 %v1448_v23, %v2417_v22  ;;  %v1449_v27 = vpop.f32.mrb[20].mxu1  ;;  %v1506_v29 = vpop.f32.mrb[21].mxu0  ;;  %v628_v23 = vrot.slane %v500_v10, %v2354_v59 }
 0x1af   : > { %1311 = vst [vmem:[%s2365_s28 + $0x18] sm:$0xff] %v1081_v1  ;;  %v1450_v31 = vpop.f32.mrb[21].mxu1  ;;  %v1507_v32 = vadd.f32 %v1506_v29, %v1505_v24 }
 0x1b0   : > { %863 = vst [vmem:[%s2365_s28 + $0x88] sm:$0xff] %v847_v26  ;;  %v1451_v35 = vadd.f32 %v1450_v31, %v1449_v27 }
 0x1b1   : > { %v1082_v3 = vadd.f32 %v1507_v32, %v2371_v15  ;;  %v1508_v36 = vpop.f32.mrb[22].mxu0 }
 0x1b2   : > { %v848_v37 = vadd.f32 %v1451_v35, %v2426_v34  ;;  %v1452_v40 = vpop.f32.mrb[22].mxu1  ;;  %v1509_v41 = vpop.f32.mrb[23].mxu0 }
 0x1b3   : > { %1312 = vst [vmem:[%s2365_s28 + $0x30] sm:$0xff] %v1082_v3  ;;  %v1453_v42 = vpop.f32.mrb[23].mxu1  ;;  %v1510_v44 = vadd.f32 %v1509_v41, %v1508_v36 }
 0x1b4   : > { %864 = vst [vmem:[%s2365_s28 + $0xa0] sm:$0xff] %v848_v37  ;;  %v1454_v47 = vadd.f32 %v1453_v42, %v1452_v40 }
 0x1b5   : > { %v1083_v15 = vadd.f32 %v1510_v44, %v2377_v28  ;;  %v1511_v7 = vpop.f32.mrb[24].mxu0 }
 0x1b6   : > { %v849_v12 = vadd.f32 %v1454_v47, %v2435_v46  ;;  %v1455_v49 = vpop.f32.mrb[24].mxu1  ;;  %v1512_v50 = vpop.f32.mrb[25].mxu0 }
 0x1b7   : > { %1313 = vst [vmem:[%s2365_s28 + $0x38] sm:$0xff] %v1083_v15  ;;  %v1456_v17 = vpop.f32.mrb[25].mxu1  ;;  %v1513_v52 = vadd.f32 %v1512_v50, %v1511_v7 }
 0x1b8   : > { %865 = vst [vmem:[%s2365_s28 + $0xa8] sm:$0xff] %v849_v12  ;;  %v1457_v55 = vadd.f32 %v1456_v17, %v1455_v49 }
 0x1b9   : > { %v1084_v57 = vadd.f32 %v1513_v52, %v2382_v39  ;;  %v1514_v28 = vpop.f32.mrb[26].mxu0 }
 0x1ba   : > { %v850_v38 = vadd.f32 %v1457_v55, %v607_v30  ;;  %v1458_v43 = vpop.f32.mrb[26].mxu1  ;;  %v1515_v58 = vpop.f32.mrb[27].mxu0 }
 0x1bb   : > { %1314 = vst [vmem:[%s2365_s28 + $0x50] sm:$0xff] %v1084_v57  ;;  %v1459_v56 = vpop.f32.mrb[27].mxu1  ;;  %v1516_v60 = vadd.f32 %v1515_v58, %v1514_v28 }
 0x1bc   : > { %866 = vst [vmem:[%s2365_s28 + $0xc0] sm:$0xff] %v850_v38  ;;  %v1460_v63 = vadd.f32 %v1459_v56, %v1458_v43 }
 0x1bd   : > { %v1085_v0 = vadd.f32 %v1516_v60, %v2389_v48  ;;  %v1517_v2 = vpop.f32.mrb[28].mxu0 }
 0x1be   : > { %v851_v39 = vadd.f32 %v1460_v63, %v614_v53  ;;  %v1461_v4 = vpop.f32.mrb[28].mxu1  ;;  %v1518_v5 = vpop.f32.mrb[29].mxu0 }
 0x1bf   : > { %1315 = vst [vmem:[%s2365_s28 + $0x58] sm:$0xff] %v1085_v0  ;;  %v1462_v6 = vpop.f32.mrb[29].mxu1  ;;  %v1519_v8 = vadd.f32 %v1518_v5, %v1517_v2 }
 0x1c0   : > { %867 = vst [vmem:[%s2365_s28 + $0xc8] sm:$0xff] %v851_v39  ;;  %v1463_v13 = vadd.f32 %v1462_v6, %v1461_v4 }
 0x1c1   : > { %v1086_v14 = vadd.f32 %v1519_v8, %v2396_v54  ;;  %v1520_v48 = vpop.f32.mrb[30].mxu0 }
 0x1c2   : > { %v852_v16 = vadd.f32 %v1463_v13, %v621_v11  ;;  %v1464_v18 = vpop.f32.mrb[30].mxu1  ;;  %v1521_v19 = vpop.f32.mrb[31].mxu0 }
 0x1c3   : > { %1316 = vst [vmem:[%s2365_s28 + $0x70] sm:$0xff] %v1086_v14  ;;  %v1465_v20 = vpop.f32.mrb[31].mxu1  ;;  %v1522_v21 = vadd.f32 %v1521_v19, %v1520_v48 }
 0x1c4   : > { %868 = vst [vmem:[%s2365_s28 + $0xe0] sm:$0xff] %v852_v16  ;;  %v1466_v1 = vadd.f32 %v1465_v20, %v1464_v18 }
 0x1c5   : > { %v1087_v51 = vadd.f32 %v1522_v21, %v2403_v61  ;;  %v1523_v24 = vpop.f32.mrb[32].mxu0 }
 0x1c6   : > { %v853_v26 = vadd.f32 %v1466_v1, %v628_v23  ;;  %v1535_v54 = vpop.f32.mrb[32].mxu1  ;;  %v1524_v27 = vpop.f32.mrb[33].mxu0 }
 0x1c7   : > { %1317 = vst [vmem:[%s2365_s28 + $0x78] sm:$0xff] %v1087_v51  ;;  %v1525_v29 = vadd.f32 %v1524_v27, %v1523_v24  ;;  %v1536_v31 = vpop.f32.mrb[33].mxu1 }
 0x1c8   : > { %869 = vst [vmem:[%s2365_s28 + $0xe8] sm:$0xff] %v853_v26  ;;  %v1537_v32 = vadd.f32 %v1536_v31, %v1535_v54 }
 0x1c9   : > { %v1088_v33 = vadd.f32 %v1525_v29, %v2408_v9  ;;  %v1526_v35 = vpop.f32.mrb[34].mxu0 }
 0x1ca   : > { %v1092_v3 = vadd.f32 %v1537_v32, %v607_v30  ;;  %v1538_v59 = vpop.f32.mrb[34].mxu1  ;;  %v1527_v36 = vpop.f32.mrb[35].mxu0 }
 0x1cb   : > { %1318 = vst [vmem:[%s2365_s28 + $0x90] sm:$0xff] %v1088_v33  ;;  %v1528_v61 = vadd.f32 %v1527_v36, %v1526_v35  ;;  %v1539_v37 = vpop.f32.mrb[35].mxu1 }
 0x1cc   : > { %1322 = vst [vmem:[%s2365_s28 + $0xd0] sm:$0xff] %v1092_v3  ;;  %v1540_v40 = vadd.f32 %v1539_v37, %v1538_v59 }
 0x1cd   : > { %v1089_v41 = vadd.f32 %v1528_v61, %v2417_v22  ;;  %v1529_v42 = vpop.f32.mrb[36].mxu0 }
 0x1ce   : > { %v1093_v44 = vadd.f32 %v1540_v40, %v614_v53  ;;  %v1541_v45 = vpop.f32.mrb[36].mxu1  ;;  %v1530_v47 = vpop.f32.mrb[37].mxu0 }
 0x1cf   : > { %1319 = vst [vmem:[%s2365_s28 + $0x98] sm:$0xff] %v1089_v41  ;;  %v1531_v9 = vadd.f32 %v1530_v47, %v1529_v42  ;;  %v1542_v15 = vpop.f32.mrb[37].mxu1 }
 0x1d0   : > { %1323 = vst [vmem:[%s2365_s28 + $0xd8] sm:$0xff] %v1093_v44  ;;  %v1543_v7 = vadd.f32 %v1542_v15, %v1541_v45 }
 0x1d1   : > { %v1090_v12 = vadd.f32 %v1531_v9, %v2426_v34  ;;  %v1532_v49 = vpop.f32.mrb[38].mxu0 }
 0x1d2   : > { %v1094_v50 = vadd.f32 %v1543_v7, %v621_v11  ;;  %v1544_v17 = vpop.f32.mrb[38].mxu1  ;;  %v1533_v52 = vpop.f32.mrb[39].mxu0 }
 0x1d3   : > { %1320 = vst [vmem:[%s2365_s28 + $0xb0] sm:$0xff] %v1090_v12  ;;  %v1534_v22 = vadd.f32 %v1533_v52, %v1532_v49  ;;  %v1545_v25 = vpop.f32.mrb[39].mxu1 }
 0x1d4   : > { %1324 = vst [vmem:[%s2365_s28 + $0xf0] sm:$0xff] %v1094_v50  ;;  %v1546_v30 = vadd.f32 %v1545_v25, %v1544_v17 }
 0x1d5   : > { %v1091_v55 = vadd.f32 %v1534_v22, %v2435_v46 }
 0x1d6   : > { %v1095_v57 = vadd.f32 %v1546_v30, %v628_v23 }
 0x1d7   : > { %1321 = vst [vmem:[%s2365_s28 + $0xb8] sm:$0xff] %v1091_v55 }
 0x1d8   : > { %1325 = vst [vmem:[%s2365_s28 + $0xf8] sm:$0xff] %v1095_v57 }
 0x1d9 PF: > { %s21_s20 = sadd.s32 1, %s1923_s20   ;;  %s2514_s15 = smov %s1907_s16 }
 0x1da   : > { %p18_p5 = scmp.ge.s32.totalorder %s21_s20, 4   ;;  %s2515_s16 = smov %s1911_s17 }
 0x1db   : > { %s2516_s17 = smov %s2080_s12  ;;  %s2517_s18 = smov %s1919_s19 }
 0x1dc   : > { %s2518_s19 = smov %s2520_s11  ;;  %20 = sbr.rel (!%p18_p5) target bundleno = 9 (0x9), region = 99 }
 0x1e3   :  { %1145 = vsyncpa [#allocation3], 1 }
 0x1e4   :  { %1147 = vsyncpa [#allocation3 + $0x1], 1 }
 0x1e5   :  { %1148 = vsyncpa [#allocation5], 1 }
 0x1e6   :  { %1150 = vsyncpa [#allocation5 + $0x1], 1 }
 0x1e7   :  { %1151 = vsyncpa [#allocation8], 1 }

// kernel: pan_forward.5
= control target key start
LH: loop header
LB: loop body
LE: loop exit
PB: predicated region body
PF: predicated region fallthrough
CT: control target
= control target key end

     0   :  { %8 = vsyncpa [#allocation3], 0  ;;  %s6647_s0 = inlined_call_operand.vmem [shape: f32[2,18,18,128], index: 0, kind: input, shape index: {}, may-alias: {0,1}]   ;;  %s6648_s1 = inlined_call_operand.vmem [shape: f32[2,18,18,128], index: 1, kind: input, shape index: {}, may-alias: {0,1}]   ;;  %s6649_s2 = inlined_call_operand.vmem [shape: f32[9,128,128], index: 2, kind: input, shape index: {}]   ;;  %s6650_s3 = inlined_call_operand.hbm [shape: f32[2,16,16,128], index: 3, kind: output, shape index: {}]  }
   0x1   :  { %10 = vsyncpa [#allocation3 + $0x1], 0  ;;  %s5223_s12 = smov 0   ;;  %s5225_s13 = smov 0  }
   0x2   :  { %s5227_s14 = smov 0   ;;  %s5229_s15 = smov 0  }
   0x3   :  { %s5231_s16 = smov 0   ;;  %s5233_s17 = smov 0  }
   0x4 LB: > { %s3196_s18 = sadd.s32 4294967295, %s5198_s17   ;;  %s3197_s19 = sadd.s32 4294967294, %s5198_s17   ;;  %s5198_s17 = sphi %s5233_s17, %s16_s17   ;;  %s5194_s16 = sphi %s5231_s16, %s6819_s16   ;;  %s5190_s15 = sphi %s5229_s15, %s6818_s15   ;;  %s5186_s14 = sphi %s5227_s14, %s6817_s14   ;;  %s5182_s13 = sphi %s5225_s13, %s6816_s13   ;;  %s5178_s12 = sphi %s5223_s12, %s6815_s12  }
   0x5   : > { %s28_s20 = sadd.s32 1, %s5194_s16  ;;  %s118_s21 = sadd.s32 1, %s5186_s14 }
   0x6   : > { %p30_p0 = scmp.ge.s32.totalorder %s28_s20, 2  ;;  %p128_p1 = scmp.ne.s32.totalorder %s5186_s14, %s5182_s13 }
   0x7   : > { %p129_p2 = scmp.eq.s32.totalorder %s3196_s18, 1  ;;  %p134_p3 = scmp.ne.s32.totalorder %s5182_s13, %s5178_s12 }
   0x8   : > { %s6821_s20 = smov (%p30_p0, %s28_s20), 0  ;;  %p135_p5 = scmp.eq.s32.totalorder %s3197_s19, 1 }
   0x9   : > { %p5263_p4 = por %p129_p2, %p128_p1  ;;  %s113_s23 = ssub.s32 %s5194_s16, %s6821_s20 }
   0xa   : > { %p3200_p6 = scmp.ge.s32.totalorder %s5198_s17, 1  ;;  %p116_p7 = scmp.eq.s32.totalorder %s113_s23, 0 }
   0xb   : > { %p5270_p8 = por %p135_p5, %p134_p3  ;;  %p198_p9 = scmp.lt.s32.totalorder %s5198_s17, 3 }
   0xc   : > { %s5276_s25 = scalar_select %p116_p7, %s5186_s14, %s118_s21  }
   0xd   : > { %p199_p10 = pnand %p3200_p6, %p198_p9 }
   0xf   : > { %202 = sbr.rel (%p199_p10) target bundleno = 572 (0x23c), region = 32 }
  0x16   : > { %v3204_v0 = vld [vmem:[%s6649_s2 + $0x180] sm:$0xff]  ;;  %v3205_v1 = vld [vmem:[%s6649_s2 + $0x188] sm:$0xff]  ;;  %p250_p11 = scmp.lt.s32.totalorder %s5190_s15, 1  ;;  %v3206_v5 = vld [vmem:[%s6649_s2 + $0x190] sm:$0xff]  ;;  %vm1140_vm0 = vcmask 1046528   ;;  %vm2095_vm1 = vcmask 1045504  }
  0x17   : > { %v3252_v2 = vld [vmem:[%s6649_s2 + $0x200] sm:$0xff]  ;;  %v4492_v3 = vpack.c.bf16 %v3205_v1, %v3204_v0  ;;  %v3253_v4 = vld [vmem:[%s6649_s2 + $0x208] sm:$0xff]  ;;  %v3207_v6 = vld [vmem:[%s6649_s2 + $0x198] sm:$0xff]  ;;  %s241_s8 = sand.u32 1, %s5182_s13   ;;  %s3339_s10 = sshll.u32 %s5190_s15, 12 }
  0x18   : > { %v5297_v7 = vpack.c.bf16 %v3253_v4, %v3252_v2  ;;  %v4496_v8 = vpack.c.bf16 %v3207_v6, %v3206_v5  ;;  %v3254_v9 = vld [vmem:[%s6649_s2 + $0x210] sm:$0xff]  ;;  %v3255_v10 = vld [vmem:[%s6649_s2 + $0x218] sm:$0xff]  ;;  %v3208_v11 = vld [vmem:[%s6649_s2 + $0x1a0] sm:$0xff]  ;;  %s5309_s27 = scalar_select %p250_p11, %s5190_s15, 1 }
  0x19   : > { %4493 = vmatprep.subr.bf16.mxu1 %v4492_v3  ;;  %v5311_v12 = vpack.c.bf16 %v3255_v10, %v3254_v9  ;;  %v3209_v13 = vld [vmem:[%s6649_s2 + $0x1a8] sm:$0xff]  ;;  %v3256_v14 = vld [vmem:[%s6649_s2 + $0x220] sm:$0xff]  ;;  %v3210_v18 = vld [vmem:[%s6649_s2 + $0x1b0] sm:$0xff]  ;;  %s3201_s9 = sshll.u32 %s241_s8, 8  ;;  %s6601_s15 = scalar_lea.sflag [#allocation3], %s241_s8 }
  0x1a   : > { %6721 = vst [vmem:[#allocation5_spill] sm:$0xff] %v5297_v7  ;;  %v3257_v15 = vld [vmem:[%s6649_s2 + $0x228] sm:$0xff]  ;;  %4621 = vmatprep.subr.bf16.mxu0 %v5297_v7  ;;  %4495 = vmatpush3.bf16.msra.mxu1 %v4492_v3  ;;  %s5052_s7 = smul.u32 432, %s5309_s27  ;;  %v4500_v16 = vpack.c.bf16 %v3209_v13, %v3208_v11  ;;  %v3211_v19 = vld [vmem:[%s6649_s2 + $0x1b8] sm:$0xff]  ;;  %v3258_v20 = vld [vmem:[%s6649_s2 + $0x230] sm:$0xff]  ;;  %s5200_s23 = smov [#allocation2]  }
  0x1b   : > { %6722 = vst [vmem:[#allocation6_spill] sm:$0xff] %v5311_v12  ;;  %4623 = vmatpush3.bf16.msra.mxu0 %v5297_v7  ;;  %4497 = vmatprep.subr.bf16.mxu1 %v4496_v8  ;;  %v5326_v17 = vpack.c.bf16 %v3257_v15, %v3256_v14  ;;  %v3259_v21 = vld [vmem:[%s6649_s2 + $0x238] sm:$0xff]  ;;  %v4504_v22 = vpack.c.bf16 %v3211_v19, %v3210_v18  ;;  %v3212_v24 = vld [vmem:[%s6649_s2 + $0x1c0] sm:$0xff]  ;;  %v3213_v25 = vld [vmem:[%s6649_s2 + $0x1c8] sm:$0xff] }
  0x1c   : > { %4625 = vmatprep.subr.bf16.mxu0 %v5311_v12  ;;  %s5345_s29 = scalar_lea.vmem %s6647_s0, %s5052_s7  ;;  %v5349_v23 = vpack.c.bf16 %v3259_v21, %v3258_v20  ;;  %v3260_v27 = vld [vmem:[%s6649_s2 + $0x240] sm:$0xff]  ;;  %v3261_v28 = vld [vmem:[%s6649_s2 + $0x248] sm:$0xff]  ;;  %v4508_v32 = vpack.c.bf16 %v3213_v25, %v3212_v24  ;;  %v3214_v34 = vld [vmem:[%s6649_s2 + $0x1d0] sm:$0xff]  ;;  %s3338_s26 = sadd.s32 384, %s5052_s7 }
  0x1d   : > { %6723 = vst [vmem:[#allocation7_spill] sm:$0xff] %v5326_v17  ;;  %v5358_v26 = vld [vmem:[%s5345_s29 + $0x18] sm:$0xff]  ;;  %v5368_v29 = vld [vmem:[%s5345_s29 + $0x20] sm:$0xff]  ;;  %v5374_v33 = vpack.c.bf16 %v3261_v28, %v3260_v27  ;;  %v3262_v37 = vld [vmem:[%s6649_s2 + $0x250] sm:$0xff]  ;;  %s5811_s6 = scalar_lea.vmem %s6648_s1, %s3338_s26  ;;  %s5124_s26 = sshll.u32 %s5200_s23, 4  ;;  %s5125_s26 = int_to_ptr.vmem [resolvable:$false] %s5124_s26 }
  0x1e   : > { %4499 = vmatpush3.bf16.msra.mxu1 %v4496_v8  ;;  %6724 = vst [vmem:[#allocation8_spill] sm:$0xff] %v5349_v23  ;;  %3804 = vmatprep.mubr.f32.mxu1 %v5358_v26  ;;  %v1146_v30 = vrot.slane %v5358_v26, 1  ;;  %v1147_v31 = vrot.slane %v5368_v29, 1  ;;  %v3215_v35 = vld [vmem:[%s6649_s2 + $0x1d8] sm:$0xff]  ;;  %v3216_v41 = vld [vmem:[%s6649_s2 + $0x1e0] sm:$0xff]  ;;  %v3217_v42 = vld [vmem:[%s6649_s2 + $0x1e8] sm:$0xff] }
  0x1f   : > { %4627 = vmatpush3.bf16.msra.mxu0 %v5311_v12  ;;  %4501 = vmatprep.subr.bf16.mxu1 %v4500_v16  ;;  %6725 = vst [vmem:[#allocation9_spill] sm:$0xff] %v5374_v33  ;;  %v3263_v38 = vld [vmem:[%s6649_s2 + $0x258] sm:$0xff]  ;;  %v4512_v39 = vpack.c.bf16 %v3215_v35, %v3214_v34  ;;  %v3264_v43 = vld [vmem:[%s6649_s2 + $0x260] sm:$0xff]  ;;  %v3265_v44 = vld [vmem:[%s6649_s2 + $0x268] sm:$0xff]  ;;  %v4516_v45 = vpack.c.bf16 %v3217_v42, %v3216_v41  ;;  %s5126_s28 = scalar_lea.vmem %s5125_s26, 8192 }
  0x20   : > { %4629 = vmatprep.subr.bf16.mxu0 %v5326_v17  ;;  %v5385_v36 = vsel %vm1140_vm0, %v1146_v30, %v1147_v31  ;;  %v5396_v40 = vpack.c.bf16 %v3263_v38, %v3262_v37  ;;  %v5412_v46 = vpack.c.bf16 %v3265_v44, %v3264_v43  ;;  %v3218_v47 = vld [vmem:[%s6649_s2 + $0x1f0] sm:$0xff]  ;;  %v3219_v48 = vld [vmem:[%s6649_s2 + $0x1f8] sm:$0xff]  ;;  %v335_v53 = vld [vmem:[%s6649_s2] sm:$0xff] }
  0x21   : > { %6726 = vst [vmem:[#allocation10_spill] sm:$0xff] %v5385_v36  ;;  %4124 = vmatprep.mubr.f32.mxu0 %v5385_v36  ;;  %v3266_v49 = vld [vmem:[%s6649_s2 + $0x270] sm:$0xff]  ;;  %v3267_v50 = vld [vmem:[%s6649_s2 + $0x278] sm:$0xff]  ;;  %v4520_v51 = vpack.c.bf16 %v3219_v48, %v3218_v47  ;;  %v336_v54 = vld [vmem:[%s6649_s2 + $0x8] sm:$0xff] }
  0x22   : > { %4503 = vmatpush3.bf16.msra.mxu1 %v4500_v16  ;;  %6727 = vst [vmem:[#allocation11_spill] sm:$0xff] %v5396_v40  ;;  %6728 = vst [vmem:[#allocation12_spill] sm:$0xff] %v5412_v46  ;;  %v5428_v52 = vpack.c.bf16 %v3267_v50, %v3266_v49  ;;  %v5437_v55 = vld [vmem:[%s5345_s29 + $0x28] sm:$0x3]  ;;  %v3268_v56 = vld [vmem:[%s6649_s2 + $0x380] sm:$0xff]  ;;  %v4524_v60 = vpack.c.bf16 %v336_v54, %v335_v53 }
  0x23   : > { %4631 = vmatpush3.bf16.msra.mxu0 %v5326_v17  ;;  %4505 = vmatprep.subr.bf16.mxu1 %v4504_v22  ;;  %v3269_v57 = vld [vmem:[%s6649_s2 + $0x388] sm:$0xff]  ;;  %v5446_v58 = vld [vmem:[%s5345_s29 + $0x30] sm:$0xff]  ;;  %v5449_v59 = vld [vmem:[%s5345_s29 + $0x38] sm:$0xff]  ;;  %v1149_v61 = vrot.slane %v5437_v55, 1 }
  0x24   : > { %4633 = vmatprep.subr.bf16.mxu0 %v5349_v23  ;;  %6729 = vst [vmem:[#allocation13_spill] sm:$0xff] %v5428_v52  ;;  %v4652_v62 = vpack.c.bf16 %v3269_v57, %v3268_v56  ;;  %v5455_v63 = vld [vmem:[%s5345_s29 + $0x40] sm:$0x3]  ;;  %v3270_v0 = vld [vmem:[%s6649_s2 + $0x390] sm:$0xff]  ;;  %v1151_v1 = vrot.slane %v5446_v58, 1  ;;  %v1152_v2 = vrot.slane %v5449_v59, 1 }
  0x25   : > { %v3271_v3 = vld [vmem:[%s6649_s2 + $0x398] sm:$0xff]  ;;  %v5466_v4 = vld [vmem:[%s5345_s29 + $0x48] sm:$0xff]  ;;  %v5469_v5 = vld [vmem:[%s5345_s29 + $0x50] sm:$0xff]  ;;  %v5481_v9 = vsel %vm1140_vm0, %v1147_v31, %v1149_v61  ;;  %v1154_v10 = vrot.slane %v5455_v63, 1 }
  0x26   : > { %4507 = vmatpush3.bf16.msra.mxu1 %v4504_v22  ;;  %v337_v6 = vld [vmem:[%s6649_s2 + $0x10] sm:$0xff]  ;;  %v338_v8 = vld [vmem:[%s6649_s2 + $0x18] sm:$0xff]  ;;  %6730 = vst [vmem:[#allocation14_spill] sm:$0xff] %v5481_v9  ;;  %v4656_v11 = vpack.c.bf16 %v3271_v3, %v3270_v0  ;;  %v1156_v13 = vrot.slane %v5466_v4, 1  ;;  %v1157_v14 = vrot.slane %v5469_v5, 1  ;;  %v3272_v16 = vld [vmem:[%s6649_s2 + $0x3a0] sm:$0xff]  ;;  %v5494_v18 = vsel %vm1140_vm0, %v1151_v1, %v1152_v2 }
  0x27   : > { %4635 = vmatpush3.bf16.msra.mxu0 %v5349_v23  ;;  %4509 = vmatprep.subr.bf16.mxu1 %v4508_v32  ;;  %v5487_v15 = vld [vmem:[%s5345_s29 + $0x58] sm:$0x3]  ;;  %6731 = vst [vmem:[#allocation15_spill] sm:$0xff] %v5494_v18  ;;  %v4528_v19 = vpack.c.bf16 %v338_v8, %v337_v6  ;;  %v3273_v20 = vld [vmem:[%s6649_s2 + $0x3a8] sm:$0xff]  ;;  %v5500_v21 = vld [vmem:[%s5345_s29 + $0x60] sm:$0xff]  ;;  %v5514_v27 = vsel %vm1140_vm0, %v1152_v2, %v1154_v10 }
  0x28   : > { %4637 = vmatprep.subr.bf16.mxu0 %v5374_v33  ;;  %v5503_v22 = vld [vmem:[%s5345_s29 + $0x68] sm:$0xff]  ;;  %v339_v24 = vld [vmem:[%s6649_s2 + $0x20] sm:$0xff]  ;;  %6732 = vst [vmem:[#allocation16_spill] sm:$0xff] %v5514_v27  ;;  %v1159_v28 = vrot.slane %v5487_v15, 1  ;;  %v5519_v30 = vsel %vm1140_vm0, %v1156_v13, %v1157_v14  ;;  %v4660_v31 = vpack.c.bf16 %v3273_v20, %v3272_v16  ;;  %v5524_v35 = vld [vmem:[%s5345_s29 + $0x70] sm:$0x3] }
  0x29   : > { %v340_v25 = vld [vmem:[%s6649_s2 + $0x28] sm:$0xff]  ;;  %6733 = vst [vmem:[#allocation17_spill] sm:$0xff] %v5519_v30  ;;  %v1162_v34 = vrot.slane %v5503_v22, 1  ;;  %v3274_v37 = vld [vmem:[%s6649_s2 + $0x3b0] sm:$0xff]  ;;  %v3275_v38 = vld [vmem:[%s6649_s2 + $0x3b8] sm:$0xff]  ;;  %v1164_v47 = vrot.slane %v5524_v35, 1 }
  0x2a   : > { %4511 = vmatpush3.bf16.msra.mxu1 %v4508_v32  ;;  %v1161_v32 = vrot.slane %v5500_v21, 1  ;;  %v5537_v41 = vld [vmem:[%s5345_s29 + $0x80] sm:$0xff]  ;;  %v4532_v42 = vpack.c.bf16 %v340_v25, %v339_v24  ;;  %v341_v43 = vld [vmem:[%s6649_s2 + $0x30] sm:$0xff]  ;;  %v342_v44 = vld [vmem:[%s6649_s2 + $0x38] sm:$0xff]  ;;  %v4664_v49 = vpack.c.bf16 %v3275_v38, %v3274_v37 }
  0x2b   : > { %4639 = vmatpush3.bf16.msra.mxu0 %v5374_v33  ;;  %4513 = vmatprep.subr.bf16.mxu1 %v4512_v39  ;;  %v5558_v53 = vld [vmem:[%s5345_s29 + $0x88] sm:$0x3]  ;;  %v3276_v54 = vld [vmem:[%s6649_s2 + $0x3c0] sm:$0xff]  ;;  %v5568_v57 = vld [vmem:[%s5345_s29 + $0x90] sm:$0xff]  ;;  %v4536_v61 = vpack.c.bf16 %v342_v44, %v341_v43  ;;  %v5583_v1 = vsel %vm1140_vm0, %v1162_v34, %v1164_v47 }
  0x2c   : > { %4641 = vmatprep.subr.bf16.mxu0 %v5396_v40  ;;  %v5553_v48 = vsel %vm1140_vm0, %v1161_v32, %v1162_v34  ;;  %v3277_v56 = vld [vmem:[%s6649_s2 + $0x3c8] sm:$0xff]  ;;  %6736 = vst [vmem:[#allocation20_spill] sm:$0xff] %v5583_v1  ;;  %v1169_v2 = vrot.slane %v5558_v53, 1  ;;  %v1171_v8 = vrot.slane %v5568_v57, 1  ;;  %v3278_v13 = vld [vmem:[%s6649_s2 + $0x3d0] sm:$0xff]  ;;  %v346_v25 = vld [vmem:[%s6649_s2 + $0x58] sm:$0xff] }
  0x2d   : > { %6735 = vst [vmem:[#allocation19_spill] sm:$0xff] %v5553_v48  ;;  %v344_v0 = vld [vmem:[%s6649_s2 + $0x48] sm:$0xff]  ;;  %v4668_v6 = vpack.c.bf16 %v3277_v56, %v3276_v54  ;;  %v345_v24 = vld [vmem:[%s6649_s2 + $0x50] sm:$0xff]  ;;  %v3280_v43 = vld [vmem:[%s6649_s2 + $0x3e0] sm:$0xff] }
  0x2e   : > { %4515 = vmatpush3.bf16.msra.mxu1 %v4512_v39  ;;  %v5534_v39 = vld [vmem:[%s5345_s29 + $0x78] sm:$0xff]  ;;  %v5602_v16 = vld [vmem:[%s5345_s29 + $0xa8] sm:$0xff]  ;;  %v5636_v47 = vld [vmem:[%s5345_s29 + $0xc0] sm:$0xff] }
  0x2f   : > { %4643 = vmatpush3.bf16.msra.mxu0 %v5396_v40  ;;  %4517 = vmatprep.subr.bf16.mxu1 %v4516_v45  ;;  %v1166_v50 = vrot.slane %v5534_v39, 1  ;;  %v1176_v37 = vrot.slane %v5602_v16, 1  ;;  %v3281_v44 = vld [vmem:[%s6649_s2 + $0x3e8] sm:$0xff] }
  0x30   : > { %4645 = vmatprep.subr.bf16.mxu0 %v5412_v46  ;;  %v348_v54 = vld [vmem:[%s6649_s2 + $0x68] sm:$0xff] }
  0x32   : > { %4519 = vmatpush3.bf16.msra.mxu1 %v4516_v45  ;;  %v5549_v45 = vsel %vm1140_vm0, %v1157_v14, %v1159_v28  ;;  %v3279_v14 = vld [vmem:[%s6649_s2 + $0x3d8] sm:$0xff] }
  0x33   : > { %4647 = vmatpush3.bf16.msra.mxu0 %v5412_v46  ;;  %4521 = vmatprep.subr.bf16.mxu1 %v4520_v51  ;;  %6734 = vst [vmem:[#allocation18_spill] sm:$0xff] %v5549_v45  ;;  %v4672_v34 = vpack.c.bf16 %v3279_v14, %v3278_v13  ;;  %v5660_v13 = vld [vmem:[%s5345_s29 + $0xd0] sm:$0x3]  ;;  %v5784_v46 = vld [vmem:[%s5345_s29 + $0x140] sm:$0xff] }
  0x34   : > { %4649 = vmatprep.subr.bf16.mxu0 %v5428_v52 }
  0x36   : > { %4523 = vmatpush3.bf16.msra.mxu1 %v4520_v51  ;;  %v1167_v51 = vrot.slane %v5537_v41, 1 }
  0x37   : > { %4651 = vmatpush3.bf16.msra.mxu0 %v5428_v52  ;;  %4525 = vmatprep.subr.bf16.mxu1 %v4524_v60  ;;  %v3295_v52 = vld [vmem:[%s6649_s2 + $0x158] sm:$0xff] }
  0x38   : > { %4653 = vmatprep.subr.bf16.mxu0 %v4652_v62  ;;  %v5587_v3 = vsel %vm1140_vm0, %v1166_v50, %v1167_v51  ;;  %v5617_v28 = vsel %vm1140_vm0, %v1167_v51, %v1169_v2  ;;  %v4544_v50 = vpack.c.bf16 %v346_v25, %v345_v24  ;;  %v347_v51 = vld [vmem:[%s6649_s2 + $0x60] sm:$0xff]  ;;  %v1181_v2 = vrot.slane %v5636_v47, 1  ;;  %v350_v24 = vld [vmem:[%s6649_s2 + $0x78] sm:$0xff] }
  0x39   : > { %3805 = vmatmul.mubr.f32.vlgmr.msra.gmra.mrb[0].mxu1 %v5368_v29  ;;  %6737 = vst [vmem:[#allocation21_spill] sm:$0xff] %v5587_v3  ;;  %6738 = vst [vmem:[#allocation22_spill] sm:$0xff] %v5617_v28  ;;  %v4548_v14 = vpack.c.bf16 %v348_v54, %v347_v51  ;;  %v3221_v51 = vld [vmem:[%s6649_s2 + $0x308] sm:$0xff] }
  0x3a   : > { %4125 = vmatmul.mubr.f32.vlgmr.msra.gmra.mrb[0].mxu0 %v5481_v9  ;;  %4527 = vmatpush3.bf16.msra.mxu1 %v4524_v60  ;;  %v5571_v60 = vld [vmem:[%s5345_s29 + $0x98] sm:$0xff] }
  0x3b   : > { %4655 = vmatpush3.bf16.msra.mxu0 %v4652_v62  ;;  %3807 = vmatprep.mubr.f32.mxu1 %v5446_v58  ;;  %v343_v62 = vld [vmem:[%s6649_s2 + $0x40] sm:$0xff]  ;;  %v1172_v10 = vrot.slane %v5571_v60, 1 }
  0x3c   : > { %4127 = vmatprep.mubr.f32.mxu0 %v5494_v18  ;;  %4657 = vmatprep.subr.bf16.mxu0 %v4656_v11  ;;  %v4540_v20 = vpack.c.bf16 %v344_v0, %v343_v62  ;;  %v4676_v0 = vpack.c.bf16 %v3281_v44, %v3280_v43 }
  0x3d   : > { %3808 = vmatmul.mubr.f32.gmra.mrb[2].mxu1 %v5449_v59  ;;  %4529 = vmatprep.subr.bf16.mxu1 %v4528_v19  ;;  %v5621_v32 = vsel %vm1140_vm0, %v1171_v8, %v1172_v10 }
  0x3e   : > { %4128 = vmatmul.mubr.f32.gmra.mrb[2].mxu0 %v5514_v27  ;;  %3810 = vmatprep.mubr.f32.mxu1 %v5466_v4  ;;  %6739 = vst [vmem:[#allocation23_spill] sm:$0xff] %v5621_v32 }
  0x3f   : > { %4659 = vmatpush3.bf16.msra.mxu0 %v4656_v11  ;;  %4130 = vmatprep.mubr.f32.mxu0 %v5519_v30  ;;  %v5592_v11 = vld [vmem:[%s5345_s29 + $0xa0] sm:$0x3] }
  0x40   : > { %4661 = vmatprep.subr.bf16.mxu0 %v4660_v31  ;;  %4531 = vmatpush3.bf16.msra.mxu1 %v4528_v19  ;;  %v5605_v19 = vld [vmem:[%s5345_s29 + $0xb0] sm:$0xff] }
  0x41   : > { %3811 = vmatmul.mubr.f32.gmra.mrb[4].mxu1 %v5469_v5  ;;  %4533 = vmatprep.subr.bf16.mxu1 %v4532_v42  ;;  %v1177_v38 = vrot.slane %v5605_v19, 1 }
  0x42   : > { %4131 = vmatmul.mubr.f32.gmra.mrb[4].mxu0 %v5549_v45  ;;  %3813 = vmatprep.mubr.f32.mxu1 %v5500_v21 }
  0x43   : > { %4663 = vmatpush3.bf16.msra.mxu0 %v4660_v31  ;;  %4133 = vmatprep.mubr.f32.mxu0 %v5553_v48  ;;  %v1174_v31 = vrot.slane %v5592_v11, 1  ;;  %v5655_v62 = vsel %vm1140_vm0, %v1176_v37, %v1177_v38 }
  0x44   : > { %4665 = vmatprep.subr.bf16.mxu0 %v4664_v49  ;;  %4535 = vmatpush3.bf16.msra.mxu1 %v4532_v42  ;;  %v5626_v42 = vld [vmem:[%s5345_s29 + $0xb8] sm:$0x3]  ;;  %6741 = vst [vmem:[#allocation25_spill] sm:$0xff] %v5655_v62 }
  0x45   : > { %3814 = vmatmul.mubr.f32.gmra.mrb[6].mxu1 %v5503_v22  ;;  %4537 = vmatprep.subr.bf16.mxu1 %v4536_v61  ;;  %v5651_v56 = vsel %vm1140_vm0, %v1172_v10, %v1174_v31  ;;  %v3283_v10 = vld [vmem:[%s6649_s2 + $0x3f8] sm:$0xff]  ;;  %v1184_v31 = vrot.slane %v5660_v13, 1 }
  0x46   : > { %4134 = vmatmul.mubr.f32.gmra.mrb[6].mxu0 %v5583_v1  ;;  %3816 = vmatprep.mubr.f32.mxu1 %v5534_v39  ;;  %6740 = vst [vmem:[#allocation24_spill] sm:$0xff] %v5651_v56 }
  0x47   : > { %4667 = vmatpush3.bf16.msra.mxu0 %v4664_v49  ;;  %4136 = vmatprep.mubr.f32.mxu0 %v5587_v3  ;;  %v5639_v49 = vld [vmem:[%s5345_s29 + $0xc8] sm:$0xff] }
  0x48   : > { %4669 = vmatprep.subr.bf16.mxu0 %v4668_v6  ;;  %4539 = vmatpush3.bf16.msra.mxu1 %v4536_v61  ;;  %v1179_v61 = vrot.slane %v5626_v42, 1  ;;  %v1182_v8 = vrot.slane %v5639_v49, 1 }
  0x49   : > { %3817 = vmatmul.mubr.f32.gmra.mrb[8].mxu1 %v5537_v41  ;;  %4541 = vmatprep.subr.bf16.mxu1 %v4540_v20 }
  0x4a   : > { %4137 = vmatmul.mubr.f32.gmra.mrb[8].mxu0 %v5617_v28  ;;  %3819 = vmatprep.mubr.f32.mxu1 %v5568_v57  ;;  %v5679_v25 = vsel %vm1140_vm0, %v1177_v38, %v1179_v61  ;;  %v5683_v37 = vsel %vm1140_vm0, %v1181_v2, %v1182_v8  ;;  %v3285_v38 = vld [vmem:[%s6649_s2 + $0x108] sm:$0xff]  ;;  %v5702_v54 = vsel %vm1140_vm0, %v1182_v8, %v1184_v31  ;;  %v5705_v61 = vld [vmem:[%s5345_s29 + $0xd8] sm:$0xff]  ;;  %v5719_v8 = vld [vmem:[%s5345_s29 + $0xe0] sm:$0xff] }
  0x4b   : > { %4671 = vmatpush3.bf16.msra.mxu0 %v4668_v6  ;;  %4139 = vmatprep.mubr.f32.mxu0 %v5621_v32  ;;  %v3282_v6 = vld [vmem:[%s6649_s2 + $0x3f0] sm:$0xff]  ;;  %6742 = vst [vmem:[#allocation26_spill] sm:$0xff] %v5679_v25  ;;  %6743 = vst [vmem:[#allocation27_spill] sm:$0xff] %v5683_v37  ;;  %v3289_v31 = vld [vmem:[%s6649_s2 + $0x128] sm:$0xff] }
  0x4c   : > { %4673 = vmatprep.subr.bf16.mxu0 %v4672_v34  ;;  %4543 = vmatpush3.bf16.msra.mxu1 %v4540_v20  ;;  %v349_v20 = vld [vmem:[%s6649_s2 + $0x70] sm:$0xff]  ;;  %v4680_v43 = vpack.c.bf16 %v3283_v10, %v3282_v6  ;;  %6744 = vst [vmem:[#allocation28_spill] sm:$0xff] %v5702_v54 }
  0x4d   : > { %3820 = vmatmul.mubr.f32.gmra.mrb[10].mxu1 %v5571_v60  ;;  %4545 = vmatprep.subr.bf16.mxu1 %v4544_v50  ;;  %v4552_v44 = vpack.c.bf16 %v350_v24, %v349_v20  ;;  %v3286_v6 = vld [vmem:[%s6649_s2 + $0x110] sm:$0xff]  ;;  %v3288_v24 = vld [vmem:[%s6649_s2 + $0x120] sm:$0xff] }
  0x4e   : > { %4140 = vmatmul.mubr.f32.gmra.mrb[10].mxu0 %v5651_v56  ;;  %3822 = vmatprep.mubr.f32.mxu1 %v5602_v16 }
  0x4f   : > { %4675 = vmatpush3.bf16.msra.mxu0 %v4672_v34  ;;  %4142 = vmatprep.mubr.f32.mxu0 %v5655_v62  ;;  %v3284_v34 = vld [vmem:[%s6649_s2 + $0x100] sm:$0xff] }
  0x50   : > { %4677 = vmatprep.subr.bf16.mxu0 %v4676_v0  ;;  %4547 = vmatpush3.bf16.msra.mxu1 %v4544_v50  ;;  %v3220_v50 = vld [vmem:[%s6649_s2 + $0x300] sm:$0xff]  ;;  %v4684_v2 = vpack.c.bf16 %v3285_v38, %v3284_v34  ;;  %v5740_v34 = vld [vmem:[%s5345_s29 + $0x108] sm:$0xff]  ;;  %v4692_v38 = vpack.c.bf16 %v3289_v31, %v3288_v24  ;;  %v5772_v31 = vld [vmem:[%s5345_s29 + $0x138] sm:$0xff] }
  0x51   : > { %3823 = vmatmul.mubr.f32.gmra.mrb[12].mxu1 %v5605_v19  ;;  %4549 = vmatprep.subr.bf16.mxu1 %v4548_v14  ;;  %v5714_v10 = vpack.c.bf16 %v3221_v51, %v3220_v50  ;;  %v3291_v50 = vld [vmem:[%s6649_s2 + $0x138] sm:$0xff]  ;;  %v5752_v51 = vld [vmem:[%s5345_s29 + $0x110] sm:$0xff]  ;;  %v3293_v24 = vld [vmem:[%s6649_s2 + $0x148] sm:$0xff] }
  0x52   : > { %4143 = vmatmul.mubr.f32.gmra.mrb[12].mxu0 %v5679_v25  ;;  %3825 = vmatprep.mubr.f32.mxu1 %v5636_v47 }
  0x53   : > { %4679 = vmatpush3.bf16.msra.mxu0 %v4676_v0  ;;  %4145 = vmatprep.mubr.f32.mxu0 %v5683_v37  ;;  %v3287_v0 = vld [vmem:[%s6649_s2 + $0x118] sm:$0xff] }
  0x54   : > { %4681 = vmatprep.subr.bf16.mxu0 %v4680_v43  ;;  %4551 = vmatpush3.bf16.msra.mxu1 %v4548_v14  ;;  %v5723_v14 = vld [vmem:[%s5345_s29 + $0xf0] sm:$0xff]  ;;  %v4688_v20 = vpack.c.bf16 %v3287_v0, %v3286_v6  ;;  %v3292_v0 = vld [vmem:[%s6649_s2 + $0x140] sm:$0xff] }
  0x55   : > { %3826 = vmatmul.mubr.f32.gmra.mrb[14].mxu1 %v5639_v49  ;;  %4553 = vmatprep.subr.bf16.mxu1 %v4552_v44  ;;  %v1191_v33 = vrot.slane %v5723_v14, 1 }
  0x56   : > { %4146 = vmatmul.mubr.f32.gmra.mrb[14].mxu0 %v5702_v54  ;;  %3828 = vmatprep.mubr.f32.mxu1 %v5705_v61 }
  0x57   : > { %4683 = vmatpush3.bf16.msra.mxu0 %v4680_v43  ;;  %4204 = vmatprep.mubr.f32.mxu0 %v5494_v18  ;;  %v5736_v43 = vld [vmem:[%s5345_s29 + $0xf8] sm:$0xff] }
  0x58   : > { %4685 = vmatprep.subr.bf16.mxu0 %v4684_v2  ;;  %4555 = vmatpush3.bf16.msra.mxu1 %v4552_v44  ;;  %v3290_v44 = vld [vmem:[%s6649_s2 + $0x130] sm:$0xff]  ;;  %v5870_v18 = vld [vmem:[%s5345_s29 + $0x118] sm:$0x3] }
  0x59   : > { %3829 = vmatmul.mubr.f32.gmra.mrb[16].mxu1 %v5719_v8  ;;  %4557 = vmatprep.subr.bf16.mxu1 %v5714_v10  ;;  %v4696_v6 = vpack.c.bf16 %v3291_v50, %v3290_v44  ;;  %v4700_v44 = vpack.c.bf16 %v3293_v24, %v3292_v0  ;;  %v3294_v50 = vld [vmem:[%s6649_s2 + $0x150] sm:$0xff]  ;;  %v3296_v24 = vld [vmem:[%s6649_s2 + $0x160] sm:$0xff]  ;;  %v1199_v12 = vrot.slane %v5870_v18, 1 }
  0x5a   : > { %4205 = vmatmul.mubr.f32.vlgmr.msra.gmra.mrb[0].mxu0 %v5514_v27  ;;  %3831 = vmatprep.mubr.f32.mxu1 %v5723_v14  ;;  %v4704_v0 = vpack.c.bf16 %v3295_v52, %v3294_v50  ;;  %v5806_v52 = vld [vmem:[%s5345_s29 + $0x168] sm:$0xff]  ;;  %v1186_v50 = vrot.slane %v5705_v61, 1  ;;  %v1197_v27 = vrot.slane %v5752_v51, 1 }
  0x5b   : > { %4687 = vmatpush3.bf16.msra.mxu0 %v4684_v2  ;;  %4207 = vmatprep.mubr.f32.mxu0 %v5519_v30  ;;  %v5756_v2 = vld [vmem:[%s5345_s29 + $0x120] sm:$0xff]  ;;  %v1196_v30 = vrot.slane %v5740_v34, 1 }
  0x5c   : > { %4689 = vmatprep.subr.bf16.mxu0 %v4688_v20 }
  0x5d   : > { %3832 = vmatmul.mubr.f32.gmra.mrb[18].mxu1 %v5736_v43  ;;  %v5895_v9 = vsel %vm1140_vm0, %v1196_v30, %v1197_v27  ;;  %v3224_v30 = vld [vmem:[%s6649_s2 + $0x320] sm:$0xff] }
  0x5e   : > { %4208 = vmatmul.mubr.f32.gmra.mrb[2].mxu0 %v5549_v45  ;;  %3834 = vmatprep.mubr.f32.mxu1 %v5740_v34  ;;  %6753 = vst [vmem:[#allocation37_spill] sm:$0xff] %v5895_v9 }
  0x5f   : > { %4210 = vmatprep.mubr.f32.mxu0 %v5553_v48  ;;  %4691 = vmatpush3.bf16.msra.mxu0 %v4688_v20  ;;  %v5768_v20 = vld [vmem:[%s5345_s29 + $0x128] sm:$0xff]  ;;  %v5841_v48 = vld [vmem:[%s5345_s29 + $0x100] sm:$0x3] }
  0x60   : > { %4693 = vmatprep.subr.bf16.mxu0 %v4692_v38  ;;  %6748 = vst [vmem:[#allocation32_spill] sm:$0xff] %v5841_v48  ;;  %v1194_v23 = vrot.slane %v5841_v48, 1  ;;  %v1202_v7 = vrot.slane %v5768_v20, 1 }
  0x61   : > { %3835 = vmatmul.mubr.f32.gmra.mrb[20].mxu1 %v5752_v51 }
  0x62   : > { %4211 = vmatmul.mubr.f32.gmra.mrb[4].mxu0 %v5583_v1  ;;  %3837 = vmatprep.mubr.f32.mxu1 %v5756_v2 }
  0x63   : > { %4213 = vmatprep.mubr.f32.mxu0 %v5587_v3  ;;  %4695 = vmatpush3.bf16.msra.mxu0 %v4692_v38  ;;  %v5788_v38 = vld [vmem:[%s5345_s29 + $0x150] sm:$0xff] }
  0x64   : > { %4697 = vmatprep.subr.bf16.mxu0 %v4696_v6  ;;  %v5828_v3 = vld [vmem:[%s5345_s29 + $0x170] sm:$0xff] }
  0x65   : > { %3838 = vmatmul.mubr.f32.gmra.mrb[22].mxu1 %v5768_v20 }
  0x66   : > { %4214 = vmatmul.mubr.f32.gmra.mrb[6].mxu0 %v5617_v28  ;;  %3840 = vmatprep.mubr.f32.mxu1 %v5772_v31  ;;  %v3297_v28 = vld [vmem:[%s6649_s2 + $0x168] sm:$0xff] }
  0x67   : > { %4216 = vmatprep.mubr.f32.mxu0 %v5621_v32  ;;  %4699 = vmatpush3.bf16.msra.mxu0 %v4696_v6  ;;  %v5802_v6 = vld [vmem:[%s5345_s29 + $0x158] sm:$0xff]  ;;  %v5816_v32 = vld [vmem:[%s5345_s29 + $0xe8] sm:$0x3]  ;;  %v4708_v40 = vpack.c.bf16 %v3297_v28, %v3296_v24  ;;  %v5832_v28 = vld [vmem:[%s5811_s6] sm:$0xff] }
  0x68   : > { %4701 = vmatprep.subr.bf16.mxu0 %v4700_v44  ;;  %6745 = vst [vmem:[#allocation29_spill] sm:$0xff] %v5816_v32  ;;  %6746 = vst [vmem:[#allocation30_spill] sm:$0xff] %v5832_v28  ;;  %v1189_v24 = vrot.slane %v5816_v32, 1  ;;  %v5902_v32 = vld [vmem:[%s5345_s29 + $0x130] sm:$0x3] }
  0x69   : > { %3841 = vmatmul.mubr.f32.gmra.mrb[24].mxu1 %v5784_v46 }
  0x6a   : > { %4217 = vmatmul.mubr.f32.gmra.mrb[8].mxu0 %v5651_v56  ;;  %3843 = vmatprep.mubr.f32.mxu1 %v5788_v38  ;;  %v1187_v56 = vrot.slane %v5719_v8, 1 }
  0x6b   : > { %4219 = vmatprep.mubr.f32.mxu0 %v5655_v62  ;;  %4703 = vmatpush3.bf16.msra.mxu0 %v4700_v44  ;;  %v3298_v44 = vld [vmem:[%s6649_s2 + $0x170] sm:$0xff]  ;;  %v3299_v62 = vld [vmem:[%s6649_s2 + $0x178] sm:$0xff] }
  0x6c   : > { %4705 = vmatprep.subr.bf16.mxu0 %v4704_v0  ;;  %v5836_v1 = vsel %vm1140_vm0, %v1186_v50, %v1187_v56  ;;  %v4712_v45 = vpack.c.bf16 %v3299_v62, %v3298_v44  ;;  %v5853_v50 = vld [vmem:[%s5811_s6 + $0x8] sm:$0xff]  ;;  %v5857_v62 = vsel %vm1140_vm0, %v1187_v56, %v1189_v24  ;;  %v5860_v44 = vld [vmem:[%s5345_s29] sm:$0xff] }
  0x6d   : > { %3844 = vmatmul.mubr.f32.gmra.mrb[26].mxu1 %v5802_v6  ;;  %6747 = vst [vmem:[#allocation31_spill] sm:$0xff] %v5836_v1  ;;  %6749 = vst [vmem:[#allocation33_spill] sm:$0xff] %v5853_v50  ;;  %v5876_v24 = vld [vmem:[%s5345_s29 + $0x8] sm:$0xff] }
  0x6e   : > { %4220 = vmatmul.mubr.f32.gmra.mrb[10].mxu0 %v5679_v25  ;;  %3846 = vmatprep.mubr.f32.mxu1 %v5806_v52  ;;  %v1192_v25 = vrot.slane %v5736_v43, 1  ;;  %6750 = vst [vmem:[#allocation34_spill] sm:$0xff] %v5857_v62 }
  0x6f   : > { %4222 = vmatprep.mubr.f32.mxu0 %v5683_v37  ;;  %4707 = vmatpush3.bf16.msra.mxu0 %v4704_v0  ;;  %v3300_v37 = vld [vmem:[%s6649_s2 + $0x280] sm:$0xff]  ;;  %v3301_v0 = vld [vmem:[%s6649_s2 + $0x288] sm:$0xff] }
  0x70   : > { %4709 = vmatprep.subr.bf16.mxu0 %v4708_v40  ;;  %v5867_v17 = vsel %vm1140_vm0, %v1191_v33, %v1192_v25  ;;  %v5872_v56 = vpack.c.bf16 %v3301_v0, %v3300_v37  ;;  %v5887_v33 = vld [vmem:[%s5345_s29 + $0x10] sm:$0x3]  ;;  %v1142_v37 = vrot.slane %v5876_v24, 1  ;;  %v5892_v0 = vsel %vm1140_vm0, %v1192_v25, %v1194_v23 }
  0x71   : > { %3847 = vmatmul.mubr.f32.gmra.mrb[28].mxu1 %v5828_v3  ;;  %6751 = vst [vmem:[#allocation35_spill] sm:$0xff] %v5867_v17  ;;  %6752 = vst [vmem:[#allocation36_spill] sm:$0xff] %v5892_v0  ;;  %v1144_v36 = vrot.slane %v5887_v33, 1  ;;  %v5923_v25 = vsel %vm1140_vm0, %v1197_v27, %v1199_v12  ;;  %v3226_v12 = vld [vmem:[%s6649_s2 + $0x330] sm:$0xff]  ;;  %v3227_v27 = vld [vmem:[%s6649_s2 + $0x338] sm:$0xff] }
  0x72   : > { %4223 = vmatmul.mubr.f32.gmra.mrb[12].mxu0 %v5702_v54  ;;  %3849 = vmatprep.mubr.f32.mxu1 %v5832_v28  ;;  %v1141_v54 = vrot.slane %v5860_v44, 1  ;;  %6756 = vst [vmem:[#allocation40_spill] sm:$0xff] %v5923_v25 }
  0x73   : > { %4225 = vmatprep.mubr.f32.mxu0 %v5836_v1  ;;  %4711 = vmatpush3.bf16.msra.mxu0 %v4708_v40  ;;  %v3222_v1 = vld [vmem:[%s6649_s2 + $0x310] sm:$0xff]  ;;  %v3223_v40 = vld [vmem:[%s6649_s2 + $0x318] sm:$0xff] }
  0x74   : > { %4713 = vmatprep.subr.bf16.mxu0 %v4712_v45  ;;  %v4560_v48 = vpack.c.bf16 %v3223_v40, %v3222_v1  ;;  %v5906_v23 = vsel %vm1140_vm0, %v1141_v54, %v1142_v37  ;;  %v5916_v1 = vsel %vm1140_vm0, %v1142_v37, %v1144_v36  ;;  %v1204_v54 = vrot.slane %v5902_v32, 1 }
  0x75   : > { %3850 = vmatmul.mubr.f32.gmra.mrb[30].mxu1 %v5853_v50  ;;  %6754 = vst [vmem:[#allocation38_spill] sm:$0xff] %v5906_v23  ;;  %6755 = vst [vmem:[#allocation39_spill] sm:$0xff] %v5916_v1  ;;  %v1206_v36 = vrot.slane %v5772_v31, 1  ;;  %v1207_v37 = vrot.slane %v5784_v46, 1  ;;  %v4568_v1 = vpack.c.bf16 %v3227_v27, %v3226_v12  ;;  %v1216_v27 = vrot.slane %v5806_v52, 1 }
  0x76   : > { %4226 = vmatmul.mubr.f32.gmra.mrb[14].mxu0 %v5857_v62  ;;  %3884 = vmatprep.mubr.f32.mxu1 %v5860_v44  ;;  %v1201_v62 = vrot.slane %v5756_v2, 1  ;;  %v5976_v23 = vld [vmem:[%s5345_s29 + $0x178] sm:$0x3] }
  0x77   : > { %4228 = vmatprep.mubr.f32.mxu0 %v5867_v17  ;;  %4715 = vmatpush3.bf16.msra.mxu0 %v4712_v45  ;;  %v3225_v45 = vld [vmem:[%s6649_s2 + $0x328] sm:$0xff]  ;;  %v1212_v17 = vrot.slane %v5802_v6, 1  ;;  %6763 = vst [vmem:[#allocation47_spill] sm:$0xff] %v5976_v23 }
  0x78   : > { %4717 = vmatprep.subr.bf16.mxu0 %v5872_v56  ;;  %v5927_v40 = vsel %vm1140_vm0, %v1201_v62, %v1202_v7  ;;  %v5945_v62 = vsel %vm1140_vm0, %v1202_v7, %v1204_v54  ;;  %v3228_v7 = vld [vmem:[%s6649_s2 + $0x340] sm:$0xff] }
  0x79   : > { %3885 = vmatmul.mubr.f32.vlgmr.msra.gmra.mrb[0].mxu1 %v5876_v24  ;;  %6757 = vst [vmem:[#allocation41_spill] sm:$0xff] %v5927_v40  ;;  %6758 = vst [vmem:[#allocation42_spill] sm:$0xff] %v5945_v62 }
  0x7a   : > { %4229 = vmatmul.mubr.f32.gmra.mrb[16].mxu0 %v5892_v0  ;;  %4559 = vmatpush3.bf16.msra.mxu1 %v5714_v10  ;;  %v5932_v0 = vld [vmem:[%s5345_s29 + $0x148] sm:$0x3]  ;;  %v4564_v10 = vpack.c.bf16 %v3225_v45, %v3224_v30  ;;  %v5949_v45 = vsel %vm1140_vm0, %v1206_v36, %v1207_v37 }
  0x7b   : > { %3887 = vmatprep.mubr.f32.mxu1 %v5358_v26  ;;  %4231 = vmatprep.mubr.f32.mxu0 %v5895_v9  ;;  %v1209_v30 = vrot.slane %v5932_v0, 1  ;;  %6759 = vst [vmem:[#allocation43_spill] sm:$0xff] %v5949_v45  ;;  %v1211_v9 = vrot.slane %v5788_v38, 1 }
  0x7c   : > { %4561 = vmatprep.subr.bf16.mxu1 %v4560_v48 }
  0x7d   : > { %3888 = vmatmul.mubr.f32.gmra.mrb[2].mxu1 %v5368_v29  ;;  %v5967_v54 = vsel %vm1140_vm0, %v1207_v37, %v1209_v30  ;;  %v5971_v12 = vsel %vm1140_vm0, %v1211_v9, %v1212_v17  ;;  %v3230_v37 = vld [vmem:[%s6649_s2 + $0x350] sm:$0xff]  ;;  %v3231_v9 = vld [vmem:[%s6649_s2 + $0x358] sm:$0xff]  ;;  %v1219_v30 = vrot.slane %v5976_v23, 1  ;;  %v6026_v23 = vld [vmem:[%s5811_s6 + $0x28] sm:$0x3] }
  0x7e   : > { %4232 = vmatmul.mubr.f32.gmra.mrb[18].mxu0 %v5923_v25  ;;  %3890 = vmatprep.mubr.f32.mxu1 %v5446_v58  ;;  %v5954_v25 = vld [vmem:[%s5345_s29 + $0x160] sm:$0x3]  ;;  %6761 = vst [vmem:[#allocation45_spill] sm:$0xff] %v5967_v54  ;;  %6762 = vst [vmem:[#allocation46_spill] sm:$0xff] %v5971_v12 }
  0x7f   : > { %4234 = vmatprep.mubr.f32.mxu0 %v5927_v40  ;;  %4563 = vmatpush3.bf16.msra.mxu1 %v4560_v48  ;;  %6760 = vst [vmem:[#allocation44_spill] sm:$0xff] %v5954_v25  ;;  %v3229_v48 = vld [vmem:[%s6649_s2 + $0x348] sm:$0xff]  ;;  %v1214_v36 = vrot.slane %v5954_v25, 1  ;;  %v1217_v40 = vrot.slane %v5828_v3, 1  ;;  %v5998_v25 = vld [vmem:[%s5811_s6 + $0x10] sm:$0x3] }
  0x80   : > { %4565 = vmatprep.subr.bf16.mxu1 %v4564_v10  ;;  %6766 = vst [vmem:[#allocation50_spill] sm:$0xff] %v5998_v25 }
  0x81   : > { %3891 = vmatmul.mubr.f32.gmra.mrb[4].mxu1 %v5449_v59 }
  0x82   : > { %4235 = vmatmul.mubr.f32.gmra.mrb[20].mxu0 %v5945_v62  ;;  %3893 = vmatprep.mubr.f32.mxu1 %v5466_v4  ;;  %v4572_v62 = vpack.c.bf16 %v3229_v48, %v3228_v7  ;;  %v5993_v7 = vsel %vm1140_vm0, %v1216_v27, %v1217_v40  ;;  %v1530_v48 = vrot.slane %v5832_v28, 1  ;;  %v6017_v27 = vsel %vm1140_vm0, %v1217_v40, %v1219_v30  ;;  %v3234_v40 = vld [vmem:[%s6649_s2 + $0x370] sm:$0xff] }
  0x83   : > { %4237 = vmatprep.mubr.f32.mxu0 %v5949_v45  ;;  %4567 = vmatpush3.bf16.msra.mxu1 %v4564_v10  ;;  %v5989_v10 = vsel %vm1140_vm0, %v1212_v17, %v1214_v36  ;;  %6765 = vst [vmem:[#allocation49_spill] sm:$0xff] %v5993_v7  ;;  %v1531_v45 = vrot.slane %v5853_v50, 1  ;;  %v6005_v17 = vld [vmem:[%s5811_s6 + $0x20] sm:$0xff]  ;;  %v3233_v36 = vld [vmem:[%s6649_s2 + $0x368] sm:$0xff] }
  0x84   : > { %4569 = vmatprep.subr.bf16.mxu1 %v4568_v1  ;;  %6764 = vst [vmem:[#allocation48_spill] sm:$0xff] %v5989_v10  ;;  %v1815_v28 = vrot.slane %v6005_v17, 1 }
  0x85   : > { %3894 = vmatmul.mubr.f32.gmra.mrb[6].mxu1 %v5469_v5 }
  0x86   : > { %4238 = vmatmul.mubr.f32.gmra.mrb[22].mxu0 %v5967_v54  ;;  %3896 = vmatprep.mubr.f32.mxu1 %v5500_v21  ;;  %v6001_v54 = vld [vmem:[%s5811_s6 + $0x18] sm:$0xff]  ;;  %s6593_s6 = scalar_lea.hbm %s6650_s3, %s3339_s10 }
  0x87   : > { %4240 = vmatprep.mubr.f32.mxu0 %v5971_v12  ;;  %4571 = vmatpush3.bf16.msra.mxu1 %v4568_v1  ;;  %v4576_v12 = vpack.c.bf16 %v3231_v9, %v3230_v37  ;;  %v3232_v1 = vld [vmem:[%s6649_s2 + $0x360] sm:$0xff]  ;;  %v1533_v37 = vrot.slane %v5998_v25, 1  ;;  %v6021_v9 = vsel %vm1140_vm0, %v1530_v48, %v1531_v45  ;;  %v1814_v50 = vrot.slane %v6001_v54, 1 }
  0x88   : > { %4573 = vmatprep.subr.bf16.mxu1 %v4572_v62  ;;  %6767 = vst [vmem:[#allocation51_spill] sm:$0xff] %v6021_v9  ;;  %v1817_v48 = vrot.slane %v6026_v23, 1 }
  0x89   : > { %3897 = vmatmul.mubr.f32.gmra.mrb[8].mxu1 %v5503_v22  ;;  %v6039_v30 = vsel %vm1140_vm0, %v1531_v45, %v1533_v37  ;;  %v3237_v45 = vld [vmem:[%s6649_s2 + $0x88] sm:$0xff]  ;;  %v2102_v37 = vrot.slane %v5368_v29, 2  ;;  %v2104_v29 = vrot.slane %v5437_v55, 2 }
  0x8a   : > { %4241 = vmatmul.mubr.f32.gmra.mrb[24].mxu0 %v5989_v10  ;;  %3899 = vmatprep.mubr.f32.mxu1 %v5534_v39  ;;  %v4580_v10 = vpack.c.bf16 %v3233_v36, %v3232_v1  ;;  %v2096_v1 = vrot.slane %v5860_v44, 2  ;;  %v1816_v36 = vsel %vm1140_vm0, %v1814_v50, %v1815_v28  ;;  %v1818_v50 = vsel %vm1140_vm0, %v1815_v28, %v1817_v48  ;;  %v3303_v28 = vld [vmem:[%s6649_s2 + $0x298] sm:$0xff]  ;;  %v3305_v55 = vld [vmem:[%s6649_s2 + $0x2a8] sm:$0xff] }
  0x8b   : > { %4243 = vmatprep.mubr.f32.mxu0 %v5993_v7  ;;  %4575 = vmatpush3.bf16.msra.mxu1 %v4572_v62  ;;  %v3235_v62 = vld [vmem:[%s6649_s2 + $0x378] sm:$0xff]  ;;  %v2097_v7 = vrot.slane %v5876_v24, 2  ;;  %v2099_v44 = vrot.slane %v5887_v33, 2 }
  0x8c   : > { %4577 = vmatprep.subr.bf16.mxu1 %v4576_v12  ;;  %v4584_v25 = vpack.c.bf16 %v3235_v62, %v3234_v40  ;;  %v3302_v62 = vld [vmem:[%s6649_s2 + $0x290] sm:$0xff] }
  0x8d   : > { %3900 = vmatmul.mubr.f32.gmra.mrb[10].mxu1 %v5537_v41  ;;  %v2098_v24 = vsel %vm2095_vm1, %v2096_v1, %v2097_v7  ;;  %v4720_v48 = vpack.c.bf16 %v3303_v28, %v3302_v62  ;;  %v3304_v1 = vld [vmem:[%s6649_s2 + $0x2a0] sm:$0xff]  ;;  %v3309_v62 = vld [vmem:[%s6649_s2 + $0x2c8] sm:$0xff]  ;;  %v2121_v28 = vrot.slane %v5534_v39, 2 }
  0x8e   : > { %4244 = vmatmul.mubr.f32.gmra.mrb[26].mxu0 %v6017_v27  ;;  %3902 = vmatprep.mubr.f32.mxu1 %v5568_v57 }
  0x8f   : > { %4246 = vmatprep.mubr.f32.mxu0 %v6021_v9  ;;  %4579 = vmatpush3.bf16.msra.mxu1 %v4576_v12  ;;  %v3236_v9 = vld [vmem:[%s6649_s2 + $0x80] sm:$0xff]  ;;  %v2101_v12 = vrot.slane %v5358_v26, 2  ;;  %v2100_v26 = vsel %vm2095_vm1, %v2097_v7, %v2099_v44  ;;  %v2111_v7 = vrot.slane %v5466_v4, 2  ;;  %v2114_v4 = vrot.slane %v5487_v15, 2 }
  0x90   : > { %4581 = vmatprep.subr.bf16.mxu1 %v4580_v10  ;;  %v6059_v40 = vpack.c.bf16 %v3237_v45, %v3236_v9  ;;  %v2107_v9 = vrot.slane %v5449_v59, 2  ;;  %v2109_v59 = vrot.slane %v5455_v63, 2  ;;  %v4724_v45 = vpack.c.bf16 %v3305_v55, %v3304_v1 }
  0x91   : > { %3903 = vmatmul.mubr.f32.gmra.mrb[12].mxu1 %v5571_v60  ;;  %v6072_v33 = vsel %vm2095_vm1, %v2101_v12, %v2102_v37  ;;  %v2116_v44 = vrot.slane %v5500_v21, 2  ;;  %v2119_v21 = vrot.slane %v5524_v35, 2  ;;  %v3311_v35 = vld [vmem:[%s6649_s2 + $0x2d8] sm:$0xff]  ;;  %v2126_v1 = vrot.slane %v5568_v57, 2 }
  0x92   : > { %4247 = vmatmul.mubr.f32.gmra.mrb[28].mxu0 %v6039_v30  ;;  %3905 = vmatprep.mubr.f32.mxu1 %v5602_v16  ;;  %v6107_v63 = vsel %vm2095_vm1, %v2107_v9, %v2109_v59  ;;  %v2127_v55 = vrot.slane %v5571_v60, 2 }
  0x93   : > { %4249 = vmatprep.mubr.f32.mxu0 %v1816_v36  ;;  %4583 = vmatpush3.bf16.msra.mxu1 %v4580_v10  ;;  %v2106_v10 = vrot.slane %v5446_v58, 2  ;;  %v6088_v58 = vsel %vm2095_vm1, %v2102_v37, %v2104_v29  ;;  %v2112_v36 = vrot.slane %v5469_v5, 2  ;;  %v3308_v37 = vld [vmem:[%s6649_s2 + $0x2c0] sm:$0xff] }
  0x94   : > { %4585 = vmatprep.subr.bf16.mxu1 %v4584_v25  ;;  %v4732_v29 = vpack.c.bf16 %v3309_v62, %v3308_v37  ;;  %v2136_v62 = vrot.slane %v5636_v47, 2 }
  0x95   : > { %3906 = vmatmul.mubr.f32.gmra.mrb[14].mxu1 %v5605_v19  ;;  %v6111_v5 = vsel %vm2095_vm1, %v2111_v7, %v2112_v36  ;;  %v6126_v15 = vsel %vm2095_vm1, %v2112_v36, %v2114_v4  ;;  %v3312_v7 = vld [vmem:[%s6649_s2 + $0x2e0] sm:$0xff]  ;;  %v2129_v36 = vrot.slane %v5592_v11, 2  ;;  %v3315_v11 = vld [vmem:[%s6649_s2 + $0x2f8] sm:$0xff] }
  0x96   : > { %4250 = vmatmul.mubr.f32.gmra.mrb[30].mxu0 %v1818_v50  ;;  %3908 = vmatprep.mubr.f32.mxu1 %v5636_v47  ;;  %v3307_v50 = vld [vmem:[%s6649_s2 + $0x2b8] sm:$0xff] }
  0x97   : > { %4284 = vmatprep.mubr.f32.mxu0 %v2098_v24  ;;  %4587 = vmatpush3.bf16.msra.mxu1 %v4584_v25  ;;  %v6092_v25 = vsel %vm2095_vm1, %v2106_v10, %v2107_v9  ;;  %v2117_v24 = vrot.slane %v5503_v22, 2  ;;  %v3310_v10 = vld [vmem:[%s6649_s2 + $0x2d0] sm:$0xff]  ;;  %v2124_v9 = vrot.slane %v5558_v53, 2  ;;  %v3313_v53 = vld [vmem:[%s6649_s2 + $0x2e8] sm:$0xff] }
  0x98   : > { %4589 = vmatprep.subr.bf16.mxu1 %v6059_v40  ;;  %v4736_v59 = vpack.c.bf16 %v3311_v35, %v3310_v10  ;;  %v4740_v4 = vpack.c.bf16 %v3313_v53, %v3312_v7  ;;  %v2139_v10 = vrot.slane %v5660_v13, 2  ;;  %v3239_v13 = vld [vmem:[%s6649_s2 + $0x98] sm:$0xff]  ;;  %v5112_v7 = vld [vmem:[%s5345_s29 + $0x30] sm:$0xff] }
  0x99   : > { %3909 = vmatmul.mubr.f32.gmra.mrb[16].mxu1 %v5639_v49  ;;  %v6130_v22 = vsel %vm2095_vm1, %v2116_v44, %v2117_v24  ;;  %v3314_v44 = vld [vmem:[%s6649_s2 + $0x2f0] sm:$0xff] }
  0x9a   : > { %4285 = vmatmul.mubr.f32.vlgmr.msra.gmra.mrb[0].mxu0 %v2100_v26  ;;  %3911 = vmatprep.mubr.f32.mxu1 %v5705_v61  ;;  %v2122_v26 = vrot.slane %v5537_v41, 2  ;;  %v6145_v41 = vsel %vm2095_vm1, %v2117_v24, %v2119_v21  ;;  %v6183_v24 = vsel %vm2095_vm1, %v2127_v55, %v2129_v36  ;;  %v2137_v21 = vrot.slane %v5639_v49, 2  ;;  %v6768_v36 = vld [vmem:[#allocation29_spill] sm:$0xff] }
  0x9b   : > { %4719 = vmatpush3.bf16.msra.mxu0 %v5872_v56  ;;  %4287 = vmatprep.mubr.f32.mxu0 %v6072_v33  ;;  %v3306_v56 = vld [vmem:[%s6649_s2 + $0x2b0] sm:$0xff] }
  0x9c   : > { %4721 = vmatprep.subr.bf16.mxu0 %v4720_v48  ;;  %v4728_v12 = vpack.c.bf16 %v3307_v50, %v3306_v56  ;;  %v6164_v60 = vsel %vm2095_vm1, %v2122_v26, %v2124_v9  ;;  %v2131_v56 = vrot.slane %v5602_v16, 2  ;;  %v2132_v50 = vrot.slane %v5605_v19, 2 }
  0x9d   : > { %3912 = vmatmul.mubr.f32.gmra.mrb[18].mxu1 %v5719_v8  ;;  %v6206_v35 = vsel %vm2095_vm1, %v2136_v62, %v2137_v21  ;;  %v2141_v9 = vrot.slane %v5705_v61, 2  ;;  %v6223_v53 = vsel %vm2095_vm1, %v2137_v21, %v2139_v10  ;;  %v3240_v62 = vld [vmem:[%s6649_s2 + $0xa0] sm:$0xff]  ;;  %v3241_v21 = vld [vmem:[%s6649_s2 + $0xa8] sm:$0xff] }
  0x9e   : > { %4288 = vmatmul.mubr.f32.gmra.mrb[2].mxu0 %v6088_v58  ;;  %3914 = vmatprep.mubr.f32.mxu1 %v5723_v14  ;;  %v6187_v37 = vsel %vm2095_vm1, %v2131_v56, %v2132_v50  ;;  %v2144_v56 = vrot.slane %v6768_v36, 2  ;;  %v3242_v36 = vld [vmem:[%s6649_s2 + $0xb0] sm:$0xff] }
  0x9f   : > { %4290 = vmatprep.mubr.f32.mxu0 %v6092_v25  ;;  %4723 = vmatpush3.bf16.msra.mxu0 %v4720_v48  ;;  %v6149_v48 = vsel %vm2095_vm1, %v2121_v28, %v2122_v26  ;;  %v4744_v28 = vpack.c.bf16 %v3315_v11, %v3314_v44  ;;  %v3316_v26 = vld [vmem:[%s6649_s2 + $0x400] sm:$0xff]  ;;  %v2147_v44 = vrot.slane %v5736_v43, 2 }
  0xa0   : > { %4725 = vmatprep.subr.bf16.mxu0 %v4724_v45 }
  0xa1   : > { %3915 = vmatmul.mubr.f32.gmra.mrb[20].mxu1 %v5736_v43 }
  0xa2   : > { %4291 = vmatmul.mubr.f32.gmra.mrb[4].mxu0 %v6107_v63  ;;  %3917 = vmatprep.mubr.f32.mxu1 %v5740_v34 }
  0xa3   : > { %4293 = vmatprep.mubr.f32.mxu0 %v6111_v5  ;;  %4727 = vmatpush3.bf16.msra.mxu0 %v4724_v45  ;;  %v6168_v45 = vsel %vm2095_vm1, %v2126_v1, %v2127_v55  ;;  %v2142_v1 = vrot.slane %v5719_v8, 2 }
  0xa4   : > { %4729 = vmatprep.subr.bf16.mxu0 %v4728_v12 }
  0xa5   : > { %3918 = vmatmul.mubr.f32.gmra.mrb[22].mxu1 %v5752_v51 }
  0xa6   : > { %4294 = vmatmul.mubr.f32.gmra.mrb[6].mxu0 %v6126_v15  ;;  %3920 = vmatprep.mubr.f32.mxu1 %v5756_v2 }
  0xa7   : > { %4296 = vmatprep.mubr.f32.mxu0 %v6130_v22  ;;  %4731 = vmatpush3.bf16.msra.mxu0 %v4728_v12  ;;  %v2134_v12 = vrot.slane %v5626_v42, 2  ;;  %v3317_v42 = vld [vmem:[%s6649_s2 + $0x408] sm:$0xff] }
  0xa8   : > { %4733 = vmatprep.subr.bf16.mxu0 %v4732_v29  ;;  %v6210_v55 = vpack.c.bf16 %v3317_v42, %v3316_v26  ;;  %v6244_v26 = vsel %vm2095_vm1, %v2142_v1, %v2144_v56  ;;  %v6769_v42 = vld [vmem:[#allocation32_spill] sm:$0xff]  ;;  %v5116_v56 = vld [vmem:[%s5345_s29 + $0x60] sm:$0xff] }
  0xa9   : > { %3921 = vmatmul.mubr.f32.gmra.mrb[24].mxu1 %v5768_v20  ;;  %v2149_v10 = vrot.slane %v6769_v42, 2 }
  0xaa   : > { %4297 = vmatmul.mubr.f32.gmra.mrb[8].mxu0 %v6145_v41  ;;  %3923 = vmatprep.mubr.f32.mxu1 %v5772_v31 }
  0xab   : > { %4299 = vmatprep.mubr.f32.mxu0 %v6149_v48  ;;  %4735 = vmatpush3.bf16.msra.mxu0 %v4732_v29  ;;  %v6202_v29 = vsel %vm2095_vm1, %v2132_v50, %v2134_v12  ;;  %v6227_v50 = vsel %vm2095_vm1, %v2141_v9, %v2142_v1  ;;  %v5113_v12 = vld [vmem:[%s5345_s29 + $0x38] sm:$0xff] }
  0xac   : > { %4737 = vmatprep.subr.bf16.mxu0 %v4736_v59  ;;  %v3243_v1 = vld [vmem:[%s6649_s2 + $0xb8] sm:$0xff] }
  0xad   : > { %3924 = vmatmul.mubr.f32.gmra.mrb[26].mxu1 %v5784_v46  ;;  %v4600_v42 = vpack.c.bf16 %v3243_v1, %v3242_v36  ;;  %v2161_v36 = vrot.slane %v5772_v31, 2  ;;  %v2162_v1 = vrot.slane %v5784_v46, 2 }
  0xae   : > { %4300 = vmatmul.mubr.f32.gmra.mrb[10].mxu0 %v6164_v60  ;;  %3926 = vmatprep.mubr.f32.mxu1 %v5788_v38 }
  0xaf   : > { %4302 = vmatprep.mubr.f32.mxu0 %v6168_v45  ;;  %4739 = vmatpush3.bf16.msra.mxu0 %v4736_v59  ;;  %v3238_v59 = vld [vmem:[%s6649_s2 + $0x90] sm:$0xff] }
  0xb0   : > { %4741 = vmatprep.subr.bf16.mxu0 %v4740_v4  ;;  %v4592_v11 = vpack.c.bf16 %v3239_v13, %v3238_v59  ;;  %v2151_v59 = vrot.slane %v5740_v34, 2  ;;  %v2152_v13 = vrot.slane %v5752_v51, 2 }
  0xb1   : > { %3927 = vmatmul.mubr.f32.gmra.mrb[28].mxu1 %v5802_v6 }
  0xb2   : > { %4303 = vmatmul.mubr.f32.gmra.mrb[12].mxu0 %v6183_v24  ;;  %3929 = vmatprep.mubr.f32.mxu1 %v5806_v52 }
  0xb3   : > { %4305 = vmatprep.mubr.f32.mxu0 %v6187_v37  ;;  %4743 = vmatpush3.bf16.msra.mxu0 %v4740_v4  ;;  %v2146_v4 = vrot.slane %v5723_v14, 2 }
  0xb4   : > { %4745 = vmatprep.subr.bf16.mxu0 %v4744_v28 }
  0xb5   : > { %3930 = vmatmul.mubr.f32.gmra.mrb[30].mxu1 %v5828_v3  ;;  %v6248_v9 = vsel %vm2095_vm1, %v2146_v4, %v2147_v44  ;;  %v6263_v4 = vsel %vm2095_vm1, %v2147_v44, %v2149_v10  ;;  %v3244_v44 = vld [vmem:[%s6649_s2 + $0xc0] sm:$0xff]  ;;  %v2159_v10 = vrot.slane %v5902_v32, 2  ;;  %v3247_v32 = vld [vmem:[%s6649_s2 + $0xd8] sm:$0xff] }
  0xb6   : > { %4306 = vmatmul.mubr.f32.gmra.mrb[14].mxu0 %v6202_v29  ;;  %3964 = vmatprep.mubr.f32.mxu1 %v5112_v7  ;;  %v4596_v7 = vpack.c.bf16 %v3241_v21, %v3240_v62  ;;  %v6267_v62 = vsel %vm2095_vm1, %v2151_v59, %v2152_v13  ;;  %v2156_v21 = vrot.slane %v5756_v2, 2 }
  0xb7   : > { %4308 = vmatprep.mubr.f32.mxu0 %v6206_v35  ;;  %4747 = vmatpush3.bf16.msra.mxu0 %v4744_v28  ;;  %v5114_v28 = vld [vmem:[%s5345_s29 + $0x48] sm:$0xff] }
  0xb8   : > { %4749 = vmatprep.subr.bf16.mxu0 %v6210_v55 }
  0xb9   : > { %3965 = vmatmul.mubr.f32.vlgmr.msra.gmra.mrb[0].mxu1 %v5113_v12  ;;  %v2154_v12 = vrot.slane %v5870_v18, 2  ;;  %v3245_v18 = vld [vmem:[%s6649_s2 + $0xc8] sm:$0xff] }
  0xba   : > { %4309 = vmatmul.mubr.f32.gmra.mrb[16].mxu0 %v6223_v53  ;;  %4591 = vmatpush3.bf16.msra.mxu1 %v6059_v40  ;;  %v5115_v40 = vld [vmem:[%s5345_s29 + $0x50] sm:$0xff] }
  0xbb   : > { %3967 = vmatprep.mubr.f32.mxu1 %v5114_v28  ;;  %4311 = vmatprep.mubr.f32.mxu0 %v6227_v50  ;;  %v2157_v28 = vrot.slane %v5768_v20, 2 }
  0xbc   : > { %4593 = vmatprep.subr.bf16.mxu1 %v4592_v11 }
  0xbd   : > { %3968 = vmatmul.mubr.f32.gmra.mrb[2].mxu1 %v5115_v40  ;;  %v5117_v40 = vld [vmem:[%s5345_s29 + $0x68] sm:$0xff]  ;;  %v6286_v59 = vsel %vm2095_vm1, %v2156_v21, %v2157_v28  ;;  %v2166_v21 = vrot.slane %v5788_v38, 2 }
  0xbe   : > { %4312 = vmatmul.mubr.f32.gmra.mrb[18].mxu0 %v6244_v26  ;;  %3970 = vmatprep.mubr.f32.mxu1 %v5116_v56  ;;  %v4604_v56 = vpack.c.bf16 %v3245_v18, %v3244_v44  ;;  %v2167_v44 = vrot.slane %v5802_v6, 2 }
  0xbf   : > { %4314 = vmatprep.mubr.f32.mxu0 %v6248_v9  ;;  %4595 = vmatpush3.bf16.msra.mxu1 %v4592_v11  ;;  %v6282_v11 = vsel %vm2095_vm1, %v2152_v13, %v2154_v12  ;;  %v6301_v13 = vsel %vm2095_vm1, %v2157_v28, %v2159_v10  ;;  %v6305_v12 = vsel %vm2095_vm1, %v2161_v36, %v2162_v1 }
  0xc0   : > { %4597 = vmatprep.subr.bf16.mxu1 %v4596_v7  ;;  %v6324_v36 = vsel %vm2095_vm1, %v2166_v21, %v2167_v44 }
  0xc1   : > { %3971 = vmatmul.mubr.f32.gmra.mrb[4].mxu1 %v5117_v40  ;;  %v5118_v40 = vld [vmem:[%s5345_s29 + $0x80] sm:$0xff] }
  0xc2   : > { %4315 = vmatmul.mubr.f32.gmra.mrb[20].mxu0 %v6263_v4  ;;  %3973 = vmatprep.mubr.f32.mxu1 %v5534_v39  ;;  %v3246_v39 = vld [vmem:[%s6649_s2 + $0xd0] sm:$0xff] }
  0xc3   : > { %4317 = vmatprep.mubr.f32.mxu0 %v6267_v62  ;;  %4599 = vmatpush3.bf16.msra.mxu1 %v4596_v7  ;;  %v2164_v7 = vrot.slane %v5932_v0, 2  ;;  %v4608_v18 = vpack.c.bf16 %v3247_v32, %v3246_v39  ;;  %v3249_v0 = vld [vmem:[%s6649_s2 + $0xe8] sm:$0xff]  ;;  %v2171_v39 = vrot.slane %v5806_v52, 2  ;;  %v2172_v32 = vrot.slane %v5828_v3, 2 }
  0xc4   : > { %4601 = vmatprep.subr.bf16.mxu1 %v4600_v42 }
  0xc5   : > { %3974 = vmatmul.mubr.f32.gmra.mrb[6].mxu1 %v5118_v40  ;;  %v5119_v40 = vld [vmem:[%s5345_s29 + $0x98] sm:$0xff]  ;;  %v6320_v28 = vsel %vm2095_vm1, %v2162_v1, %v2164_v7  ;;  %v6771_v7 = vld [vmem:[#allocation47_spill] sm:$0xff]  ;;  %s6556_s29 = scalar_lea.vmem [#allocation2], %s3201_s9 }
  0xc6   : > { %4318 = vmatmul.mubr.f32.gmra.mrb[22].mxu0 %v6282_v11  ;;  %3976 = vmatprep.mubr.f32.mxu1 %v5568_v57  ;;  %v3248_v57 = vld [vmem:[%s6649_s2 + $0xe0] sm:$0xff]  ;;  %v3251_v1 = vld [vmem:[%s6649_s2 + $0xf8] sm:$0xff]  ;;  %v2174_v21 = vrot.slane %v6771_v7, 2  ;;  %v6779_v7 = vld [vmem:[#allocation14_spill] sm:$0xff]  ;;  %s3093_s11 = sshll.u32 %s6556_s29, 4  ;;  %s6595_s11 = int_to_ptr.vmem [resolvable:$true] %s3093_s11 }
  0xc7   : > { %4320 = vmatprep.mubr.f32.mxu0 %v6286_v59  ;;  %4603 = vmatpush3.bf16.msra.mxu1 %v4600_v42  ;;  %v6770_v42 = vld [vmem:[#allocation44_spill] sm:$0xff]  ;;  %s5120_s21 = scalar_lea.vmem %s6595_s11, 4096  ;;  %p5127_p1 = scmp.lt.s32.totalorder %s6595_s11, %s5125_s26 }
  0xc8   : > { %4605 = vmatprep.subr.bf16.mxu1 %v4604_v56  ;;  %v2169_v10 = vrot.slane %v6770_v42, 2  ;;  %v3329_v42 = vld [vmem:[%s6649_s2 + $0x468] sm:$0xff]  ;;  %p5121_p12 = scmp.ne.s32.totalorder %s6595_s11, %s5120_s21  ;;  %p5128_p2 = scmp.lt.s32.totalorder %s5126_s28, %s5120_s21 }
  0xc9   : > { %3977 = vmatmul.mubr.f32.gmra.mrb[8].mxu1 %v5119_v40  ;;  %v4612_v40 = vpack.c.bf16 %v3249_v0, %v3248_v57  ;;  %v3321_v0 = vld [vmem:[%s6649_s2 + $0x428] sm:$0xff] }
  0xca   : > { %4321 = vmatmul.mubr.f32.gmra.mrb[24].mxu0 %v6301_v13  ;;  %3979 = vmatprep.mubr.f32.mxu1 %v5602_v16  ;;  %v3250_v16 = vld [vmem:[%s6649_s2 + $0xf0] sm:$0xff]  ;;  %p5122_p13 = pnand %p5121_p12, %p5263_p4  ;;  %p5129_p3 = por %p5128_p2, %p5127_p1 }
  0xcb   : > { %4323 = vmatprep.mubr.f32.mxu0 %v6305_v12  ;;  %4607 = vmatpush3.bf16.msra.mxu1 %v4604_v56  ;;  %v6339_v56 = vsel %vm2095_vm1, %v2167_v44, %v2169_v10  ;;  %v4616_v57 = vpack.c.bf16 %v3251_v1, %v3250_v16  ;;  %v3318_v44 = vld [vmem:[%s6649_s2 + $0x410] sm:$0xff]  ;;  %v3331_v10 = vld [vmem:[%s6649_s2 + $0x478] sm:$0xff]  ;;  %v6777_v16 = vld [vmem:[#allocation10_spill] sm:$0xff] }
  0xcc   : > { %4609 = vmatprep.subr.bf16.mxu1 %v4608_v18  ;;  %v6778_v1 = vld [vmem:[#allocation6_spill] sm:$0xff]  ;;  %p5123_p0 = pneg %p5122_p13 }
  0xcd   : > { %3980 = vmatmul.mubr.f32.gmra.mrb[10].mxu1 %v5605_v19  ;;  %v6343_v19 = vsel %vm2095_vm1, %v2171_v39, %v2172_v32  ;;  %v6773_v39 = vld [vmem:[#allocation30_spill] sm:$0xff] }
  0xce   : > { %4324 = vmatmul.mubr.f32.gmra.mrb[26].mxu0 %v6320_v28  ;;  %3982 = vmatprep.mubr.f32.mxu1 %v5636_v47  ;;  %v6350_v47 = vsel %vm2095_vm1, %v2172_v32, %v2174_v21  ;;  %v6774_v32 = vld [vmem:[#allocation33_spill] sm:$0xff]  ;;  %v6780_v21 = vld [vmem:[#allocation15_spill] sm:$0xff]  ;;  %p5130_p5 = pnand %p5129_p3, %p5123_p0 }
  0xcf   : > { %4326 = vmatprep.mubr.f32.mxu0 %v6324_v36  ;;  %4611 = vmatpush3.bf16.msra.mxu1 %v4608_v18  ;;  %v6772_v18 = vld [vmem:[#allocation5_spill] sm:$0xff] }
  0xd0   : > { %4613 = vmatprep.subr.bf16.mxu1 %v4612_v40 }
  0xd1   : > { %3983 = vmatmul.mubr.f32.gmra.mrb[12].mxu1 %v5639_v49  ;;  %v3319_v49 = vld [vmem:[%s6649_s2 + $0x418] sm:$0xff] }
  0xd2   : > { %4327 = vmatmul.mubr.f32.gmra.mrb[28].mxu0 %v6339_v56  ;;  %3985 = vmatprep.mubr.f32.mxu1 %v5705_v61  ;;  %v4752_v61 = vpack.c.bf16 %v3319_v49, %v3318_v44  ;;  %v6782_v44 = vld [vmem:[#allocation16_spill] sm:$0xff]  ;;  %v6783_v49 = vld [vmem:[#allocation17_spill] sm:$0xff] }
  0xd3   : > { %4329 = vmatprep.mubr.f32.mxu0 %v6343_v19  ;;  %4615 = vmatpush3.bf16.msra.mxu1 %v4612_v40  ;;  %v6776_v40 = vld [vmem:[#allocation39_spill] sm:$0xff] }
  0xd4   : > { %4617 = vmatprep.subr.bf16.mxu1 %v4616_v57 }
  0xd5   : > { %3986 = vmatmul.mubr.f32.gmra.mrb[14].mxu1 %v5719_v8  ;;  %v3320_v8 = vld [vmem:[%s6649_s2 + $0x420] sm:$0xff] }
  0xd6   : > { %4330 = vmatmul.mubr.f32.gmra.mrb[30].mxu0 %v6350_v47  ;;  %3988 = vmatprep.mubr.f32.mxu1 %v5723_v14  ;;  %v4756_v14 = vpack.c.bf16 %v3321_v0, %v3320_v8  ;;  %v6786_v8 = vld [vmem:[#allocation19_spill] sm:$0xff]  ;;  %v6787_v0 = vld [vmem:[#allocation9_spill] sm:$0xff] }
  0xd7   : > { %4364 = vmatprep.mubr.f32.mxu0 %v6072_v33  ;;  %4619 = vmatpush3.bf16.msra.mxu1 %v4616_v57  ;;  %v3323_v33 = vld [vmem:[%s6649_s2 + $0x438] sm:$0xff]  ;;  %v6781_v57 = vld [vmem:[#allocation7_spill] sm:$0xff] }
  0xd8   : > { %4780 = vmatprep.subr.bf16.mxu1 %v6772_v18 }
  0xd9   : > { %3989 = vmatmul.mubr.f32.gmra.mrb[16].mxu1 %v5736_v43  ;;  %v3322_v43 = vld [vmem:[%s6649_s2 + $0x430] sm:$0xff] }
  0xda   : > { %4365 = vmatmul.mubr.f32.vlgmr.msra.gmra.mrb[0].mxu0 %v6088_v58  ;;  %3991 = vmatprep.mubr.f32.mxu1 %v5740_v34  ;;  %v4760_v34 = vpack.c.bf16 %v3323_v33, %v3322_v43  ;;  %v3325_v58 = vld [vmem:[%s6649_s2 + $0x448] sm:$0xff]  ;;  %v6789_v43 = vld [vmem:[#allocation21_spill] sm:$0xff]  ;;  %v2482_v33 = vrot.slane %v6773_v39, 2 }
  0xdb   : > { %4751 = vmatpush3.bf16.msra.mxu0 %v6210_v55  ;;  %4367 = vmatprep.mubr.f32.mxu0 %v6092_v25  ;;  %v3327_v55 = vld [vmem:[%s6649_s2 + $0x458] sm:$0xff] }
  0xdc   : > { %4753 = vmatprep.subr.bf16.mxu0 %v4752_v61 }
  0xdd   : > { %3992 = vmatmul.mubr.f32.gmra.mrb[18].mxu1 %v5752_v51  ;;  %v3324_v51 = vld [vmem:[%s6649_s2 + $0x440] sm:$0xff] }
  0xde   : > { %4368 = vmatmul.mubr.f32.gmra.mrb[2].mxu0 %v6107_v63  ;;  %3994 = vmatprep.mubr.f32.mxu1 %v5756_v2  ;;  %v4764_v2 = vpack.c.bf16 %v3325_v58, %v3324_v51  ;;  %v6790_v51 = vld [vmem:[#allocation11_spill] sm:$0xff]  ;;  %v6791_v58 = vld [vmem:[#allocation22_spill] sm:$0xff] }
  0xdf   : > { %4370 = vmatprep.mubr.f32.mxu0 %v6111_v5  ;;  %4755 = vmatpush3.bf16.msra.mxu0 %v4752_v61  ;;  %v6784_v61 = vld [vmem:[#allocation8_spill] sm:$0xff] }
  0xe0   : > { %4757 = vmatprep.subr.bf16.mxu0 %v4756_v14 }
  0xe1   : > { %3995 = vmatmul.mubr.f32.gmra.mrb[20].mxu1 %v5768_v20  ;;  %v3326_v20 = vld [vmem:[%s6649_s2 + $0x450] sm:$0xff] }
  0xe2   : > { %4371 = vmatmul.mubr.f32.gmra.mrb[4].mxu0 %v6126_v15  ;;  %3997 = vmatprep.mubr.f32.mxu1 %v5772_v31  ;;  %v4768_v31 = vpack.c.bf16 %v3327_v55, %v3326_v20  ;;  %v6793_v20 = vld [vmem:[#allocation50_spill] sm:$0xff] }
  0xe3   : > { %4373 = vmatprep.mubr.f32.mxu0 %v6130_v22  ;;  %4759 = vmatpush3.bf16.msra.mxu0 %v4756_v14  ;;  %v6788_v14 = vld [vmem:[#allocation20_spill] sm:$0xff]  ;;  %v2485_v55 = vrot.slane %v6793_v20, 2 }
  0xe4   : > { %4761 = vmatprep.subr.bf16.mxu0 %v4760_v34 }
  0xe5   : > { %3998 = vmatmul.mubr.f32.gmra.mrb[22].mxu1 %v5784_v46  ;;  %v3328_v46 = vld [vmem:[%s6649_s2 + $0x460] sm:$0xff] }
  0xe6   : > { %4374 = vmatmul.mubr.f32.gmra.mrb[6].mxu0 %v6145_v41  ;;  %4000 = vmatprep.mubr.f32.mxu1 %v5788_v38  ;;  %v4772_v38 = vpack.c.bf16 %v3329_v42, %v3328_v46  ;;  %v6794_v46 = vld [vmem:[#allocation12_spill] sm:$0xff] }
  0xe7   : > { %4376 = vmatprep.mubr.f32.mxu0 %v6149_v48  ;;  %4763 = vmatpush3.bf16.msra.mxu0 %v4760_v34  ;;  %v2483_v34 = vrot.slane %v6774_v32, 2  ;;  %v6795_v42 = vld [vmem:[#allocation24_spill] sm:$0xff] }
  0xe8   : > { %4765 = vmatprep.subr.bf16.mxu0 %v4764_v2 }
  0xe9   : > { %4001 = vmatmul.mubr.f32.gmra.mrb[24].mxu1 %v5802_v6  ;;  %v3330_v6 = vld [vmem:[%s6649_s2 + $0x470] sm:$0xff] }
  0xea   : > { %4377 = vmatmul.mubr.f32.gmra.mrb[8].mxu0 %v6164_v60  ;;  %4003 = vmatprep.mubr.f32.mxu1 %v5806_v52  ;;  %v4776_v52 = vpack.c.bf16 %v3331_v10, %v3330_v6  ;;  %v6479_v6 = vsel %vm2095_vm1, %v2483_v34, %v2485_v55  ;;  %v6797_v10 = vld [vmem:[#allocation13_spill] sm:$0xff] }
  0xeb   : > { %4379 = vmatprep.mubr.f32.mxu0 %v6168_v45  ;;  %4767 = vmatpush3.bf16.msra.mxu0 %v4764_v2  ;;  %v6792_v2 = vld [vmem:[#allocation23_spill] sm:$0xff] }
  0xec   : > { %4769 = vmatprep.subr.bf16.mxu0 %v4768_v31 }
  0xed   : > { %4004 = vmatmul.mubr.f32.gmra.mrb[26].mxu1 %v5828_v3  ;;  %v6775_v3 = vld [vmem:[#allocation38_spill] sm:$0xff] }
  0xee   : > { %4380 = vmatmul.mubr.f32.gmra.mrb[10].mxu0 %v6183_v24  ;;  %4006 = vmatprep.mubr.f32.mxu1 %v6773_v39  ;;  %v6798_v39 = vld [vmem:[#allocation26_spill] sm:$0xff] }
  0xef   : > { %4382 = vmatprep.mubr.f32.mxu0 %v6187_v37  ;;  %4771 = vmatpush3.bf16.msra.mxu0 %v4768_v31  ;;  %v6471_v31 = vsel %vm2095_vm1, %v2482_v33, %v2483_v34 }
  0xf0   : > { %4773 = vmatprep.subr.bf16.mxu0 %v4772_v38 }
  0xf1   : > { %4007 = vmatmul.mubr.f32.gmra.mrb[28].mxu1 %v6774_v32  ;;  %v6800_v32 = vld [vmem:[#allocation28_spill] sm:$0xff] }
  0xf2   : > { %4383 = vmatmul.mubr.f32.gmra.mrb[12].mxu0 %v6202_v29  ;;  %4009 = vmatprep.mubr.f32.mxu1 %v6001_v54 }
  0xf3   : > { %4385 = vmatprep.mubr.f32.mxu0 %v6206_v35  ;;  %4775 = vmatpush3.bf16.msra.mxu0 %v4772_v38  ;;  %v6796_v38 = vld [vmem:[#allocation25_spill] sm:$0xff] }
  0xf4   : > { %4777 = vmatprep.subr.bf16.mxu0 %v4776_v52 }
  0xf5   : > { %4010 = vmatmul.mubr.f32.gmra.mrb[30].mxu1 %v6005_v17 }
  0xf6   : > { %4386 = vmatmul.mubr.f32.gmra.mrb[14].mxu0 %v6223_v53  ;;  %4044 = vmatprep.mubr.f32.mxu1 %v6775_v3  ;;  %v6801_v3 = vld [vmem:[#allocation31_spill] sm:$0xff] }
  0xf7   : > { %4388 = vmatprep.mubr.f32.mxu0 %v6227_v50  ;;  %4779 = vmatpush3.bf16.msra.mxu0 %v4776_v52  ;;  %v6799_v52 = vld [vmem:[#allocation27_spill] sm:$0xff] }
  0xf9   : > { %4045 = vmatmul.mubr.f32.vlgmr.msra.gmra.mrb[0].mxu1 %v6776_v40  ;;  %v6802_v40 = vld [vmem:[#allocation34_spill] sm:$0xff] }
  0xfa   : > { %4389 = vmatmul.mubr.f32.gmra.mrb[16].mxu0 %v6244_v26  ;;  %4788 = vmatpush3.bf16.msra.mxu1 %v6772_v18  ;;  %v6785_v18 = vld [vmem:[#allocation18_spill] sm:$0xff] }
  0xfb   : > { %4047 = vmatprep.mubr.f32.mxu1 %v6777_v16  ;;  %4391 = vmatprep.mubr.f32.mxu0 %v6248_v9  ;;  %v6803_v16 = vld [vmem:[#allocation35_spill] sm:$0xff] }
  0xfc   : > { %4781 = vmatprep.subr.bf16.mxu1 %v6778_v1 }
  0xfd   : > { %4048 = vmatmul.mubr.f32.gmra.mrb[2].mxu1 %v6779_v7 }
  0xfe   : > { %4392 = vmatmul.mubr.f32.gmra.mrb[18].mxu0 %v6263_v4  ;;  %4050 = vmatprep.mubr.f32.mxu1 %v6780_v21 }
  0xff   : > { %4394 = vmatprep.mubr.f32.mxu0 %v6267_v62  ;;  %4789 = vmatpush3.bf16.msra.mxu1 %v6778_v1  ;;  %v6804_v1 = vld [vmem:[#allocation36_spill] sm:$0xff] }
 0x100   : > { %4782 = vmatprep.subr.bf16.mxu1 %v6781_v57 }
 0x101   : > { %4051 = vmatmul.mubr.f32.gmra.mrb[4].mxu1 %v6782_v44 }
 0x102   : > { %4395 = vmatmul.mubr.f32.gmra.mrb[20].mxu0 %v6282_v11  ;;  %4053 = vmatprep.mubr.f32.mxu1 %v6783_v49 }
 0x103   : > { %4397 = vmatprep.mubr.f32.mxu0 %v6286_v59  ;;  %4790 = vmatpush3.bf16.msra.mxu1 %v6781_v57 }
 0x104   : > { %4783 = vmatprep.subr.bf16.mxu1 %v6784_v61 }
 0x105   : > { %4054 = vmatmul.mubr.f32.gmra.mrb[6].mxu1 %v6785_v18 }
 0x106   : > { %4398 = vmatmul.mubr.f32.gmra.mrb[22].mxu0 %v6301_v13  ;;  %4056 = vmatprep.mubr.f32.mxu1 %v6786_v8 }
 0x107   : > { %4400 = vmatprep.mubr.f32.mxu0 %v6305_v12  ;;  %4791 = vmatpush3.bf16.msra.mxu1 %v6784_v61 }
 0x108   : > { %4784 = vmatprep.subr.bf16.mxu1 %v6787_v0 }
 0x109   : > { %4057 = vmatmul.mubr.f32.gmra.mrb[8].mxu1 %v6788_v14 }
 0x10a   : > { %4401 = vmatmul.mubr.f32.gmra.mrb[24].mxu0 %v6320_v28  ;;  %4059 = vmatprep.mubr.f32.mxu1 %v6789_v43 }
 0x10b   : > { %4403 = vmatprep.mubr.f32.mxu0 %v6324_v36  ;;  %4792 = vmatpush3.bf16.msra.mxu1 %v6787_v0 }
 0x10c   : > { %4785 = vmatprep.subr.bf16.mxu1 %v6790_v51 }
 0x10d   : > { %4060 = vmatmul.mubr.f32.gmra.mrb[10].mxu1 %v6791_v58 }
 0x10e   : > { %4404 = vmatmul.mubr.f32.gmra.mrb[26].mxu0 %v6339_v56  ;;  %4062 = vmatprep.mubr.f32.mxu1 %v6792_v2 }
 0x10f   : > { %4406 = vmatprep.mubr.f32.mxu0 %v6343_v19  ;;  %4793 = vmatpush3.bf16.msra.mxu1 %v6790_v51 }
 0x110   : > { %4786 = vmatprep.subr.bf16.mxu1 %v6794_v46 }
 0x111   : > { %4063 = vmatmul.mubr.f32.gmra.mrb[12].mxu1 %v6795_v42 }
 0x112   : > { %4407 = vmatmul.mubr.f32.gmra.mrb[28].mxu0 %v6350_v47  ;;  %4065 = vmatprep.mubr.f32.mxu1 %v6796_v38 }
 0x113   : > { %4409 = vmatprep.mubr.f32.mxu0 %v6471_v31  ;;  %4794 = vmatpush3.bf16.msra.mxu1 %v6794_v46 }
 0x114   : > { %4787 = vmatprep.subr.bf16.mxu1 %v6797_v10 }
 0x115   : > { %4066 = vmatmul.mubr.f32.gmra.mrb[14].mxu1 %v6798_v39 }
 0x116   : > { %4410 = vmatmul.mubr.f32.gmra.mrb[30].mxu0 %v6479_v6  ;;  %4068 = vmatprep.mubr.f32.mxu1 %v6799_v52 }
 0x117   : > { %4444 = vmatprep.mubr.f32.mxu0 %v6092_v25  ;;  %4795 = vmatpush3.bf16.msra.mxu1 %v6797_v10  ;;  %v6805_v25 = vld [vmem:[#allocation37_spill] sm:$0xff] }
 0x119   : > { %4069 = vmatmul.mubr.f32.gmra.mrb[16].mxu1 %v6800_v32 }
 0x11a   : > { %4445 = vmatmul.mubr.f32.vlgmr.msra.gmra.mrb[0].mxu0 %v6107_v63  ;;  %4071 = vmatprep.mubr.f32.mxu1 %v6801_v3  ;;  %v6806_v63 = vld [vmem:[#allocation40_spill] sm:$0xff] }
 0x11b   : > { %4447 = vmatprep.mubr.f32.mxu0 %v6111_v5  ;;  %v6807_v5 = vld [vmem:[#allocation41_spill] sm:$0xff] }
 0x11d   : > { %4072 = vmatmul.mubr.f32.gmra.mrb[18].mxu1 %v6802_v40 }
 0x11e   : > { %4448 = vmatmul.mubr.f32.gmra.mrb[2].mxu0 %v6126_v15  ;;  %4074 = vmatprep.mubr.f32.mxu1 %v6803_v16  ;;  %v6808_v15 = vld [vmem:[#allocation42_spill] sm:$0xff] }
 0x11f   : > { %4450 = vmatprep.mubr.f32.mxu0 %v6130_v22  ;;  %v6809_v22 = vld [vmem:[#allocation43_spill] sm:$0xff] }
 0x121   : > { %4075 = vmatmul.mubr.f32.gmra.mrb[20].mxu1 %v6804_v1 }
 0x122   : > { %4451 = vmatmul.mubr.f32.gmra.mrb[4].mxu0 %v6145_v41  ;;  %4077 = vmatprep.mubr.f32.mxu1 %v6805_v25  ;;  %v6810_v41 = vld [vmem:[#allocation45_spill] sm:$0xff] }
 0x123   : > { %4453 = vmatprep.mubr.f32.mxu0 %v6149_v48  ;;  %v6811_v48 = vld [vmem:[#allocation46_spill] sm:$0xff] }
 0x125   : > { %4078 = vmatmul.mubr.f32.gmra.mrb[22].mxu1 %v6806_v63 }
 0x126   : > { %4454 = vmatmul.mubr.f32.gmra.mrb[6].mxu0 %v6164_v60  ;;  %4080 = vmatprep.mubr.f32.mxu1 %v6807_v5  ;;  %v6812_v60 = vld [vmem:[#allocation48_spill] sm:$0xff] }
 0x127   : > { %4456 = vmatprep.mubr.f32.mxu0 %v6168_v45  ;;  %v6813_v45 = vld [vmem:[#allocation49_spill] sm:$0xff] }
 0x129   : > { %4081 = vmatmul.mubr.f32.gmra.mrb[24].mxu1 %v6808_v15 }
 0x12a   : > { %4457 = vmatmul.mubr.f32.gmra.mrb[8].mxu0 %v6183_v24  ;;  %4083 = vmatprep.mubr.f32.mxu1 %v6809_v22  ;;  %v2763_v24 = vrot.slane %v6001_v54, 2 }
 0x12b   : > { %4459 = vmatprep.mubr.f32.mxu0 %v6187_v37  ;;  %v2764_v37 = vrot.slane %v6005_v17, 2 }
 0x12d   : > { %4084 = vmatmul.mubr.f32.gmra.mrb[26].mxu1 %v6810_v41 }
 0x12e   : > { %4460 = vmatmul.mubr.f32.gmra.mrb[10].mxu0 %v6202_v29  ;;  %4086 = vmatprep.mubr.f32.mxu1 %v6811_v48  ;;  %v2766_v29 = vrot.slane %v6026_v23, 2 }
 0x12f   : > { %4462 = vmatprep.mubr.f32.mxu0 %v6206_v35  ;;  %v2765_v35 = vsel %vm2095_vm1, %v2763_v24, %v2764_v37 }
 0x130   : > { %v2767_v54 = vsel %vm2095_vm1, %v2764_v37, %v2766_v29 }
 0x131   : > { %4087 = vmatmul.mubr.f32.gmra.mrb[28].mxu1 %v6812_v60 }
 0x132   : > { %4463 = vmatmul.mubr.f32.gmra.mrb[12].mxu0 %v6223_v53  ;;  %4089 = vmatprep.mubr.f32.mxu1 %v6813_v45  ;;  %v6814_v53 = vld [vmem:[#allocation51_spill] sm:$0xff] }
 0x133   : > { %4465 = vmatprep.mubr.f32.mxu0 %v6227_v50 }
 0x135   : > { %4090 = vmatmul.mubr.f32.gmra.mrb[30].mxu1 %v6017_v27 }
 0x136   : > { %4466 = vmatmul.mubr.f32.gmra.mrb[14].mxu0 %v6244_v26  ;;  %4148 = vmatprep.mubr.f32.mxu1 %v6801_v3 }
 0x137   : > { %4468 = vmatprep.mubr.f32.mxu0 %v6248_v9 }
 0x139   : > { %4149 = vmatmul.mubr.f32.vlgmr.msra.gmra.mrb[16].mxu1 %v6802_v40 }
 0x13a   : > { %4469 = vmatmul.mubr.f32.gmra.mrb[16].mxu0 %v6263_v4  ;;  %4151 = vmatprep.mubr.f32.mxu1 %v6803_v16 }
 0x13b   : > { %4471 = vmatprep.mubr.f32.mxu0 %v6267_v62 }
 0x13d   : > { %4152 = vmatmul.mubr.f32.gmra.mrb[18].mxu1 %v6804_v1 }
 0x13e   : > { %4472 = vmatmul.mubr.f32.gmra.mrb[18].mxu0 %v6282_v11  ;;  %4154 = vmatprep.mubr.f32.mxu1 %v6805_v25 }
 0x13f   : > { %4474 = vmatprep.mubr.f32.mxu0 %v6286_v59 }
 0x141   : > { %4155 = vmatmul.mubr.f32.gmra.mrb[20].mxu1 %v6806_v63 }
 0x142   : > { %4475 = vmatmul.mubr.f32.gmra.mrb[20].mxu0 %v6301_v13  ;;  %4157 = vmatprep.mubr.f32.mxu1 %v6807_v5 }
 0x143   : > { %4477 = vmatprep.mubr.f32.mxu0 %v6305_v12 }
 0x145   : > { %4158 = vmatmul.mubr.f32.gmra.mrb[22].mxu1 %v6808_v15 }
 0x146   : > { %4478 = vmatmul.mubr.f32.gmra.mrb[22].mxu0 %v6320_v28  ;;  %4160 = vmatprep.mubr.f32.mxu1 %v6809_v22 }
 0x147   : > { %4480 = vmatprep.mubr.f32.mxu0 %v6324_v36 }
 0x149   : > { %4161 = vmatmul.mubr.f32.gmra.mrb[24].mxu1 %v6810_v41 }
 0x14a   : > { %4481 = vmatmul.mubr.f32.gmra.mrb[24].mxu0 %v6339_v56  ;;  %4163 = vmatprep.mubr.f32.mxu1 %v6811_v48 }
 0x14b   : > { %4483 = vmatprep.mubr.f32.mxu0 %v6343_v19 }
 0x14d   : > { %4164 = vmatmul.mubr.f32.gmra.mrb[26].mxu1 %v6812_v60 }
 0x14e   : > { %4484 = vmatmul.mubr.f32.gmra.mrb[26].mxu0 %v6350_v47  ;;  %4166 = vmatprep.mubr.f32.mxu1 %v6813_v45 }
 0x14f   : > { %4486 = vmatprep.mubr.f32.mxu0 %v6471_v31 }
 0x151   : > { %4167 = vmatmul.mubr.f32.gmra.mrb[28].mxu1 %v6017_v27 }
 0x152   : > { %4487 = vmatmul.mubr.f32.gmra.mrb[28].mxu0 %v6479_v6  ;;  %4169 = vmatprep.mubr.f32.mxu1 %v6814_v53 }
 0x153   : > { %4489 = vmatprep.mubr.f32.mxu0 %v2765_v35 }
 0x155   : > { %4170 = vmatmul.mubr.f32.gmra.mrb[30].mxu1 %v6039_v30 }
 0x156   : > { %4490 = vmatmul.mubr.f32.gmra.mrb[30].mxu0 %v2767_v54 }
 0x1cc   : > { %v4046_v17 = vpop.f32.mrb[0].mxu1 }
 0x1cd   : > { %v1336_v50 = vpop.f32.mrb[1].mxu1 }
 0x1d0   : > { %v4049_v26 = vpop.f32.mrb[2].mxu1 }
 0x1d1   : > { %v1346_v23 = vpop.f32.mrb[3].mxu1 }
 0x1d4   : > { %v4052_v9 = vpop.f32.mrb[4].mxu1 }
 0x1d5   : > { %v1356_v4 = vpop.f32.mrb[5].mxu1 }
 0x1d8   : > { %v4055_v62 = vpop.f32.mrb[6].mxu1 }
 0x1d9   : > { %v1366_v27 = vpop.f32.mrb[7].mxu1 }
 0x1dc   : > { %v4058_v11 = vpop.f32.mrb[8].mxu1 }
 0x1dd   : > { %v1376_v59 = vpop.f32.mrb[9].mxu1 }
 0x1e0   : > { %v4061_v13 = vpop.f32.mrb[10].mxu1 }
 0x1e1   : > { %v1386_v12 = vpop.f32.mrb[11].mxu1 }
 0x1e4   : > { %v4064_v28 = vpop.f32.mrb[12].mxu1 }
 0x1e5   : > { %v1396_v36 = vpop.f32.mrb[13].mxu1 }
 0x1e8   : > { %v4067_v56 = vpop.f32.mrb[14].mxu1 }
 0x1e9   : > { %v1406_v30 = vpop.f32.mrb[15].mxu1 }
 0x1ed   : > { %v4446_v19 = vpop.f32.mrb[0].mxu0 }
 0x1ee   : > { %v4796_v47 = vadd.f32 %v4446_v19, %v4046_v17  ;;  %v2853_v7 = vpop.f32.mrb[1].mxu0 }
 0x1ef   : > { %v4797_v21 = vadd.f32 %v2853_v7, %v1336_v50 }
 0x1f0   : > { %3045 = vst [vmem:[%s6556_s29 + $0x8] sm:$0xff] %v4796_v47 }
 0x1f1   : > { %3044 = vst [vmem:[%s6556_s29] sm:$0xff] %v4797_v21  ;;  %v4449_v57 = vpop.f32.mrb[2].mxu0 }
 0x1f2   : > { %v4798_v44 = vadd.f32 %v4449_v57, %v4049_v26  ;;  %v2863_v49 = vpop.f32.mrb[3].mxu0 }
 0x1f3   : > { %v4799_v61 = vadd.f32 %v2863_v49, %v1346_v23 }
 0x1f4   : > { %3047 = vst [vmem:[%s6556_s29 + $0x18] sm:$0xff] %v4798_v44 }
 0x1f5   : > { %3046 = vst [vmem:[%s6556_s29 + $0x10] sm:$0xff] %v4799_v61  ;;  %v4452_v18 = vpop.f32.mrb[4].mxu0 }
 0x1f6   : > { %v4800_v8 = vadd.f32 %v4452_v18, %v4052_v9  ;;  %v2873_v0 = vpop.f32.mrb[5].mxu0 }
 0x1f7   : > { %v4801_v14 = vadd.f32 %v2873_v0, %v1356_v4 }
 0x1f8   : > { %3049 = vst [vmem:[%s6556_s29 + $0x28] sm:$0xff] %v4800_v8 }
 0x1f9   : > { %3048 = vst [vmem:[%s6556_s29 + $0x20] sm:$0xff] %v4801_v14  ;;  %v4455_v43 = vpop.f32.mrb[6].mxu0 }
 0x1fa   : > { %v4802_v33 = vadd.f32 %v4455_v43, %v4055_v62  ;;  %v2883_v34 = vpop.f32.mrb[7].mxu0 }
 0x1fb   : > { %v4803_v51 = vadd.f32 %v2883_v34, %v1366_v27 }
 0x1fc   : > { %3051 = vst [vmem:[%s6556_s29 + $0x38] sm:$0xff] %v4802_v33 }
 0x1fd   : > { %3050 = vst [vmem:[%s6556_s29 + $0x30] sm:$0xff] %v4803_v51  ;;  %v4458_v58 = vpop.f32.mrb[8].mxu0 }
 0x1fe   : > { %v4804_v2 = vadd.f32 %v4458_v58, %v4058_v11  ;;  %v2893_v20 = vpop.f32.mrb[9].mxu0 }
 0x1ff   : > { %v4805_v55 = vadd.f32 %v2893_v20, %v1376_v59 }
 0x200   : > { %3053 = vst [vmem:[%s6556_s29 + $0x48] sm:$0xff] %v4804_v2 }
 0x201   : > { %3052 = vst [vmem:[%s6556_s29 + $0x40] sm:$0xff] %v4805_v55  ;;  %v4461_v31 = vpop.f32.mrb[10].mxu0 }
 0x202   : > { %v4806_v46 = vadd.f32 %v4461_v31, %v4061_v13  ;;  %v2903_v42 = vpop.f32.mrb[11].mxu0 }
 0x203   : > { %v4807_v38 = vadd.f32 %v2903_v42, %v1386_v12 }
 0x204   : > { %3055 = vst [vmem:[%s6556_s29 + $0x58] sm:$0xff] %v4806_v46 }
 0x205   : > { %3054 = vst [vmem:[%s6556_s29 + $0x50] sm:$0xff] %v4807_v38  ;;  %v4464_v6 = vpop.f32.mrb[12].mxu0 }
 0x206   : > { %v4808_v10 = vadd.f32 %v4464_v6, %v4064_v28  ;;  %v2913_v39 = vpop.f32.mrb[13].mxu0 }
 0x207   : > { %v4809_v52 = vadd.f32 %v2913_v39, %v1396_v36 }
 0x208   : > { %3057 = vst [vmem:[%s6556_s29 + $0x68] sm:$0xff] %v4808_v10 }
 0x209   : > { %3056 = vst [vmem:[%s6556_s29 + $0x60] sm:$0xff] %v4809_v52  ;;  %v4467_v32 = vpop.f32.mrb[14].mxu0 }
 0x20a   : > { %v4810_v3 = vadd.f32 %v4467_v32, %v4067_v56  ;;  %v2923_v40 = vpop.f32.mrb[15].mxu0 }
 0x20b   : > { %v4811_v16 = vadd.f32 %v2923_v40, %v1406_v30 }
 0x20c   : > { %3059 = vst [vmem:[%s6556_s29 + $0x78] sm:$0xff] %v4810_v3  ;;  %v4150_v1 = vpop.f32.mrb[16].mxu1 }
 0x20d   : > { %3058 = vst [vmem:[%s6556_s29 + $0x70] sm:$0xff] %v4811_v16  ;;  %v4470_v25 = vpop.f32.mrb[16].mxu0  ;;  %v1700_v63 = vpop.f32.mrb[17].mxu1 }
 0x20e   : > { %v4812_v5 = vadd.f32 %v4470_v25, %v4150_v1  ;;  %v2933_v15 = vpop.f32.mrb[17].mxu0 }
 0x20f   : > { %v4813_v22 = vadd.f32 %v2933_v15, %v1700_v63 }
 0x210   : > { %3061 = vst [vmem:[%s6556_s29 + $0x88] sm:$0xff] %v4812_v5  ;;  %v4153_v41 = vpop.f32.mrb[18].mxu1 }
 0x211   : > { %3060 = vst [vmem:[%s6556_s29 + $0x80] sm:$0xff] %v4813_v22  ;;  %v4473_v48 = vpop.f32.mrb[18].mxu0  ;;  %v1710_v60 = vpop.f32.mrb[19].mxu1 }
 0x212   : > { %v4814_v45 = vadd.f32 %v4473_v48, %v4153_v41  ;;  %v2943_v24 = vpop.f32.mrb[19].mxu0 }
 0x213   : > { %v4815_v37 = vadd.f32 %v2943_v24, %v1710_v60 }
 0x214   : > { %3063 = vst [vmem:[%s6556_s29 + $0x98] sm:$0xff] %v4814_v45  ;;  %v4156_v29 = vpop.f32.mrb[20].mxu1 }
 0x215   : > { %3062 = vst [vmem:[%s6556_s29 + $0x90] sm:$0xff] %v4815_v37  ;;  %v4476_v35 = vpop.f32.mrb[20].mxu0  ;;  %v1720_v53 = vpop.f32.mrb[21].mxu1 }
 0x216   : > { %v4816_v54 = vadd.f32 %v4476_v35, %v4156_v29  ;;  %v2953_v17 = vpop.f32.mrb[21].mxu0 }
 0x217   : > { %v4817_v50 = vadd.f32 %v2953_v17, %v1720_v53 }
 0x218   : > { %3065 = vst [vmem:[%s6556_s29 + $0xa8] sm:$0xff] %v4816_v54  ;;  %v4159_v26 = vpop.f32.mrb[22].mxu1 }
 0x219   : > { %3064 = vst [vmem:[%s6556_s29 + $0xa0] sm:$0xff] %v4817_v50  ;;  %v4479_v23 = vpop.f32.mrb[22].mxu0  ;;  %v1730_v9 = vpop.f32.mrb[23].mxu1 }
 0x21a   : > { %v4818_v4 = vadd.f32 %v4479_v23, %v4159_v26  ;;  %v2963_v62 = vpop.f32.mrb[23].mxu0 }
 0x21b   : > { %v4819_v27 = vadd.f32 %v2963_v62, %v1730_v9 }
 0x21c   : > { %3067 = vst [vmem:[%s6556_s29 + $0xb8] sm:$0xff] %v4818_v4  ;;  %v4162_v11 = vpop.f32.mrb[24].mxu1 }
 0x21d   : > { %3066 = vst [vmem:[%s6556_s29 + $0xb0] sm:$0xff] %v4819_v27  ;;  %v4482_v59 = vpop.f32.mrb[24].mxu0  ;;  %v1740_v13 = vpop.f32.mrb[25].mxu1 }
 0x21e   : > { %v4820_v12 = vadd.f32 %v4482_v59, %v4162_v11  ;;  %v2973_v28 = vpop.f32.mrb[25].mxu0 }
 0x21f   : > { %v4821_v36 = vadd.f32 %v2973_v28, %v1740_v13 }
 0x220   : > { %3069 = vst [vmem:[%s6556_s29 + $0xc8] sm:$0xff] %v4820_v12  ;;  %v4165_v56 = vpop.f32.mrb[26].mxu1 }
 0x221   : > { %3068 = vst [vmem:[%s6556_s29 + $0xc0] sm:$0xff] %v4821_v36  ;;  %v4485_v30 = vpop.f32.mrb[26].mxu0  ;;  %v1750_v19 = vpop.f32.mrb[27].mxu1 }
 0x222   : > { %v4822_v47 = vadd.f32 %v4485_v30, %v4165_v56  ;;  %v2983_v7 = vpop.f32.mrb[27].mxu0 }
 0x223   : > { %v4823_v21 = vadd.f32 %v2983_v7, %v1750_v19 }
 0x224   : > { %3071 = vst [vmem:[%s6556_s29 + $0xd8] sm:$0xff] %v4822_v47  ;;  %v4168_v57 = vpop.f32.mrb[28].mxu1 }
 0x225   : > { %3070 = vst [vmem:[%s6556_s29 + $0xd0] sm:$0xff] %v4823_v21  ;;  %v4488_v44 = vpop.f32.mrb[28].mxu0  ;;  %v1760_v49 = vpop.f32.mrb[29].mxu1 }
 0x226   : > { %v4824_v61 = vadd.f32 %v4488_v44, %v4168_v57  ;;  %v2993_v18 = vpop.f32.mrb[29].mxu0 }
 0x227   : > { %v4825_v8 = vadd.f32 %v2993_v18, %v1760_v49 }
 0x228   : > { %3073 = vst [vmem:[%s6556_s29 + $0xe8] sm:$0xff] %v4824_v61  ;;  %v4171_v0 = vpop.f32.mrb[30].mxu1 }
 0x229   : > { %3072 = vst [vmem:[%s6556_s29 + $0xe0] sm:$0xff] %v4825_v8  ;;  %v4491_v14 = vpop.f32.mrb[30].mxu0  ;;  %v1770_v43 = vpop.f32.mrb[31].mxu1 }
 0x22a   : > { %v4826_v33 = vadd.f32 %v4491_v14, %v4171_v0  ;;  %v3003_v34 = vpop.f32.mrb[31].mxu0 }
 0x22b   : > { %v4827_v51 = vadd.f32 %v3003_v34, %v1770_v43 }
 0x22c   : > { %3075 = vst [vmem:[%s6556_s29 + $0xf8] sm:$0xff] %v4826_v33 }
 0x22d   : > { %3074 = vst [vmem:[%s6556_s29 + $0xf0] sm:$0xff] %v4827_v51 }
 0x22e   : > { %5133 = shalt.err (!%p5130_p5)
}
 0x22f   : > { %s5134_s30 = scalar_lea.hbm %s6593_s6, 4096  ;;  %s5138_s27 = scalar_lea.hbm %s6650_s3, 8192 }
 0x230   : > { %p5135_p6 = scmp.ne.s32.totalorder %s6593_s6, %s5134_s30  ;;  %p5139_p10 = scmp.lt.u32.totalorder %s6593_s6, %s6650_s3 }
 0x231   : > { %p5140_p11 = scmp.lt.u32.totalorder %s5138_s27, %s5134_s30  ;;  %p5142_p13 = scmp.lt.u32.totalorder %s5134_s30, %s6593_s6 }
 0x232   : > { %p5136_p7 = pnand %p5135_p6, %p5263_p4 }
 0x233   : > { %p5141_p12 = por %p5140_p11, %p5139_p10 }
 0x234   : > { %p5137_p9 = pneg %p5136_p7 }
 0x235   : > { %p5143_p0 = por %p5142_p13, %p5141_p12 }
 0x237   : > { %p5144_p1 = pnand %p5143_p0, %p5137_p9 }
 0x239   : > { %5147 = shalt.err (!%p5144_p1)
}
 0x23a   : > { %s5201_s9 = smov 128   ;;  %s5202_s29 = smov 8  }
 0x23b   : > { %5054 = dma.vmem_to_hbm [thread:$0]  (%p5263_p4), %s6595_s11, 4096, %s6593_s6, %s6601_s15, %s5201_s9, %s5201_s9, %s5202_s29  }
 0x23c PF: > { %p5061_p2 = scmp.ge.s32.totalorder %s5198_s17, 2  ;;  %s3108_s10 = sand.u32 1, %s5178_s12  }
 0x23d   : > { %s3109_s18 = scalar_lea.sflag [#allocation3], %s3108_s10 }
 0x23e   : > { %p5057_p3 = pnand %p5061_p2, %p5270_p8 }
 0x240   : > { %5173 = dma.done.wait (!%p5057_p3), %s3109_s18, 4096  }
 0x241   : > { %5175 = vsyncadd (!%p5057_p3), %s3109_s18, 4294963200  ;;  %s16_s17 = sadd.s32 1, %s5198_s17   ;;  %s6815_s12 = smov %s5182_s13 }
 0x242   : > { %p13_p5 = scmp.ge.s32.totalorder %s16_s17, 4   ;;  %s6816_s13 = smov %s5186_s14 }
 0x243   : > { %s6817_s14 = smov %s5276_s25  ;;  %s6818_s15 = smov %s5194_s16 }
 0x244   : > { %s6819_s16 = smov %s6821_s20  ;;  %15 = sbr.rel (!%p13_p5) target bundleno = 4 (0x4), region = 78 }
 0x24b   :  { %3114 = vsyncpa [#allocation3], 1 }
 0x24c   :  { %3116 = vsyncpa [#allocation3 + $0x1], 1 }

// kernel: pan_forward.4
= control target key start
LH: loop header
LB: loop body
LE: loop exit
PB: predicated region body
PF: predicated region fallthrough
CT: control target
= control target key end

     0   :  { %s5138_s12 = smov 0   ;;  %s5140_s13 = smov 0   ;;  %s6476_s0 = inlined_call_operand.vmem [shape: f32[2,18,18,128], index: 0, kind: input, shape index: {}, may-alias: {0,1}]   ;;  %s6477_s1 = inlined_call_operand.vmem [shape: f32[2,18,18,128], index: 1, kind: input, shape index: {}, may-alias: {0,1}]   ;;  %s6478_s2 = inlined_call_operand.vmem [shape: f32[9,128,128], index: 2, kind: input, shape index: {}]   ;;  %s6479_s3 = inlined_call_operand.vmem [shape: f32[2,16,16,128], index: 3, kind: output, shape index: {}]  }
   0x1   :  { %s5142_s14 = smov 0  }
   0x2 LB: > { %s25_s15 = sadd.s32 1, %s5112_s13  ;;  %p3209_p0 = scmp.ge.s32.totalorder %s5116_s14, 1  ;;  %s5116_s14 = sphi %s5142_s14, %s13_s14   ;;  %s5112_s13 = sphi %s5140_s13, %s6643_s13   ;;  %s5108_s12 = sphi %s5138_s12, %s6642_s12  }
   0x3   : > { %p27_p1 = scmp.ge.s32.totalorder %s25_s15, 2  ;;  %p195_p2 = scmp.lt.s32.totalorder %s5116_s14, 3 }
   0x5   : > { %s6645_s15 = smov (%p27_p1, %s25_s15), 0  ;;  %p196_p3 = pnand %p3209_p0, %p195_p2 }
   0x7   : > { %199 = sbr.rel (%p196_p3) target bundleno = 550 (0x226), region = 32 }
   0xe   : > { %v3214_v0 = vld [vmem:[%s6478_s2 + $0x180] sm:$0xff]  ;;  %v3215_v1 = vld [vmem:[%s6478_s2 + $0x188] sm:$0xff]  ;;  %p252_p4 = scmp.lt.s32.totalorder %s5108_s12, 1  ;;  %v3216_v5 = vld [vmem:[%s6478_s2 + $0x190] sm:$0xff]  ;;  %vm1152_vm0 = vcmask 1046528   ;;  %vm2107_vm1 = vcmask 1045504  }
   0xf   : > { %v3262_v2 = vld [vmem:[%s6478_s2 + $0x200] sm:$0xff]  ;;  %v4499_v3 = vpack.c.bf16 %v3215_v1, %v3214_v0  ;;  %v3263_v4 = vld [vmem:[%s6478_s2 + $0x208] sm:$0xff]  ;;  %v3217_v6 = vld [vmem:[%s6478_s2 + $0x198] sm:$0xff] }
  0x10   : > { %v5174_v7 = vpack.c.bf16 %v3263_v4, %v3262_v2  ;;  %v4503_v8 = vpack.c.bf16 %v3217_v6, %v3216_v5  ;;  %v3264_v9 = vld [vmem:[%s6478_s2 + $0x210] sm:$0xff]  ;;  %v3265_v10 = vld [vmem:[%s6478_s2 + $0x218] sm:$0xff]  ;;  %v3218_v11 = vld [vmem:[%s6478_s2 + $0x1a0] sm:$0xff]  ;;  %s6647_s12 = smov (!%p252_p4, %s5108_s12), 1 }
  0x11   : > { %4500 = vmatprep.subr.bf16.mxu1 %v4499_v3  ;;  %v5187_v12 = vpack.c.bf16 %v3265_v10, %v3264_v9  ;;  %v3219_v13 = vld [vmem:[%s6478_s2 + $0x1a8] sm:$0xff]  ;;  %v3266_v14 = vld [vmem:[%s6478_s2 + $0x220] sm:$0xff]  ;;  %s5059_s17 = smul.u32 432, %s6647_s12  ;;  %v3220_v18 = vld [vmem:[%s6478_s2 + $0x1b0] sm:$0xff]  ;;  %s3346_s29 = sshll.u32 %s6647_s12, 8 }
  0x12   : > { %6548 = vst [vmem:[#allocation2_spill] sm:$0xff] %v5174_v7  ;;  %v3267_v15 = vld [vmem:[%s6478_s2 + $0x228] sm:$0xff]  ;;  %4628 = vmatprep.subr.bf16.mxu0 %v5174_v7  ;;  %4502 = vmatpush3.bf16.msra.mxu1 %v4499_v3  ;;  %v4507_v16 = vpack.c.bf16 %v3219_v13, %v3218_v11  ;;  %v3221_v19 = vld [vmem:[%s6478_s2 + $0x1b8] sm:$0xff]  ;;  %v3268_v20 = vld [vmem:[%s6478_s2 + $0x230] sm:$0xff] }
  0x13   : > { %6549 = vst [vmem:[#allocation3_spill] sm:$0xff] %v5187_v12  ;;  %4630 = vmatpush3.bf16.msra.mxu0 %v5174_v7  ;;  %4504 = vmatprep.subr.bf16.mxu1 %v4503_v8  ;;  %v5202_v17 = vpack.c.bf16 %v3267_v15, %v3266_v14  ;;  %v3269_v21 = vld [vmem:[%s6478_s2 + $0x238] sm:$0xff]  ;;  %s5221_s28 = scalar_lea.vmem %s6476_s0, %s5059_s17  ;;  %v4511_v22 = vpack.c.bf16 %v3221_v19, %v3220_v18  ;;  %v3222_v24 = vld [vmem:[%s6478_s2 + $0x1c0] sm:$0xff]  ;;  %v3223_v25 = vld [vmem:[%s6478_s2 + $0x1c8] sm:$0xff]  ;;  %s3345_s26 = sadd.s32 384, %s5059_s17 }
  0x14   : > { %4632 = vmatprep.subr.bf16.mxu0 %v5187_v12  ;;  %v5225_v23 = vpack.c.bf16 %v3269_v21, %v3268_v20  ;;  %v5234_v26 = vld [vmem:[%s5221_s28 + $0x18] sm:$0xff]  ;;  %v3270_v27 = vld [vmem:[%s6478_s2 + $0x240] sm:$0xff]  ;;  %v3271_v28 = vld [vmem:[%s6478_s2 + $0x248] sm:$0xff]  ;;  %v4515_v32 = vpack.c.bf16 %v3223_v25, %v3222_v24  ;;  %s5687_s6 = scalar_lea.vmem %s6477_s1, %s3345_s26  ;;  %s6433_s17 = scalar_lea.vmem %s6479_s3, %s3346_s29 }
  0x15   : > { %6550 = vst [vmem:[#allocation4_spill] sm:$0xff] %v5202_v17  ;;  %3811 = vmatprep.mubr.f32.mxu1 %v5234_v26  ;;  %v5244_v29 = vld [vmem:[%s5221_s28 + $0x20] sm:$0xff]  ;;  %v1158_v30 = vrot.slane %v5234_v26, 1  ;;  %v5250_v33 = vpack.c.bf16 %v3271_v28, %v3270_v27  ;;  %v3224_v34 = vld [vmem:[%s6478_s2 + $0x1d0] sm:$0xff]  ;;  %v3225_v35 = vld [vmem:[%s6478_s2 + $0x1d8] sm:$0xff] }
  0x16   : > { %4506 = vmatpush3.bf16.msra.mxu1 %v4503_v8  ;;  %6551 = vst [vmem:[#allocation5_spill] sm:$0xff] %v5225_v23  ;;  %v1159_v31 = vrot.slane %v5244_v29, 1  ;;  %v3272_v37 = vld [vmem:[%s6478_s2 + $0x250] sm:$0xff]  ;;  %v3273_v38 = vld [vmem:[%s6478_s2 + $0x258] sm:$0xff]  ;;  %v4519_v39 = vpack.c.bf16 %v3225_v35, %v3224_v34  ;;  %v3226_v41 = vld [vmem:[%s6478_s2 + $0x1e0] sm:$0xff] }
  0x17   : > { %4634 = vmatpush3.bf16.msra.mxu0 %v5187_v12  ;;  %4508 = vmatprep.subr.bf16.mxu1 %v4507_v16  ;;  %6552 = vst [vmem:[#allocation6_spill] sm:$0xff] %v5250_v33  ;;  %v5272_v40 = vpack.c.bf16 %v3273_v38, %v3272_v37  ;;  %v3227_v42 = vld [vmem:[%s6478_s2 + $0x1e8] sm:$0xff]  ;;  %v3274_v43 = vld [vmem:[%s6478_s2 + $0x260] sm:$0xff]  ;;  %v3228_v47 = vld [vmem:[%s6478_s2 + $0x1f0] sm:$0xff] }
  0x18   : > { %4636 = vmatprep.subr.bf16.mxu0 %v5202_v17  ;;  %v5261_v36 = vsel %vm1152_vm0, %v1158_v30, %v1159_v31  ;;  %v3275_v44 = vld [vmem:[%s6478_s2 + $0x268] sm:$0xff]  ;;  %v4523_v45 = vpack.c.bf16 %v3227_v42, %v3226_v41  ;;  %v3229_v48 = vld [vmem:[%s6478_s2 + $0x1f8] sm:$0xff]  ;;  %v3276_v49 = vld [vmem:[%s6478_s2 + $0x270] sm:$0xff] }
  0x19   : > { %6553 = vst [vmem:[#allocation7_spill] sm:$0xff] %v5261_v36  ;;  %4131 = vmatprep.mubr.f32.mxu0 %v5261_v36  ;;  %6554 = vst [vmem:[#allocation8_spill] sm:$0xff] %v5272_v40  ;;  %v5288_v46 = vpack.c.bf16 %v3275_v44, %v3274_v43  ;;  %v3277_v50 = vld [vmem:[%s6478_s2 + $0x278] sm:$0xff]  ;;  %v4527_v51 = vpack.c.bf16 %v3229_v48, %v3228_v47  ;;  %v347_v53 = vld [vmem:[%s6478_s2] sm:$0xff] }
  0x1a   : > { %4510 = vmatpush3.bf16.msra.mxu1 %v4507_v16  ;;  %v5304_v52 = vpack.c.bf16 %v3277_v50, %v3276_v49  ;;  %v348_v54 = vld [vmem:[%s6478_s2 + $0x8] sm:$0xff]  ;;  %v3278_v56 = vld [vmem:[%s6478_s2 + $0x380] sm:$0xff]  ;;  %v5322_v58 = vld [vmem:[%s5221_s28 + $0x30] sm:$0xff] }
  0x1b   : > { %4638 = vmatpush3.bf16.msra.mxu0 %v5202_v17  ;;  %4512 = vmatprep.subr.bf16.mxu1 %v4511_v22  ;;  %6555 = vst [vmem:[#allocation9_spill] sm:$0xff] %v5288_v46  ;;  %v5313_v55 = vld [vmem:[%s5221_s28 + $0x28] sm:$0x3]  ;;  %v5325_v59 = vld [vmem:[%s5221_s28 + $0x38] sm:$0xff]  ;;  %v4531_v60 = vpack.c.bf16 %v348_v54, %v347_v53  ;;  %v5331_v63 = vld [vmem:[%s5221_s28 + $0x40] sm:$0x3] }
  0x1c   : > { %4640 = vmatprep.subr.bf16.mxu0 %v5225_v23  ;;  %6556 = vst [vmem:[#allocation10_spill] sm:$0xff] %v5304_v52  ;;  %v3279_v57 = vld [vmem:[%s6478_s2 + $0x388] sm:$0xff]  ;;  %v1161_v61 = vrot.slane %v5313_v55, 1  ;;  %v3280_v0 = vld [vmem:[%s6478_s2 + $0x390] sm:$0xff]  ;;  %v1163_v1 = vrot.slane %v5322_v58, 1  ;;  %v1164_v2 = vrot.slane %v5325_v59, 1 }
  0x1d   : > { %v4659_v62 = vpack.c.bf16 %v3279_v57, %v3278_v56  ;;  %v3281_v3 = vld [vmem:[%s6478_s2 + $0x398] sm:$0xff]  ;;  %v5342_v4 = vld [vmem:[%s5221_s28 + $0x48] sm:$0xff]  ;;  %v5345_v5 = vld [vmem:[%s5221_s28 + $0x50] sm:$0xff]  ;;  %v1166_v10 = vrot.slane %v5331_v63, 1 }
  0x1e   : > { %4514 = vmatpush3.bf16.msra.mxu1 %v4511_v22  ;;  %v349_v6 = vld [vmem:[%s6478_s2 + $0x10] sm:$0xff]  ;;  %v350_v8 = vld [vmem:[%s6478_s2 + $0x18] sm:$0xff]  ;;  %v5357_v9 = vsel %vm1152_vm0, %v1159_v31, %v1161_v61  ;;  %v4663_v11 = vpack.c.bf16 %v3281_v3, %v3280_v0  ;;  %v1168_v13 = vrot.slane %v5342_v4, 1  ;;  %v1169_v14 = vrot.slane %v5345_v5, 1  ;;  %v3282_v16 = vld [vmem:[%s6478_s2 + $0x3a0] sm:$0xff] }
  0x1f   : > { %4642 = vmatpush3.bf16.msra.mxu0 %v5225_v23  ;;  %4516 = vmatprep.subr.bf16.mxu1 %v4515_v32  ;;  %6557 = vst [vmem:[#allocation11_spill] sm:$0xff] %v5357_v9  ;;  %v5363_v15 = vld [vmem:[%s5221_s28 + $0x58] sm:$0x3]  ;;  %v5370_v18 = vsel %vm1152_vm0, %v1163_v1, %v1164_v2  ;;  %v4535_v19 = vpack.c.bf16 %v350_v8, %v349_v6  ;;  %v3283_v20 = vld [vmem:[%s6478_s2 + $0x3a8] sm:$0xff]  ;;  %v5376_v21 = vld [vmem:[%s5221_s28 + $0x60] sm:$0xff] }
  0x20   : > { %4644 = vmatprep.subr.bf16.mxu0 %v5250_v33  ;;  %6558 = vst [vmem:[#allocation12_spill] sm:$0xff] %v5370_v18  ;;  %v5379_v22 = vld [vmem:[%s5221_s28 + $0x68] sm:$0xff]  ;;  %v351_v24 = vld [vmem:[%s6478_s2 + $0x20] sm:$0xff]  ;;  %v5390_v27 = vsel %vm1152_vm0, %v1164_v2, %v1166_v10  ;;  %v1171_v28 = vrot.slane %v5363_v15, 1  ;;  %v5395_v30 = vsel %vm1152_vm0, %v1168_v13, %v1169_v14  ;;  %v4667_v31 = vpack.c.bf16 %v3283_v20, %v3282_v16  ;;  %v5400_v35 = vld [vmem:[%s5221_s28 + $0x70] sm:$0x3] }
  0x21   : > { %v352_v25 = vld [vmem:[%s6478_s2 + $0x28] sm:$0xff]  ;;  %6559 = vst [vmem:[#allocation13_spill] sm:$0xff] %v5390_v27  ;;  %6560 = vst [vmem:[#allocation14_spill] sm:$0xff] %v5395_v30  ;;  %v1174_v34 = vrot.slane %v5379_v22, 1  ;;  %v3284_v37 = vld [vmem:[%s6478_s2 + $0x3b0] sm:$0xff]  ;;  %v1176_v47 = vrot.slane %v5400_v35, 1 }
  0x22   : > { %4518 = vmatpush3.bf16.msra.mxu1 %v4515_v32  ;;  %v1173_v32 = vrot.slane %v5376_v21, 1  ;;  %v3285_v38 = vld [vmem:[%s6478_s2 + $0x3b8] sm:$0xff]  ;;  %v5413_v41 = vld [vmem:[%s5221_s28 + $0x80] sm:$0xff]  ;;  %v4539_v42 = vpack.c.bf16 %v352_v25, %v351_v24  ;;  %v353_v43 = vld [vmem:[%s6478_s2 + $0x30] sm:$0xff] }
  0x23   : > { %4646 = vmatpush3.bf16.msra.mxu0 %v5250_v33  ;;  %4520 = vmatprep.subr.bf16.mxu1 %v4519_v39  ;;  %v354_v44 = vld [vmem:[%s6478_s2 + $0x38] sm:$0xff]  ;;  %v4671_v49 = vpack.c.bf16 %v3285_v38, %v3284_v37  ;;  %v5434_v53 = vld [vmem:[%s5221_s28 + $0x88] sm:$0x3]  ;;  %v3286_v54 = vld [vmem:[%s6478_s2 + $0x3c0] sm:$0xff]  ;;  %v5459_v1 = vsel %vm1152_vm0, %v1174_v34, %v1176_v47 }
  0x24   : > { %4648 = vmatprep.subr.bf16.mxu0 %v5272_v40  ;;  %v5429_v48 = vsel %vm1152_vm0, %v1173_v32, %v1174_v34  ;;  %v3287_v56 = vld [vmem:[%s6478_s2 + $0x3c8] sm:$0xff]  ;;  %v5444_v57 = vld [vmem:[%s5221_s28 + $0x90] sm:$0xff]  ;;  %v4543_v61 = vpack.c.bf16 %v354_v44, %v353_v43  ;;  %6563 = vst [vmem:[#allocation17_spill] sm:$0xff] %v5459_v1  ;;  %v1181_v2 = vrot.slane %v5434_v53, 1  ;;  %v358_v25 = vld [vmem:[%s6478_s2 + $0x58] sm:$0xff] }
  0x25   : > { %6562 = vst [vmem:[#allocation16_spill] sm:$0xff] %v5429_v48  ;;  %v356_v0 = vld [vmem:[%s6478_s2 + $0x48] sm:$0xff]  ;;  %v4675_v6 = vpack.c.bf16 %v3287_v56, %v3286_v54  ;;  %v1183_v8 = vrot.slane %v5444_v57, 1  ;;  %v3288_v13 = vld [vmem:[%s6478_s2 + $0x3d0] sm:$0xff]  ;;  %v3290_v43 = vld [vmem:[%s6478_s2 + $0x3e0] sm:$0xff] }
  0x26   : > { %4522 = vmatpush3.bf16.msra.mxu1 %v4519_v39  ;;  %v5410_v39 = vld [vmem:[%s5221_s28 + $0x78] sm:$0xff]  ;;  %v5478_v16 = vld [vmem:[%s5221_s28 + $0xa8] sm:$0xff]  ;;  %v357_v24 = vld [vmem:[%s6478_s2 + $0x50] sm:$0xff] }
  0x27   : > { %4650 = vmatpush3.bf16.msra.mxu0 %v5272_v40  ;;  %4524 = vmatprep.subr.bf16.mxu1 %v4523_v45  ;;  %v1178_v50 = vrot.slane %v5410_v39, 1  ;;  %v1188_v37 = vrot.slane %v5478_v16, 1  ;;  %v3291_v44 = vld [vmem:[%s6478_s2 + $0x3e8] sm:$0xff]  ;;  %v5512_v47 = vld [vmem:[%s5221_s28 + $0xc0] sm:$0xff] }
  0x28   : > { %4652 = vmatprep.subr.bf16.mxu0 %v5288_v46  ;;  %v360_v54 = vld [vmem:[%s6478_s2 + $0x68] sm:$0xff] }
  0x2a   : > { %4526 = vmatpush3.bf16.msra.mxu1 %v4523_v45  ;;  %v5425_v45 = vsel %vm1152_vm0, %v1169_v14, %v1171_v28  ;;  %v3289_v14 = vld [vmem:[%s6478_s2 + $0x3d8] sm:$0xff] }
  0x2b   : > { %4654 = vmatpush3.bf16.msra.mxu0 %v5288_v46  ;;  %4528 = vmatprep.subr.bf16.mxu1 %v4527_v51  ;;  %6561 = vst [vmem:[#allocation15_spill] sm:$0xff] %v5425_v45  ;;  %v4679_v34 = vpack.c.bf16 %v3289_v14, %v3288_v13  ;;  %v5536_v13 = vld [vmem:[%s5221_s28 + $0xd0] sm:$0x3]  ;;  %v5660_v46 = vld [vmem:[%s5221_s28 + $0x140] sm:$0xff] }
  0x2c   : > { %4656 = vmatprep.subr.bf16.mxu0 %v5304_v52 }
  0x2e   : > { %4530 = vmatpush3.bf16.msra.mxu1 %v4527_v51  ;;  %v1179_v51 = vrot.slane %v5413_v41, 1 }
  0x2f   : > { %4658 = vmatpush3.bf16.msra.mxu0 %v5304_v52  ;;  %4532 = vmatprep.subr.bf16.mxu1 %v4531_v60  ;;  %v3305_v52 = vld [vmem:[%s6478_s2 + $0x158] sm:$0xff] }
  0x30   : > { %4660 = vmatprep.subr.bf16.mxu0 %v4659_v62  ;;  %v5463_v3 = vsel %vm1152_vm0, %v1178_v50, %v1179_v51  ;;  %v5493_v28 = vsel %vm1152_vm0, %v1179_v51, %v1181_v2  ;;  %v4551_v50 = vpack.c.bf16 %v358_v25, %v357_v24  ;;  %v359_v51 = vld [vmem:[%s6478_s2 + $0x60] sm:$0xff]  ;;  %v1193_v2 = vrot.slane %v5512_v47, 1  ;;  %v362_v24 = vld [vmem:[%s6478_s2 + $0x78] sm:$0xff] }
  0x31   : > { %3812 = vmatmul.mubr.f32.vlgmr.msra.gmra.mrb[0].mxu1 %v5244_v29  ;;  %6564 = vst [vmem:[#allocation18_spill] sm:$0xff] %v5463_v3  ;;  %6565 = vst [vmem:[#allocation19_spill] sm:$0xff] %v5493_v28  ;;  %v4555_v14 = vpack.c.bf16 %v360_v54, %v359_v51  ;;  %v3231_v51 = vld [vmem:[%s6478_s2 + $0x308] sm:$0xff] }
  0x32   : > { %4132 = vmatmul.mubr.f32.vlgmr.msra.gmra.mrb[0].mxu0 %v5357_v9  ;;  %4534 = vmatpush3.bf16.msra.mxu1 %v4531_v60  ;;  %v5447_v60 = vld [vmem:[%s5221_s28 + $0x98] sm:$0xff] }
  0x33   : > { %4662 = vmatpush3.bf16.msra.mxu0 %v4659_v62  ;;  %3814 = vmatprep.mubr.f32.mxu1 %v5322_v58  ;;  %v355_v62 = vld [vmem:[%s6478_s2 + $0x40] sm:$0xff]  ;;  %v1184_v10 = vrot.slane %v5447_v60, 1 }
  0x34   : > { %4134 = vmatprep.mubr.f32.mxu0 %v5370_v18  ;;  %4664 = vmatprep.subr.bf16.mxu0 %v4663_v11  ;;  %v4547_v20 = vpack.c.bf16 %v356_v0, %v355_v62  ;;  %v4683_v0 = vpack.c.bf16 %v3291_v44, %v3290_v43 }
  0x35   : > { %3815 = vmatmul.mubr.f32.gmra.mrb[2].mxu1 %v5325_v59  ;;  %4536 = vmatprep.subr.bf16.mxu1 %v4535_v19  ;;  %v5497_v32 = vsel %vm1152_vm0, %v1183_v8, %v1184_v10 }
  0x36   : > { %4135 = vmatmul.mubr.f32.gmra.mrb[2].mxu0 %v5390_v27  ;;  %3817 = vmatprep.mubr.f32.mxu1 %v5342_v4  ;;  %6566 = vst [vmem:[#allocation20_spill] sm:$0xff] %v5497_v32 }
  0x37   : > { %4666 = vmatpush3.bf16.msra.mxu0 %v4663_v11  ;;  %4137 = vmatprep.mubr.f32.mxu0 %v5395_v30  ;;  %v5468_v11 = vld [vmem:[%s5221_s28 + $0xa0] sm:$0x3] }
  0x38   : > { %4668 = vmatprep.subr.bf16.mxu0 %v4667_v31  ;;  %4538 = vmatpush3.bf16.msra.mxu1 %v4535_v19  ;;  %v5481_v19 = vld [vmem:[%s5221_s28 + $0xb0] sm:$0xff] }
  0x39   : > { %3818 = vmatmul.mubr.f32.gmra.mrb[4].mxu1 %v5345_v5  ;;  %4540 = vmatprep.subr.bf16.mxu1 %v4539_v42  ;;  %v1189_v38 = vrot.slane %v5481_v19, 1 }
  0x3a   : > { %4138 = vmatmul.mubr.f32.gmra.mrb[4].mxu0 %v5425_v45  ;;  %3820 = vmatprep.mubr.f32.mxu1 %v5376_v21 }
  0x3b   : > { %4670 = vmatpush3.bf16.msra.mxu0 %v4667_v31  ;;  %4140 = vmatprep.mubr.f32.mxu0 %v5429_v48  ;;  %v1186_v31 = vrot.slane %v5468_v11, 1  ;;  %v5531_v62 = vsel %vm1152_vm0, %v1188_v37, %v1189_v38 }
  0x3c   : > { %4672 = vmatprep.subr.bf16.mxu0 %v4671_v49  ;;  %4542 = vmatpush3.bf16.msra.mxu1 %v4539_v42  ;;  %v5502_v42 = vld [vmem:[%s5221_s28 + $0xb8] sm:$0x3]  ;;  %6568 = vst [vmem:[#allocation22_spill] sm:$0xff] %v5531_v62 }
  0x3d   : > { %3821 = vmatmul.mubr.f32.gmra.mrb[6].mxu1 %v5379_v22  ;;  %4544 = vmatprep.subr.bf16.mxu1 %v4543_v61  ;;  %v5527_v56 = vsel %vm1152_vm0, %v1184_v10, %v1186_v31  ;;  %v3293_v10 = vld [vmem:[%s6478_s2 + $0x3f8] sm:$0xff]  ;;  %v1196_v31 = vrot.slane %v5536_v13, 1 }
  0x3e   : > { %4141 = vmatmul.mubr.f32.gmra.mrb[6].mxu0 %v5459_v1  ;;  %3823 = vmatprep.mubr.f32.mxu1 %v5410_v39  ;;  %6567 = vst [vmem:[#allocation21_spill] sm:$0xff] %v5527_v56 }
  0x3f   : > { %4674 = vmatpush3.bf16.msra.mxu0 %v4671_v49  ;;  %4143 = vmatprep.mubr.f32.mxu0 %v5463_v3  ;;  %v5515_v49 = vld [vmem:[%s5221_s28 + $0xc8] sm:$0xff] }
  0x40   : > { %4676 = vmatprep.subr.bf16.mxu0 %v4675_v6  ;;  %4546 = vmatpush3.bf16.msra.mxu1 %v4543_v61  ;;  %v1191_v61 = vrot.slane %v5502_v42, 1  ;;  %v1194_v8 = vrot.slane %v5515_v49, 1 }
  0x41   : > { %3824 = vmatmul.mubr.f32.gmra.mrb[8].mxu1 %v5413_v41  ;;  %4548 = vmatprep.subr.bf16.mxu1 %v4547_v20 }
  0x42   : > { %4144 = vmatmul.mubr.f32.gmra.mrb[8].mxu0 %v5493_v28  ;;  %3826 = vmatprep.mubr.f32.mxu1 %v5444_v57  ;;  %v5555_v25 = vsel %vm1152_vm0, %v1189_v38, %v1191_v61  ;;  %v5559_v37 = vsel %vm1152_vm0, %v1193_v2, %v1194_v8  ;;  %v3295_v38 = vld [vmem:[%s6478_s2 + $0x108] sm:$0xff]  ;;  %v5578_v54 = vsel %vm1152_vm0, %v1194_v8, %v1196_v31  ;;  %v5581_v61 = vld [vmem:[%s5221_s28 + $0xd8] sm:$0xff]  ;;  %v5595_v8 = vld [vmem:[%s5221_s28 + $0xe0] sm:$0xff] }
  0x43   : > { %4678 = vmatpush3.bf16.msra.mxu0 %v4675_v6  ;;  %4146 = vmatprep.mubr.f32.mxu0 %v5497_v32  ;;  %v3292_v6 = vld [vmem:[%s6478_s2 + $0x3f0] sm:$0xff]  ;;  %6569 = vst [vmem:[#allocation23_spill] sm:$0xff] %v5555_v25  ;;  %6570 = vst [vmem:[#allocation24_spill] sm:$0xff] %v5559_v37  ;;  %v3299_v31 = vld [vmem:[%s6478_s2 + $0x128] sm:$0xff] }
  0x44   : > { %4680 = vmatprep.subr.bf16.mxu0 %v4679_v34  ;;  %4550 = vmatpush3.bf16.msra.mxu1 %v4547_v20  ;;  %v361_v20 = vld [vmem:[%s6478_s2 + $0x70] sm:$0xff]  ;;  %v4687_v43 = vpack.c.bf16 %v3293_v10, %v3292_v6  ;;  %6571 = vst [vmem:[#allocation25_spill] sm:$0xff] %v5578_v54 }
  0x45   : > { %3827 = vmatmul.mubr.f32.gmra.mrb[10].mxu1 %v5447_v60  ;;  %4552 = vmatprep.subr.bf16.mxu1 %v4551_v50  ;;  %v4559_v44 = vpack.c.bf16 %v362_v24, %v361_v20  ;;  %v3296_v6 = vld [vmem:[%s6478_s2 + $0x110] sm:$0xff]  ;;  %v3298_v24 = vld [vmem:[%s6478_s2 + $0x120] sm:$0xff] }
  0x46   : > { %4147 = vmatmul.mubr.f32.gmra.mrb[10].mxu0 %v5527_v56  ;;  %3829 = vmatprep.mubr.f32.mxu1 %v5478_v16 }
  0x47   : > { %4682 = vmatpush3.bf16.msra.mxu0 %v4679_v34  ;;  %4149 = vmatprep.mubr.f32.mxu0 %v5531_v62  ;;  %v3294_v34 = vld [vmem:[%s6478_s2 + $0x100] sm:$0xff] }
  0x48   : > { %4684 = vmatprep.subr.bf16.mxu0 %v4683_v0  ;;  %4554 = vmatpush3.bf16.msra.mxu1 %v4551_v50  ;;  %v3230_v50 = vld [vmem:[%s6478_s2 + $0x300] sm:$0xff]  ;;  %v4691_v2 = vpack.c.bf16 %v3295_v38, %v3294_v34  ;;  %v5616_v34 = vld [vmem:[%s5221_s28 + $0x108] sm:$0xff]  ;;  %v4699_v38 = vpack.c.bf16 %v3299_v31, %v3298_v24  ;;  %v5648_v31 = vld [vmem:[%s5221_s28 + $0x138] sm:$0xff] }
  0x49   : > { %3830 = vmatmul.mubr.f32.gmra.mrb[12].mxu1 %v5481_v19  ;;  %4556 = vmatprep.subr.bf16.mxu1 %v4555_v14  ;;  %v5590_v10 = vpack.c.bf16 %v3231_v51, %v3230_v50  ;;  %v3301_v50 = vld [vmem:[%s6478_s2 + $0x138] sm:$0xff]  ;;  %v5628_v51 = vld [vmem:[%s5221_s28 + $0x110] sm:$0xff]  ;;  %v3303_v24 = vld [vmem:[%s6478_s2 + $0x148] sm:$0xff] }
  0x4a   : > { %4150 = vmatmul.mubr.f32.gmra.mrb[12].mxu0 %v5555_v25  ;;  %3832 = vmatprep.mubr.f32.mxu1 %v5512_v47 }
  0x4b   : > { %4686 = vmatpush3.bf16.msra.mxu0 %v4683_v0  ;;  %4152 = vmatprep.mubr.f32.mxu0 %v5559_v37  ;;  %v3297_v0 = vld [vmem:[%s6478_s2 + $0x118] sm:$0xff] }
  0x4c   : > { %4688 = vmatprep.subr.bf16.mxu0 %v4687_v43  ;;  %4558 = vmatpush3.bf16.msra.mxu1 %v4555_v14  ;;  %v5599_v14 = vld [vmem:[%s5221_s28 + $0xf0] sm:$0xff]  ;;  %v4695_v20 = vpack.c.bf16 %v3297_v0, %v3296_v6  ;;  %v3302_v0 = vld [vmem:[%s6478_s2 + $0x140] sm:$0xff] }
  0x4d   : > { %3833 = vmatmul.mubr.f32.gmra.mrb[14].mxu1 %v5515_v49  ;;  %4560 = vmatprep.subr.bf16.mxu1 %v4559_v44  ;;  %v1203_v33 = vrot.slane %v5599_v14, 1 }
  0x4e   : > { %4153 = vmatmul.mubr.f32.gmra.mrb[14].mxu0 %v5578_v54  ;;  %3835 = vmatprep.mubr.f32.mxu1 %v5581_v61 }
  0x4f   : > { %4690 = vmatpush3.bf16.msra.mxu0 %v4687_v43  ;;  %4211 = vmatprep.mubr.f32.mxu0 %v5370_v18  ;;  %v5612_v43 = vld [vmem:[%s5221_s28 + $0xf8] sm:$0xff] }
  0x50   : > { %4692 = vmatprep.subr.bf16.mxu0 %v4691_v2  ;;  %4562 = vmatpush3.bf16.msra.mxu1 %v4559_v44  ;;  %v3300_v44 = vld [vmem:[%s6478_s2 + $0x130] sm:$0xff]  ;;  %v5746_v18 = vld [vmem:[%s5221_s28 + $0x118] sm:$0x3] }
  0x51   : > { %3836 = vmatmul.mubr.f32.gmra.mrb[16].mxu1 %v5595_v8  ;;  %4564 = vmatprep.subr.bf16.mxu1 %v5590_v10  ;;  %v4703_v6 = vpack.c.bf16 %v3301_v50, %v3300_v44  ;;  %v4707_v44 = vpack.c.bf16 %v3303_v24, %v3302_v0  ;;  %v3304_v50 = vld [vmem:[%s6478_s2 + $0x150] sm:$0xff]  ;;  %v3306_v24 = vld [vmem:[%s6478_s2 + $0x160] sm:$0xff]  ;;  %v1211_v12 = vrot.slane %v5746_v18, 1 }
  0x52   : > { %4212 = vmatmul.mubr.f32.vlgmr.msra.gmra.mrb[0].mxu0 %v5390_v27  ;;  %3838 = vmatprep.mubr.f32.mxu1 %v5599_v14  ;;  %v4711_v0 = vpack.c.bf16 %v3305_v52, %v3304_v50  ;;  %v5682_v52 = vld [vmem:[%s5221_s28 + $0x168] sm:$0xff]  ;;  %v1198_v50 = vrot.slane %v5581_v61, 1  ;;  %v1209_v27 = vrot.slane %v5628_v51, 1 }
  0x53   : > { %4694 = vmatpush3.bf16.msra.mxu0 %v4691_v2  ;;  %4214 = vmatprep.mubr.f32.mxu0 %v5395_v30  ;;  %v5632_v2 = vld [vmem:[%s5221_s28 + $0x120] sm:$0xff]  ;;  %v1208_v30 = vrot.slane %v5616_v34, 1 }
  0x54   : > { %4696 = vmatprep.subr.bf16.mxu0 %v4695_v20 }
  0x55   : > { %3839 = vmatmul.mubr.f32.gmra.mrb[18].mxu1 %v5612_v43  ;;  %v5771_v9 = vsel %vm1152_vm0, %v1208_v30, %v1209_v27  ;;  %v3234_v30 = vld [vmem:[%s6478_s2 + $0x320] sm:$0xff] }
  0x56   : > { %4215 = vmatmul.mubr.f32.gmra.mrb[2].mxu0 %v5425_v45  ;;  %3841 = vmatprep.mubr.f32.mxu1 %v5616_v34  ;;  %6580 = vst [vmem:[#allocation34_spill] sm:$0xff] %v5771_v9 }
  0x57   : > { %4217 = vmatprep.mubr.f32.mxu0 %v5429_v48  ;;  %4698 = vmatpush3.bf16.msra.mxu0 %v4695_v20  ;;  %v5644_v20 = vld [vmem:[%s5221_s28 + $0x128] sm:$0xff]  ;;  %v5717_v48 = vld [vmem:[%s5221_s28 + $0x100] sm:$0x3] }
  0x58   : > { %4700 = vmatprep.subr.bf16.mxu0 %v4699_v38  ;;  %6575 = vst [vmem:[#allocation29_spill] sm:$0xff] %v5717_v48  ;;  %v1206_v23 = vrot.slane %v5717_v48, 1  ;;  %v1214_v7 = vrot.slane %v5644_v20, 1 }
  0x59   : > { %3842 = vmatmul.mubr.f32.gmra.mrb[20].mxu1 %v5628_v51 }
  0x5a   : > { %4218 = vmatmul.mubr.f32.gmra.mrb[4].mxu0 %v5459_v1  ;;  %3844 = vmatprep.mubr.f32.mxu1 %v5632_v2 }
  0x5b   : > { %4220 = vmatprep.mubr.f32.mxu0 %v5463_v3  ;;  %4702 = vmatpush3.bf16.msra.mxu0 %v4699_v38  ;;  %v5664_v38 = vld [vmem:[%s5221_s28 + $0x150] sm:$0xff] }
  0x5c   : > { %4704 = vmatprep.subr.bf16.mxu0 %v4703_v6  ;;  %v5704_v3 = vld [vmem:[%s5221_s28 + $0x170] sm:$0xff] }
  0x5d   : > { %3845 = vmatmul.mubr.f32.gmra.mrb[22].mxu1 %v5644_v20 }
  0x5e   : > { %4221 = vmatmul.mubr.f32.gmra.mrb[6].mxu0 %v5493_v28  ;;  %3847 = vmatprep.mubr.f32.mxu1 %v5648_v31  ;;  %v3307_v28 = vld [vmem:[%s6478_s2 + $0x168] sm:$0xff] }
  0x5f   : > { %4223 = vmatprep.mubr.f32.mxu0 %v5497_v32  ;;  %4706 = vmatpush3.bf16.msra.mxu0 %v4703_v6  ;;  %v5678_v6 = vld [vmem:[%s5221_s28 + $0x158] sm:$0xff]  ;;  %v5692_v32 = vld [vmem:[%s5221_s28 + $0xe8] sm:$0x3]  ;;  %v4715_v40 = vpack.c.bf16 %v3307_v28, %v3306_v24  ;;  %v5708_v28 = vld [vmem:[%s5687_s6] sm:$0xff] }
  0x60   : > { %4708 = vmatprep.subr.bf16.mxu0 %v4707_v44  ;;  %6572 = vst [vmem:[#allocation26_spill] sm:$0xff] %v5692_v32  ;;  %6573 = vst [vmem:[#allocation27_spill] sm:$0xff] %v5708_v28  ;;  %v1201_v24 = vrot.slane %v5692_v32, 1  ;;  %v5778_v32 = vld [vmem:[%s5221_s28 + $0x130] sm:$0x3] }
  0x61   : > { %3848 = vmatmul.mubr.f32.gmra.mrb[24].mxu1 %v5660_v46 }
  0x62   : > { %4224 = vmatmul.mubr.f32.gmra.mrb[8].mxu0 %v5527_v56  ;;  %3850 = vmatprep.mubr.f32.mxu1 %v5664_v38  ;;  %v1199_v56 = vrot.slane %v5595_v8, 1 }
  0x63   : > { %4226 = vmatprep.mubr.f32.mxu0 %v5531_v62  ;;  %4710 = vmatpush3.bf16.msra.mxu0 %v4707_v44  ;;  %v3308_v44 = vld [vmem:[%s6478_s2 + $0x170] sm:$0xff]  ;;  %v3309_v62 = vld [vmem:[%s6478_s2 + $0x178] sm:$0xff] }
  0x64   : > { %4712 = vmatprep.subr.bf16.mxu0 %v4711_v0  ;;  %v5712_v1 = vsel %vm1152_vm0, %v1198_v50, %v1199_v56  ;;  %v4719_v45 = vpack.c.bf16 %v3309_v62, %v3308_v44  ;;  %v5729_v50 = vld [vmem:[%s5687_s6 + $0x8] sm:$0xff]  ;;  %v5733_v62 = vsel %vm1152_vm0, %v1199_v56, %v1201_v24  ;;  %v5736_v44 = vld [vmem:[%s5221_s28] sm:$0xff] }
  0x65   : > { %3851 = vmatmul.mubr.f32.gmra.mrb[26].mxu1 %v5678_v6  ;;  %6574 = vst [vmem:[#allocation28_spill] sm:$0xff] %v5712_v1  ;;  %6576 = vst [vmem:[#allocation30_spill] sm:$0xff] %v5729_v50  ;;  %v5752_v24 = vld [vmem:[%s5221_s28 + $0x8] sm:$0xff] }
  0x66   : > { %4227 = vmatmul.mubr.f32.gmra.mrb[10].mxu0 %v5555_v25  ;;  %3853 = vmatprep.mubr.f32.mxu1 %v5682_v52  ;;  %v1204_v25 = vrot.slane %v5612_v43, 1  ;;  %6577 = vst [vmem:[#allocation31_spill] sm:$0xff] %v5733_v62 }
  0x67   : > { %4229 = vmatprep.mubr.f32.mxu0 %v5559_v37  ;;  %4714 = vmatpush3.bf16.msra.mxu0 %v4711_v0  ;;  %v3310_v37 = vld [vmem:[%s6478_s2 + $0x280] sm:$0xff]  ;;  %v3311_v0 = vld [vmem:[%s6478_s2 + $0x288] sm:$0xff] }
  0x68   : > { %4716 = vmatprep.subr.bf16.mxu0 %v4715_v40  ;;  %v5743_v17 = vsel %vm1152_vm0, %v1203_v33, %v1204_v25  ;;  %v5748_v56 = vpack.c.bf16 %v3311_v0, %v3310_v37  ;;  %v5763_v33 = vld [vmem:[%s5221_s28 + $0x10] sm:$0x3]  ;;  %v1154_v37 = vrot.slane %v5752_v24, 1  ;;  %v5768_v0 = vsel %vm1152_vm0, %v1204_v25, %v1206_v23 }
  0x69   : > { %3854 = vmatmul.mubr.f32.gmra.mrb[28].mxu1 %v5704_v3  ;;  %6578 = vst [vmem:[#allocation32_spill] sm:$0xff] %v5743_v17  ;;  %6579 = vst [vmem:[#allocation33_spill] sm:$0xff] %v5768_v0  ;;  %v1156_v36 = vrot.slane %v5763_v33, 1  ;;  %v5799_v25 = vsel %vm1152_vm0, %v1209_v27, %v1211_v12  ;;  %v3236_v12 = vld [vmem:[%s6478_s2 + $0x330] sm:$0xff]  ;;  %v3237_v27 = vld [vmem:[%s6478_s2 + $0x338] sm:$0xff] }
  0x6a   : > { %4230 = vmatmul.mubr.f32.gmra.mrb[12].mxu0 %v5578_v54  ;;  %3856 = vmatprep.mubr.f32.mxu1 %v5708_v28  ;;  %v1153_v54 = vrot.slane %v5736_v44, 1  ;;  %6583 = vst [vmem:[#allocation37_spill] sm:$0xff] %v5799_v25 }
  0x6b   : > { %4232 = vmatprep.mubr.f32.mxu0 %v5712_v1  ;;  %4718 = vmatpush3.bf16.msra.mxu0 %v4715_v40  ;;  %v3232_v1 = vld [vmem:[%s6478_s2 + $0x310] sm:$0xff]  ;;  %v3233_v40 = vld [vmem:[%s6478_s2 + $0x318] sm:$0xff] }
  0x6c   : > { %4720 = vmatprep.subr.bf16.mxu0 %v4719_v45  ;;  %v4567_v48 = vpack.c.bf16 %v3233_v40, %v3232_v1  ;;  %v5782_v23 = vsel %vm1152_vm0, %v1153_v54, %v1154_v37  ;;  %v5792_v1 = vsel %vm1152_vm0, %v1154_v37, %v1156_v36  ;;  %v1216_v54 = vrot.slane %v5778_v32, 1 }
  0x6d   : > { %3857 = vmatmul.mubr.f32.gmra.mrb[30].mxu1 %v5729_v50  ;;  %6581 = vst [vmem:[#allocation35_spill] sm:$0xff] %v5782_v23  ;;  %6582 = vst [vmem:[#allocation36_spill] sm:$0xff] %v5792_v1  ;;  %v1218_v36 = vrot.slane %v5648_v31, 1  ;;  %v1219_v37 = vrot.slane %v5660_v46, 1  ;;  %v4575_v1 = vpack.c.bf16 %v3237_v27, %v3236_v12  ;;  %v1228_v27 = vrot.slane %v5682_v52, 1 }
  0x6e   : > { %4233 = vmatmul.mubr.f32.gmra.mrb[14].mxu0 %v5733_v62  ;;  %3891 = vmatprep.mubr.f32.mxu1 %v5736_v44  ;;  %v1213_v62 = vrot.slane %v5632_v2, 1  ;;  %v5852_v23 = vld [vmem:[%s5221_s28 + $0x178] sm:$0x3] }
  0x6f   : > { %4235 = vmatprep.mubr.f32.mxu0 %v5743_v17  ;;  %4722 = vmatpush3.bf16.msra.mxu0 %v4719_v45  ;;  %v3235_v45 = vld [vmem:[%s6478_s2 + $0x328] sm:$0xff]  ;;  %v1224_v17 = vrot.slane %v5678_v6, 1  ;;  %6590 = vst [vmem:[#allocation44_spill] sm:$0xff] %v5852_v23 }
  0x70   : > { %4724 = vmatprep.subr.bf16.mxu0 %v5748_v56  ;;  %v5803_v40 = vsel %vm1152_vm0, %v1213_v62, %v1214_v7  ;;  %v5821_v62 = vsel %vm1152_vm0, %v1214_v7, %v1216_v54  ;;  %v3238_v7 = vld [vmem:[%s6478_s2 + $0x340] sm:$0xff] }
  0x71   : > { %3892 = vmatmul.mubr.f32.vlgmr.msra.gmra.mrb[0].mxu1 %v5752_v24  ;;  %6584 = vst [vmem:[#allocation38_spill] sm:$0xff] %v5803_v40  ;;  %6585 = vst [vmem:[#allocation39_spill] sm:$0xff] %v5821_v62 }
  0x72   : > { %4236 = vmatmul.mubr.f32.gmra.mrb[16].mxu0 %v5768_v0  ;;  %4566 = vmatpush3.bf16.msra.mxu1 %v5590_v10  ;;  %v5808_v0 = vld [vmem:[%s5221_s28 + $0x148] sm:$0x3]  ;;  %v4571_v10 = vpack.c.bf16 %v3235_v45, %v3234_v30  ;;  %v5825_v45 = vsel %vm1152_vm0, %v1218_v36, %v1219_v37 }
  0x73   : > { %3894 = vmatprep.mubr.f32.mxu1 %v5234_v26  ;;  %4238 = vmatprep.mubr.f32.mxu0 %v5771_v9  ;;  %v1221_v30 = vrot.slane %v5808_v0, 1  ;;  %6586 = vst [vmem:[#allocation40_spill] sm:$0xff] %v5825_v45  ;;  %v1223_v9 = vrot.slane %v5664_v38, 1 }
  0x74   : > { %4568 = vmatprep.subr.bf16.mxu1 %v4567_v48 }
  0x75   : > { %3895 = vmatmul.mubr.f32.gmra.mrb[2].mxu1 %v5244_v29  ;;  %v5843_v54 = vsel %vm1152_vm0, %v1219_v37, %v1221_v30  ;;  %v5847_v12 = vsel %vm1152_vm0, %v1223_v9, %v1224_v17  ;;  %v3240_v37 = vld [vmem:[%s6478_s2 + $0x350] sm:$0xff]  ;;  %v3241_v9 = vld [vmem:[%s6478_s2 + $0x358] sm:$0xff]  ;;  %v1231_v30 = vrot.slane %v5852_v23, 1  ;;  %v5902_v23 = vld [vmem:[%s5687_s6 + $0x28] sm:$0x3] }
  0x76   : > { %4239 = vmatmul.mubr.f32.gmra.mrb[18].mxu0 %v5799_v25  ;;  %3897 = vmatprep.mubr.f32.mxu1 %v5322_v58  ;;  %v5830_v25 = vld [vmem:[%s5221_s28 + $0x160] sm:$0x3]  ;;  %6588 = vst [vmem:[#allocation42_spill] sm:$0xff] %v5843_v54  ;;  %6589 = vst [vmem:[#allocation43_spill] sm:$0xff] %v5847_v12 }
  0x77   : > { %4241 = vmatprep.mubr.f32.mxu0 %v5803_v40  ;;  %4570 = vmatpush3.bf16.msra.mxu1 %v4567_v48  ;;  %6587 = vst [vmem:[#allocation41_spill] sm:$0xff] %v5830_v25  ;;  %v3239_v48 = vld [vmem:[%s6478_s2 + $0x348] sm:$0xff]  ;;  %v1226_v36 = vrot.slane %v5830_v25, 1  ;;  %v1229_v40 = vrot.slane %v5704_v3, 1  ;;  %v5874_v25 = vld [vmem:[%s5687_s6 + $0x10] sm:$0x3] }
  0x78   : > { %4572 = vmatprep.subr.bf16.mxu1 %v4571_v10  ;;  %6593 = vst [vmem:[#allocation47_spill] sm:$0xff] %v5874_v25 }
  0x79   : > { %3898 = vmatmul.mubr.f32.gmra.mrb[4].mxu1 %v5325_v59 }
  0x7a   : > { %4242 = vmatmul.mubr.f32.gmra.mrb[20].mxu0 %v5821_v62  ;;  %3900 = vmatprep.mubr.f32.mxu1 %v5342_v4  ;;  %v4579_v62 = vpack.c.bf16 %v3239_v48, %v3238_v7  ;;  %v5869_v7 = vsel %vm1152_vm0, %v1228_v27, %v1229_v40  ;;  %v1542_v48 = vrot.slane %v5708_v28, 1  ;;  %v5893_v27 = vsel %vm1152_vm0, %v1229_v40, %v1231_v30  ;;  %v3244_v40 = vld [vmem:[%s6478_s2 + $0x370] sm:$0xff] }
  0x7b   : > { %4244 = vmatprep.mubr.f32.mxu0 %v5825_v45  ;;  %4574 = vmatpush3.bf16.msra.mxu1 %v4571_v10  ;;  %v5865_v10 = vsel %vm1152_vm0, %v1224_v17, %v1226_v36  ;;  %6592 = vst [vmem:[#allocation46_spill] sm:$0xff] %v5869_v7  ;;  %v1543_v45 = vrot.slane %v5729_v50, 1  ;;  %v5881_v17 = vld [vmem:[%s5687_s6 + $0x20] sm:$0xff]  ;;  %v3243_v36 = vld [vmem:[%s6478_s2 + $0x368] sm:$0xff] }
  0x7c   : > { %4576 = vmatprep.subr.bf16.mxu1 %v4575_v1  ;;  %6591 = vst [vmem:[#allocation45_spill] sm:$0xff] %v5865_v10  ;;  %v1827_v28 = vrot.slane %v5881_v17, 1 }
  0x7d   : > { %3901 = vmatmul.mubr.f32.gmra.mrb[6].mxu1 %v5345_v5 }
  0x7e   : > { %4245 = vmatmul.mubr.f32.gmra.mrb[22].mxu0 %v5843_v54  ;;  %3903 = vmatprep.mubr.f32.mxu1 %v5376_v21  ;;  %v5877_v54 = vld [vmem:[%s5687_s6 + $0x18] sm:$0xff] }
  0x7f   : > { %4247 = vmatprep.mubr.f32.mxu0 %v5847_v12  ;;  %4578 = vmatpush3.bf16.msra.mxu1 %v4575_v1  ;;  %v4583_v12 = vpack.c.bf16 %v3241_v9, %v3240_v37  ;;  %v3242_v1 = vld [vmem:[%s6478_s2 + $0x360] sm:$0xff]  ;;  %v1545_v37 = vrot.slane %v5874_v25, 1  ;;  %v5897_v9 = vsel %vm1152_vm0, %v1542_v48, %v1543_v45  ;;  %v1826_v50 = vrot.slane %v5877_v54, 1 }
  0x80   : > { %4580 = vmatprep.subr.bf16.mxu1 %v4579_v62  ;;  %6594 = vst [vmem:[#allocation48_spill] sm:$0xff] %v5897_v9  ;;  %v1829_v48 = vrot.slane %v5902_v23, 1 }
  0x81   : > { %3904 = vmatmul.mubr.f32.gmra.mrb[8].mxu1 %v5379_v22  ;;  %v5915_v30 = vsel %vm1152_vm0, %v1543_v45, %v1545_v37  ;;  %v3247_v45 = vld [vmem:[%s6478_s2 + $0x88] sm:$0xff]  ;;  %v2114_v37 = vrot.slane %v5244_v29, 2  ;;  %v2116_v29 = vrot.slane %v5313_v55, 2 }
  0x82   : > { %4248 = vmatmul.mubr.f32.gmra.mrb[24].mxu0 %v5865_v10  ;;  %3906 = vmatprep.mubr.f32.mxu1 %v5410_v39  ;;  %v4587_v10 = vpack.c.bf16 %v3243_v36, %v3242_v1  ;;  %v2108_v1 = vrot.slane %v5736_v44, 2  ;;  %v1828_v36 = vsel %vm1152_vm0, %v1826_v50, %v1827_v28  ;;  %v1830_v50 = vsel %vm1152_vm0, %v1827_v28, %v1829_v48  ;;  %v3313_v28 = vld [vmem:[%s6478_s2 + $0x298] sm:$0xff]  ;;  %v3315_v55 = vld [vmem:[%s6478_s2 + $0x2a8] sm:$0xff] }
  0x83   : > { %4250 = vmatprep.mubr.f32.mxu0 %v5869_v7  ;;  %4582 = vmatpush3.bf16.msra.mxu1 %v4579_v62  ;;  %v3245_v62 = vld [vmem:[%s6478_s2 + $0x378] sm:$0xff]  ;;  %v2109_v7 = vrot.slane %v5752_v24, 2  ;;  %v2111_v44 = vrot.slane %v5763_v33, 2 }
  0x84   : > { %4584 = vmatprep.subr.bf16.mxu1 %v4583_v12  ;;  %v4591_v25 = vpack.c.bf16 %v3245_v62, %v3244_v40  ;;  %v3312_v62 = vld [vmem:[%s6478_s2 + $0x290] sm:$0xff] }
  0x85   : > { %3907 = vmatmul.mubr.f32.gmra.mrb[10].mxu1 %v5413_v41  ;;  %v2110_v24 = vsel %vm2107_vm1, %v2108_v1, %v2109_v7  ;;  %v4727_v48 = vpack.c.bf16 %v3313_v28, %v3312_v62  ;;  %v3314_v1 = vld [vmem:[%s6478_s2 + $0x2a0] sm:$0xff]  ;;  %v3319_v62 = vld [vmem:[%s6478_s2 + $0x2c8] sm:$0xff]  ;;  %v2133_v28 = vrot.slane %v5410_v39, 2 }
  0x86   : > { %4251 = vmatmul.mubr.f32.gmra.mrb[26].mxu0 %v5893_v27  ;;  %3909 = vmatprep.mubr.f32.mxu1 %v5444_v57 }
  0x87   : > { %4253 = vmatprep.mubr.f32.mxu0 %v5897_v9  ;;  %4586 = vmatpush3.bf16.msra.mxu1 %v4583_v12  ;;  %v3246_v9 = vld [vmem:[%s6478_s2 + $0x80] sm:$0xff]  ;;  %v2113_v12 = vrot.slane %v5234_v26, 2  ;;  %v2112_v26 = vsel %vm2107_vm1, %v2109_v7, %v2111_v44  ;;  %v2123_v7 = vrot.slane %v5342_v4, 2  ;;  %v2126_v4 = vrot.slane %v5363_v15, 2 }
  0x88   : > { %4588 = vmatprep.subr.bf16.mxu1 %v4587_v10  ;;  %v5935_v40 = vpack.c.bf16 %v3247_v45, %v3246_v9  ;;  %v2119_v9 = vrot.slane %v5325_v59, 2  ;;  %v2121_v59 = vrot.slane %v5331_v63, 2  ;;  %v4731_v45 = vpack.c.bf16 %v3315_v55, %v3314_v1 }
  0x89   : > { %3910 = vmatmul.mubr.f32.gmra.mrb[12].mxu1 %v5447_v60  ;;  %v5948_v33 = vsel %vm2107_vm1, %v2113_v12, %v2114_v37  ;;  %v2128_v44 = vrot.slane %v5376_v21, 2  ;;  %v2131_v21 = vrot.slane %v5400_v35, 2  ;;  %v3321_v35 = vld [vmem:[%s6478_s2 + $0x2d8] sm:$0xff]  ;;  %v2138_v1 = vrot.slane %v5444_v57, 2 }
  0x8a   : > { %4254 = vmatmul.mubr.f32.gmra.mrb[28].mxu0 %v5915_v30  ;;  %3912 = vmatprep.mubr.f32.mxu1 %v5478_v16  ;;  %v5983_v63 = vsel %vm2107_vm1, %v2119_v9, %v2121_v59  ;;  %v2139_v55 = vrot.slane %v5447_v60, 2 }
  0x8b   : > { %4256 = vmatprep.mubr.f32.mxu0 %v1828_v36  ;;  %4590 = vmatpush3.bf16.msra.mxu1 %v4587_v10  ;;  %v2118_v10 = vrot.slane %v5322_v58, 2  ;;  %v5964_v58 = vsel %vm2107_vm1, %v2114_v37, %v2116_v29  ;;  %v2124_v36 = vrot.slane %v5345_v5, 2  ;;  %v3318_v37 = vld [vmem:[%s6478_s2 + $0x2c0] sm:$0xff] }
  0x8c   : > { %4592 = vmatprep.subr.bf16.mxu1 %v4591_v25  ;;  %v4739_v29 = vpack.c.bf16 %v3319_v62, %v3318_v37  ;;  %v2148_v62 = vrot.slane %v5512_v47, 2 }
  0x8d   : > { %3913 = vmatmul.mubr.f32.gmra.mrb[14].mxu1 %v5481_v19  ;;  %v5987_v5 = vsel %vm2107_vm1, %v2123_v7, %v2124_v36  ;;  %v6002_v15 = vsel %vm2107_vm1, %v2124_v36, %v2126_v4  ;;  %v3322_v7 = vld [vmem:[%s6478_s2 + $0x2e0] sm:$0xff]  ;;  %v2141_v36 = vrot.slane %v5468_v11, 2  ;;  %v3325_v11 = vld [vmem:[%s6478_s2 + $0x2f8] sm:$0xff] }
  0x8e   : > { %4257 = vmatmul.mubr.f32.gmra.mrb[30].mxu0 %v1830_v50  ;;  %3915 = vmatprep.mubr.f32.mxu1 %v5512_v47  ;;  %v3317_v50 = vld [vmem:[%s6478_s2 + $0x2b8] sm:$0xff] }
  0x8f   : > { %4291 = vmatprep.mubr.f32.mxu0 %v2110_v24  ;;  %4594 = vmatpush3.bf16.msra.mxu1 %v4591_v25  ;;  %v5968_v25 = vsel %vm2107_vm1, %v2118_v10, %v2119_v9  ;;  %v2129_v24 = vrot.slane %v5379_v22, 2  ;;  %v3320_v10 = vld [vmem:[%s6478_s2 + $0x2d0] sm:$0xff]  ;;  %v2136_v9 = vrot.slane %v5434_v53, 2  ;;  %v3323_v53 = vld [vmem:[%s6478_s2 + $0x2e8] sm:$0xff] }
  0x90   : > { %4596 = vmatprep.subr.bf16.mxu1 %v5935_v40  ;;  %v4743_v59 = vpack.c.bf16 %v3321_v35, %v3320_v10  ;;  %v4747_v4 = vpack.c.bf16 %v3323_v53, %v3322_v7  ;;  %v2151_v10 = vrot.slane %v5536_v13, 2  ;;  %v3249_v13 = vld [vmem:[%s6478_s2 + $0x98] sm:$0xff]  ;;  %v5086_v7 = vld [vmem:[%s5221_s28 + $0x30] sm:$0xff] }
  0x91   : > { %3916 = vmatmul.mubr.f32.gmra.mrb[16].mxu1 %v5515_v49  ;;  %v6006_v22 = vsel %vm2107_vm1, %v2128_v44, %v2129_v24  ;;  %v3324_v44 = vld [vmem:[%s6478_s2 + $0x2f0] sm:$0xff] }
  0x92   : > { %4292 = vmatmul.mubr.f32.vlgmr.msra.gmra.mrb[0].mxu0 %v2112_v26  ;;  %3918 = vmatprep.mubr.f32.mxu1 %v5581_v61  ;;  %v2134_v26 = vrot.slane %v5413_v41, 2  ;;  %v6021_v41 = vsel %vm2107_vm1, %v2129_v24, %v2131_v21  ;;  %v6059_v24 = vsel %vm2107_vm1, %v2139_v55, %v2141_v36  ;;  %v2149_v21 = vrot.slane %v5515_v49, 2  ;;  %v6595_v36 = vld [vmem:[#allocation26_spill] sm:$0xff] }
  0x93   : > { %4726 = vmatpush3.bf16.msra.mxu0 %v5748_v56  ;;  %4294 = vmatprep.mubr.f32.mxu0 %v5948_v33  ;;  %v3316_v56 = vld [vmem:[%s6478_s2 + $0x2b0] sm:$0xff] }
  0x94   : > { %4728 = vmatprep.subr.bf16.mxu0 %v4727_v48  ;;  %v4735_v12 = vpack.c.bf16 %v3317_v50, %v3316_v56  ;;  %v6040_v60 = vsel %vm2107_vm1, %v2134_v26, %v2136_v9  ;;  %v2143_v56 = vrot.slane %v5478_v16, 2  ;;  %v2144_v50 = vrot.slane %v5481_v19, 2 }
  0x95   : > { %3919 = vmatmul.mubr.f32.gmra.mrb[18].mxu1 %v5595_v8  ;;  %v6082_v35 = vsel %vm2107_vm1, %v2148_v62, %v2149_v21  ;;  %v2153_v9 = vrot.slane %v5581_v61, 2  ;;  %v6099_v53 = vsel %vm2107_vm1, %v2149_v21, %v2151_v10  ;;  %v3250_v62 = vld [vmem:[%s6478_s2 + $0xa0] sm:$0xff]  ;;  %v3251_v21 = vld [vmem:[%s6478_s2 + $0xa8] sm:$0xff] }
  0x96   : > { %4295 = vmatmul.mubr.f32.gmra.mrb[2].mxu0 %v5964_v58  ;;  %3921 = vmatprep.mubr.f32.mxu1 %v5599_v14  ;;  %v6063_v37 = vsel %vm2107_vm1, %v2143_v56, %v2144_v50  ;;  %v2156_v56 = vrot.slane %v6595_v36, 2  ;;  %v3252_v36 = vld [vmem:[%s6478_s2 + $0xb0] sm:$0xff] }
  0x97   : > { %4297 = vmatprep.mubr.f32.mxu0 %v5968_v25  ;;  %4730 = vmatpush3.bf16.msra.mxu0 %v4727_v48  ;;  %v6025_v48 = vsel %vm2107_vm1, %v2133_v28, %v2134_v26  ;;  %v4751_v28 = vpack.c.bf16 %v3325_v11, %v3324_v44  ;;  %v3326_v26 = vld [vmem:[%s6478_s2 + $0x400] sm:$0xff]  ;;  %v2159_v44 = vrot.slane %v5612_v43, 2 }
  0x98   : > { %4732 = vmatprep.subr.bf16.mxu0 %v4731_v45 }
  0x99   : > { %3922 = vmatmul.mubr.f32.gmra.mrb[20].mxu1 %v5612_v43 }
  0x9a   : > { %4298 = vmatmul.mubr.f32.gmra.mrb[4].mxu0 %v5983_v63  ;;  %3924 = vmatprep.mubr.f32.mxu1 %v5616_v34 }
  0x9b   : > { %4300 = vmatprep.mubr.f32.mxu0 %v5987_v5  ;;  %4734 = vmatpush3.bf16.msra.mxu0 %v4731_v45  ;;  %v6044_v45 = vsel %vm2107_vm1, %v2138_v1, %v2139_v55  ;;  %v2154_v1 = vrot.slane %v5595_v8, 2 }
  0x9c   : > { %4736 = vmatprep.subr.bf16.mxu0 %v4735_v12 }
  0x9d   : > { %3925 = vmatmul.mubr.f32.gmra.mrb[22].mxu1 %v5628_v51 }
  0x9e   : > { %4301 = vmatmul.mubr.f32.gmra.mrb[6].mxu0 %v6002_v15  ;;  %3927 = vmatprep.mubr.f32.mxu1 %v5632_v2 }
  0x9f   : > { %4303 = vmatprep.mubr.f32.mxu0 %v6006_v22  ;;  %4738 = vmatpush3.bf16.msra.mxu0 %v4735_v12  ;;  %v2146_v12 = vrot.slane %v5502_v42, 2  ;;  %v3327_v42 = vld [vmem:[%s6478_s2 + $0x408] sm:$0xff] }
  0xa0   : > { %4740 = vmatprep.subr.bf16.mxu0 %v4739_v29  ;;  %v6086_v55 = vpack.c.bf16 %v3327_v42, %v3326_v26  ;;  %v6120_v26 = vsel %vm2107_vm1, %v2154_v1, %v2156_v56  ;;  %v6596_v42 = vld [vmem:[#allocation29_spill] sm:$0xff]  ;;  %v5090_v56 = vld [vmem:[%s5221_s28 + $0x60] sm:$0xff] }
  0xa1   : > { %3928 = vmatmul.mubr.f32.gmra.mrb[24].mxu1 %v5644_v20  ;;  %v2161_v10 = vrot.slane %v6596_v42, 2 }
  0xa2   : > { %4304 = vmatmul.mubr.f32.gmra.mrb[8].mxu0 %v6021_v41  ;;  %3930 = vmatprep.mubr.f32.mxu1 %v5648_v31 }
  0xa3   : > { %4306 = vmatprep.mubr.f32.mxu0 %v6025_v48  ;;  %4742 = vmatpush3.bf16.msra.mxu0 %v4739_v29  ;;  %v6078_v29 = vsel %vm2107_vm1, %v2144_v50, %v2146_v12  ;;  %v6103_v50 = vsel %vm2107_vm1, %v2153_v9, %v2154_v1  ;;  %v5087_v12 = vld [vmem:[%s5221_s28 + $0x38] sm:$0xff] }
  0xa4   : > { %4744 = vmatprep.subr.bf16.mxu0 %v4743_v59  ;;  %v3253_v1 = vld [vmem:[%s6478_s2 + $0xb8] sm:$0xff] }
  0xa5   : > { %3931 = vmatmul.mubr.f32.gmra.mrb[26].mxu1 %v5660_v46  ;;  %v4607_v42 = vpack.c.bf16 %v3253_v1, %v3252_v36  ;;  %v2173_v36 = vrot.slane %v5648_v31, 2  ;;  %v2174_v1 = vrot.slane %v5660_v46, 2 }
  0xa6   : > { %4307 = vmatmul.mubr.f32.gmra.mrb[10].mxu0 %v6040_v60  ;;  %3933 = vmatprep.mubr.f32.mxu1 %v5664_v38 }
  0xa7   : > { %4309 = vmatprep.mubr.f32.mxu0 %v6044_v45  ;;  %4746 = vmatpush3.bf16.msra.mxu0 %v4743_v59  ;;  %v3248_v59 = vld [vmem:[%s6478_s2 + $0x90] sm:$0xff] }
  0xa8   : > { %4748 = vmatprep.subr.bf16.mxu0 %v4747_v4  ;;  %v4599_v11 = vpack.c.bf16 %v3249_v13, %v3248_v59  ;;  %v2163_v59 = vrot.slane %v5616_v34, 2  ;;  %v2164_v13 = vrot.slane %v5628_v51, 2 }
  0xa9   : > { %3934 = vmatmul.mubr.f32.gmra.mrb[28].mxu1 %v5678_v6 }
  0xaa   : > { %4310 = vmatmul.mubr.f32.gmra.mrb[12].mxu0 %v6059_v24  ;;  %3936 = vmatprep.mubr.f32.mxu1 %v5682_v52 }
  0xab   : > { %4312 = vmatprep.mubr.f32.mxu0 %v6063_v37  ;;  %4750 = vmatpush3.bf16.msra.mxu0 %v4747_v4  ;;  %v2158_v4 = vrot.slane %v5599_v14, 2 }
  0xac   : > { %4752 = vmatprep.subr.bf16.mxu0 %v4751_v28 }
  0xad   : > { %3937 = vmatmul.mubr.f32.gmra.mrb[30].mxu1 %v5704_v3  ;;  %v6124_v9 = vsel %vm2107_vm1, %v2158_v4, %v2159_v44  ;;  %v6139_v4 = vsel %vm2107_vm1, %v2159_v44, %v2161_v10  ;;  %v3254_v44 = vld [vmem:[%s6478_s2 + $0xc0] sm:$0xff]  ;;  %v2171_v10 = vrot.slane %v5778_v32, 2  ;;  %v3257_v32 = vld [vmem:[%s6478_s2 + $0xd8] sm:$0xff] }
  0xae   : > { %4313 = vmatmul.mubr.f32.gmra.mrb[14].mxu0 %v6078_v29  ;;  %3971 = vmatprep.mubr.f32.mxu1 %v5086_v7  ;;  %v4603_v7 = vpack.c.bf16 %v3251_v21, %v3250_v62  ;;  %v6143_v62 = vsel %vm2107_vm1, %v2163_v59, %v2164_v13  ;;  %v2168_v21 = vrot.slane %v5632_v2, 2 }
  0xaf   : > { %4315 = vmatprep.mubr.f32.mxu0 %v6082_v35  ;;  %4754 = vmatpush3.bf16.msra.mxu0 %v4751_v28  ;;  %v5088_v28 = vld [vmem:[%s5221_s28 + $0x48] sm:$0xff] }
  0xb0   : > { %4756 = vmatprep.subr.bf16.mxu0 %v6086_v55 }
  0xb1   : > { %3972 = vmatmul.mubr.f32.vlgmr.msra.gmra.mrb[0].mxu1 %v5087_v12  ;;  %v2166_v12 = vrot.slane %v5746_v18, 2  ;;  %v3255_v18 = vld [vmem:[%s6478_s2 + $0xc8] sm:$0xff] }
  0xb2   : > { %4316 = vmatmul.mubr.f32.gmra.mrb[16].mxu0 %v6099_v53  ;;  %4598 = vmatpush3.bf16.msra.mxu1 %v5935_v40  ;;  %v5089_v40 = vld [vmem:[%s5221_s28 + $0x50] sm:$0xff] }
  0xb3   : > { %3974 = vmatprep.mubr.f32.mxu1 %v5088_v28  ;;  %4318 = vmatprep.mubr.f32.mxu0 %v6103_v50  ;;  %v2169_v28 = vrot.slane %v5644_v20, 2 }
  0xb4   : > { %4600 = vmatprep.subr.bf16.mxu1 %v4599_v11 }
  0xb5   : > { %3975 = vmatmul.mubr.f32.gmra.mrb[2].mxu1 %v5089_v40  ;;  %v5091_v40 = vld [vmem:[%s5221_s28 + $0x68] sm:$0xff]  ;;  %v6162_v59 = vsel %vm2107_vm1, %v2168_v21, %v2169_v28  ;;  %v2178_v21 = vrot.slane %v5664_v38, 2 }
  0xb6   : > { %4319 = vmatmul.mubr.f32.gmra.mrb[18].mxu0 %v6120_v26  ;;  %3977 = vmatprep.mubr.f32.mxu1 %v5090_v56  ;;  %v4611_v56 = vpack.c.bf16 %v3255_v18, %v3254_v44  ;;  %v2179_v44 = vrot.slane %v5678_v6, 2 }
  0xb7   : > { %4321 = vmatprep.mubr.f32.mxu0 %v6124_v9  ;;  %4602 = vmatpush3.bf16.msra.mxu1 %v4599_v11  ;;  %v6158_v11 = vsel %vm2107_vm1, %v2164_v13, %v2166_v12  ;;  %v6177_v13 = vsel %vm2107_vm1, %v2169_v28, %v2171_v10  ;;  %v6181_v12 = vsel %vm2107_vm1, %v2173_v36, %v2174_v1 }
  0xb8   : > { %4604 = vmatprep.subr.bf16.mxu1 %v4603_v7  ;;  %v6200_v36 = vsel %vm2107_vm1, %v2178_v21, %v2179_v44 }
  0xb9   : > { %3978 = vmatmul.mubr.f32.gmra.mrb[4].mxu1 %v5091_v40  ;;  %v5092_v40 = vld [vmem:[%s5221_s28 + $0x80] sm:$0xff] }
  0xba   : > { %4322 = vmatmul.mubr.f32.gmra.mrb[20].mxu0 %v6139_v4  ;;  %3980 = vmatprep.mubr.f32.mxu1 %v5410_v39  ;;  %v3256_v39 = vld [vmem:[%s6478_s2 + $0xd0] sm:$0xff] }
  0xbb   : > { %4324 = vmatprep.mubr.f32.mxu0 %v6143_v62  ;;  %4606 = vmatpush3.bf16.msra.mxu1 %v4603_v7  ;;  %v2176_v7 = vrot.slane %v5808_v0, 2  ;;  %v4615_v18 = vpack.c.bf16 %v3257_v32, %v3256_v39  ;;  %v3259_v0 = vld [vmem:[%s6478_s2 + $0xe8] sm:$0xff]  ;;  %v2183_v39 = vrot.slane %v5682_v52, 2  ;;  %v2184_v32 = vrot.slane %v5704_v3, 2 }
  0xbc   : > { %4608 = vmatprep.subr.bf16.mxu1 %v4607_v42 }
  0xbd   : > { %3981 = vmatmul.mubr.f32.gmra.mrb[6].mxu1 %v5092_v40  ;;  %v5093_v40 = vld [vmem:[%s5221_s28 + $0x98] sm:$0xff]  ;;  %v6196_v28 = vsel %vm2107_vm1, %v2174_v1, %v2176_v7  ;;  %v6598_v7 = vld [vmem:[#allocation44_spill] sm:$0xff] }
  0xbe   : > { %4325 = vmatmul.mubr.f32.gmra.mrb[22].mxu0 %v6158_v11  ;;  %3983 = vmatprep.mubr.f32.mxu1 %v5444_v57  ;;  %v3258_v57 = vld [vmem:[%s6478_s2 + $0xe0] sm:$0xff]  ;;  %v3261_v1 = vld [vmem:[%s6478_s2 + $0xf8] sm:$0xff]  ;;  %v2186_v21 = vrot.slane %v6598_v7, 2  ;;  %v6606_v7 = vld [vmem:[#allocation11_spill] sm:$0xff] }
  0xbf   : > { %4327 = vmatprep.mubr.f32.mxu0 %v6162_v59  ;;  %4610 = vmatpush3.bf16.msra.mxu1 %v4607_v42  ;;  %v6597_v42 = vld [vmem:[#allocation41_spill] sm:$0xff] }
  0xc0   : > { %4612 = vmatprep.subr.bf16.mxu1 %v4611_v56  ;;  %v2181_v10 = vrot.slane %v6597_v42, 2  ;;  %v3339_v42 = vld [vmem:[%s6478_s2 + $0x468] sm:$0xff] }
  0xc1   : > { %3984 = vmatmul.mubr.f32.gmra.mrb[8].mxu1 %v5093_v40  ;;  %v4619_v40 = vpack.c.bf16 %v3259_v0, %v3258_v57  ;;  %v3331_v0 = vld [vmem:[%s6478_s2 + $0x428] sm:$0xff] }
  0xc2   : > { %4328 = vmatmul.mubr.f32.gmra.mrb[24].mxu0 %v6177_v13  ;;  %3986 = vmatprep.mubr.f32.mxu1 %v5478_v16  ;;  %v3260_v16 = vld [vmem:[%s6478_s2 + $0xf0] sm:$0xff] }
  0xc3   : > { %4330 = vmatprep.mubr.f32.mxu0 %v6181_v12  ;;  %4614 = vmatpush3.bf16.msra.mxu1 %v4611_v56  ;;  %v6215_v56 = vsel %vm2107_vm1, %v2179_v44, %v2181_v10  ;;  %v4623_v57 = vpack.c.bf16 %v3261_v1, %v3260_v16  ;;  %v3328_v44 = vld [vmem:[%s6478_s2 + $0x410] sm:$0xff]  ;;  %v3341_v10 = vld [vmem:[%s6478_s2 + $0x478] sm:$0xff]  ;;  %v6604_v16 = vld [vmem:[#allocation7_spill] sm:$0xff] }
  0xc4   : > { %4616 = vmatprep.subr.bf16.mxu1 %v4615_v18  ;;  %v6605_v1 = vld [vmem:[#allocation3_spill] sm:$0xff] }
  0xc5   : > { %3987 = vmatmul.mubr.f32.gmra.mrb[10].mxu1 %v5481_v19  ;;  %v6219_v19 = vsel %vm2107_vm1, %v2183_v39, %v2184_v32  ;;  %v6600_v39 = vld [vmem:[#allocation27_spill] sm:$0xff] }
  0xc6   : > { %4331 = vmatmul.mubr.f32.gmra.mrb[26].mxu0 %v6196_v28  ;;  %3989 = vmatprep.mubr.f32.mxu1 %v5512_v47  ;;  %v6226_v47 = vsel %vm2107_vm1, %v2184_v32, %v2186_v21  ;;  %v6601_v32 = vld [vmem:[#allocation30_spill] sm:$0xff]  ;;  %v6607_v21 = vld [vmem:[#allocation12_spill] sm:$0xff] }
  0xc7   : > { %4333 = vmatprep.mubr.f32.mxu0 %v6200_v36  ;;  %4618 = vmatpush3.bf16.msra.mxu1 %v4615_v18  ;;  %v6599_v18 = vld [vmem:[#allocation2_spill] sm:$0xff] }
  0xc8   : > { %4620 = vmatprep.subr.bf16.mxu1 %v4619_v40 }
  0xc9   : > { %3990 = vmatmul.mubr.f32.gmra.mrb[12].mxu1 %v5515_v49  ;;  %v3329_v49 = vld [vmem:[%s6478_s2 + $0x418] sm:$0xff] }
  0xca   : > { %4334 = vmatmul.mubr.f32.gmra.mrb[28].mxu0 %v6215_v56  ;;  %3992 = vmatprep.mubr.f32.mxu1 %v5581_v61  ;;  %v4759_v61 = vpack.c.bf16 %v3329_v49, %v3328_v44  ;;  %v6609_v44 = vld [vmem:[#allocation13_spill] sm:$0xff]  ;;  %v6610_v49 = vld [vmem:[#allocation14_spill] sm:$0xff] }
  0xcb   : > { %4336 = vmatprep.mubr.f32.mxu0 %v6219_v19  ;;  %4622 = vmatpush3.bf16.msra.mxu1 %v4619_v40  ;;  %v6603_v40 = vld [vmem:[#allocation36_spill] sm:$0xff] }
  0xcc   : > { %4624 = vmatprep.subr.bf16.mxu1 %v4623_v57 }
  0xcd   : > { %3993 = vmatmul.mubr.f32.gmra.mrb[14].mxu1 %v5595_v8  ;;  %v3330_v8 = vld [vmem:[%s6478_s2 + $0x420] sm:$0xff] }
  0xce   : > { %4337 = vmatmul.mubr.f32.gmra.mrb[30].mxu0 %v6226_v47  ;;  %3995 = vmatprep.mubr.f32.mxu1 %v5599_v14  ;;  %v4763_v14 = vpack.c.bf16 %v3331_v0, %v3330_v8  ;;  %v6613_v8 = vld [vmem:[#allocation16_spill] sm:$0xff]  ;;  %v6614_v0 = vld [vmem:[#allocation6_spill] sm:$0xff] }
  0xcf   : > { %4371 = vmatprep.mubr.f32.mxu0 %v5948_v33  ;;  %4626 = vmatpush3.bf16.msra.mxu1 %v4623_v57  ;;  %v3333_v33 = vld [vmem:[%s6478_s2 + $0x438] sm:$0xff]  ;;  %v6608_v57 = vld [vmem:[#allocation4_spill] sm:$0xff] }
  0xd0   : > { %4787 = vmatprep.subr.bf16.mxu1 %v6599_v18 }
  0xd1   : > { %3996 = vmatmul.mubr.f32.gmra.mrb[16].mxu1 %v5612_v43  ;;  %v3332_v43 = vld [vmem:[%s6478_s2 + $0x430] sm:$0xff] }
  0xd2   : > { %4372 = vmatmul.mubr.f32.vlgmr.msra.gmra.mrb[0].mxu0 %v5964_v58  ;;  %3998 = vmatprep.mubr.f32.mxu1 %v5616_v34  ;;  %v4767_v34 = vpack.c.bf16 %v3333_v33, %v3332_v43  ;;  %v3335_v58 = vld [vmem:[%s6478_s2 + $0x448] sm:$0xff]  ;;  %v6616_v43 = vld [vmem:[#allocation18_spill] sm:$0xff]  ;;  %v2494_v33 = vrot.slane %v6600_v39, 2 }
  0xd3   : > { %4758 = vmatpush3.bf16.msra.mxu0 %v6086_v55  ;;  %4374 = vmatprep.mubr.f32.mxu0 %v5968_v25  ;;  %v3337_v55 = vld [vmem:[%s6478_s2 + $0x458] sm:$0xff] }
  0xd4   : > { %4760 = vmatprep.subr.bf16.mxu0 %v4759_v61 }
  0xd5   : > { %3999 = vmatmul.mubr.f32.gmra.mrb[18].mxu1 %v5628_v51  ;;  %v3334_v51 = vld [vmem:[%s6478_s2 + $0x440] sm:$0xff] }
  0xd6   : > { %4375 = vmatmul.mubr.f32.gmra.mrb[2].mxu0 %v5983_v63  ;;  %4001 = vmatprep.mubr.f32.mxu1 %v5632_v2  ;;  %v4771_v2 = vpack.c.bf16 %v3335_v58, %v3334_v51  ;;  %v6617_v51 = vld [vmem:[#allocation8_spill] sm:$0xff]  ;;  %v6618_v58 = vld [vmem:[#allocation19_spill] sm:$0xff] }
  0xd7   : > { %4377 = vmatprep.mubr.f32.mxu0 %v5987_v5  ;;  %4762 = vmatpush3.bf16.msra.mxu0 %v4759_v61  ;;  %v6611_v61 = vld [vmem:[#allocation5_spill] sm:$0xff] }
  0xd8   : > { %4764 = vmatprep.subr.bf16.mxu0 %v4763_v14 }
  0xd9   : > { %4002 = vmatmul.mubr.f32.gmra.mrb[20].mxu1 %v5644_v20  ;;  %v3336_v20 = vld [vmem:[%s6478_s2 + $0x450] sm:$0xff] }
  0xda   : > { %4378 = vmatmul.mubr.f32.gmra.mrb[4].mxu0 %v6002_v15  ;;  %4004 = vmatprep.mubr.f32.mxu1 %v5648_v31  ;;  %v4775_v31 = vpack.c.bf16 %v3337_v55, %v3336_v20  ;;  %v6620_v20 = vld [vmem:[#allocation47_spill] sm:$0xff] }
  0xdb   : > { %4380 = vmatprep.mubr.f32.mxu0 %v6006_v22  ;;  %4766 = vmatpush3.bf16.msra.mxu0 %v4763_v14  ;;  %v6615_v14 = vld [vmem:[#allocation17_spill] sm:$0xff]  ;;  %v2497_v55 = vrot.slane %v6620_v20, 2 }
  0xdc   : > { %4768 = vmatprep.subr.bf16.mxu0 %v4767_v34 }
  0xdd   : > { %4005 = vmatmul.mubr.f32.gmra.mrb[22].mxu1 %v5660_v46  ;;  %v3338_v46 = vld [vmem:[%s6478_s2 + $0x460] sm:$0xff] }
  0xde   : > { %4381 = vmatmul.mubr.f32.gmra.mrb[6].mxu0 %v6021_v41  ;;  %4007 = vmatprep.mubr.f32.mxu1 %v5664_v38  ;;  %v4779_v38 = vpack.c.bf16 %v3339_v42, %v3338_v46  ;;  %v6621_v46 = vld [vmem:[#allocation9_spill] sm:$0xff] }
  0xdf   : > { %4383 = vmatprep.mubr.f32.mxu0 %v6025_v48  ;;  %4770 = vmatpush3.bf16.msra.mxu0 %v4767_v34  ;;  %v2495_v34 = vrot.slane %v6601_v32, 2  ;;  %v6622_v42 = vld [vmem:[#allocation21_spill] sm:$0xff] }
  0xe0   : > { %4772 = vmatprep.subr.bf16.mxu0 %v4771_v2 }
  0xe1   : > { %4008 = vmatmul.mubr.f32.gmra.mrb[24].mxu1 %v5678_v6  ;;  %v3340_v6 = vld [vmem:[%s6478_s2 + $0x470] sm:$0xff] }
  0xe2   : > { %4384 = vmatmul.mubr.f32.gmra.mrb[8].mxu0 %v6040_v60  ;;  %4010 = vmatprep.mubr.f32.mxu1 %v5682_v52  ;;  %v4783_v52 = vpack.c.bf16 %v3341_v10, %v3340_v6  ;;  %v6355_v6 = vsel %vm2107_vm1, %v2495_v34, %v2497_v55  ;;  %v6624_v10 = vld [vmem:[#allocation10_spill] sm:$0xff] }
  0xe3   : > { %4386 = vmatprep.mubr.f32.mxu0 %v6044_v45  ;;  %4774 = vmatpush3.bf16.msra.mxu0 %v4771_v2  ;;  %v6619_v2 = vld [vmem:[#allocation20_spill] sm:$0xff] }
  0xe4   : > { %4776 = vmatprep.subr.bf16.mxu0 %v4775_v31 }
  0xe5   : > { %4011 = vmatmul.mubr.f32.gmra.mrb[26].mxu1 %v5704_v3  ;;  %v6602_v3 = vld [vmem:[#allocation35_spill] sm:$0xff] }
  0xe6   : > { %4387 = vmatmul.mubr.f32.gmra.mrb[10].mxu0 %v6059_v24  ;;  %4013 = vmatprep.mubr.f32.mxu1 %v6600_v39  ;;  %v6625_v39 = vld [vmem:[#allocation23_spill] sm:$0xff] }
  0xe7   : > { %4389 = vmatprep.mubr.f32.mxu0 %v6063_v37  ;;  %4778 = vmatpush3.bf16.msra.mxu0 %v4775_v31  ;;  %v6347_v31 = vsel %vm2107_vm1, %v2494_v33, %v2495_v34 }
  0xe8   : > { %4780 = vmatprep.subr.bf16.mxu0 %v4779_v38 }
  0xe9   : > { %4014 = vmatmul.mubr.f32.gmra.mrb[28].mxu1 %v6601_v32  ;;  %v6627_v32 = vld [vmem:[#allocation25_spill] sm:$0xff] }
  0xea   : > { %4390 = vmatmul.mubr.f32.gmra.mrb[12].mxu0 %v6078_v29  ;;  %4016 = vmatprep.mubr.f32.mxu1 %v5877_v54 }
  0xeb   : > { %4392 = vmatprep.mubr.f32.mxu0 %v6082_v35  ;;  %4782 = vmatpush3.bf16.msra.mxu0 %v4779_v38  ;;  %v6623_v38 = vld [vmem:[#allocation22_spill] sm:$0xff] }
  0xec   : > { %4784 = vmatprep.subr.bf16.mxu0 %v4783_v52 }
  0xed   : > { %4017 = vmatmul.mubr.f32.gmra.mrb[30].mxu1 %v5881_v17 }
  0xee   : > { %4393 = vmatmul.mubr.f32.gmra.mrb[14].mxu0 %v6099_v53  ;;  %4051 = vmatprep.mubr.f32.mxu1 %v6602_v3  ;;  %v6628_v3 = vld [vmem:[#allocation28_spill] sm:$0xff] }
  0xef   : > { %4395 = vmatprep.mubr.f32.mxu0 %v6103_v50  ;;  %4786 = vmatpush3.bf16.msra.mxu0 %v4783_v52  ;;  %v6626_v52 = vld [vmem:[#allocation24_spill] sm:$0xff] }
  0xf1   : > { %4052 = vmatmul.mubr.f32.vlgmr.msra.gmra.mrb[0].mxu1 %v6603_v40  ;;  %v6629_v40 = vld [vmem:[#allocation31_spill] sm:$0xff] }
  0xf2   : > { %4396 = vmatmul.mubr.f32.gmra.mrb[16].mxu0 %v6120_v26  ;;  %4795 = vmatpush3.bf16.msra.mxu1 %v6599_v18  ;;  %v6612_v18 = vld [vmem:[#allocation15_spill] sm:$0xff] }
  0xf3   : > { %4054 = vmatprep.mubr.f32.mxu1 %v6604_v16  ;;  %4398 = vmatprep.mubr.f32.mxu0 %v6124_v9  ;;  %v6630_v16 = vld [vmem:[#allocation32_spill] sm:$0xff] }
  0xf4   : > { %4788 = vmatprep.subr.bf16.mxu1 %v6605_v1 }
  0xf5   : > { %4055 = vmatmul.mubr.f32.gmra.mrb[2].mxu1 %v6606_v7 }
  0xf6   : > { %4399 = vmatmul.mubr.f32.gmra.mrb[18].mxu0 %v6139_v4  ;;  %4057 = vmatprep.mubr.f32.mxu1 %v6607_v21 }
  0xf7   : > { %4401 = vmatprep.mubr.f32.mxu0 %v6143_v62  ;;  %4796 = vmatpush3.bf16.msra.mxu1 %v6605_v1  ;;  %v6631_v1 = vld [vmem:[#allocation33_spill] sm:$0xff] }
  0xf8   : > { %4789 = vmatprep.subr.bf16.mxu1 %v6608_v57 }
  0xf9   : > { %4058 = vmatmul.mubr.f32.gmra.mrb[4].mxu1 %v6609_v44 }
  0xfa   : > { %4402 = vmatmul.mubr.f32.gmra.mrb[20].mxu0 %v6158_v11  ;;  %4060 = vmatprep.mubr.f32.mxu1 %v6610_v49 }
  0xfb   : > { %4404 = vmatprep.mubr.f32.mxu0 %v6162_v59  ;;  %4797 = vmatpush3.bf16.msra.mxu1 %v6608_v57 }
  0xfc   : > { %4790 = vmatprep.subr.bf16.mxu1 %v6611_v61 }
  0xfd   : > { %4061 = vmatmul.mubr.f32.gmra.mrb[6].mxu1 %v6612_v18 }
  0xfe   : > { %4405 = vmatmul.mubr.f32.gmra.mrb[22].mxu0 %v6177_v13  ;;  %4063 = vmatprep.mubr.f32.mxu1 %v6613_v8 }
  0xff   : > { %4407 = vmatprep.mubr.f32.mxu0 %v6181_v12  ;;  %4798 = vmatpush3.bf16.msra.mxu1 %v6611_v61 }
 0x100   : > { %4791 = vmatprep.subr.bf16.mxu1 %v6614_v0 }
 0x101   : > { %4064 = vmatmul.mubr.f32.gmra.mrb[8].mxu1 %v6615_v14 }
 0x102   : > { %4408 = vmatmul.mubr.f32.gmra.mrb[24].mxu0 %v6196_v28  ;;  %4066 = vmatprep.mubr.f32.mxu1 %v6616_v43 }
 0x103   : > { %4410 = vmatprep.mubr.f32.mxu0 %v6200_v36  ;;  %4799 = vmatpush3.bf16.msra.mxu1 %v6614_v0 }
 0x104   : > { %4792 = vmatprep.subr.bf16.mxu1 %v6617_v51 }
 0x105   : > { %4067 = vmatmul.mubr.f32.gmra.mrb[10].mxu1 %v6618_v58 }
 0x106   : > { %4411 = vmatmul.mubr.f32.gmra.mrb[26].mxu0 %v6215_v56  ;;  %4069 = vmatprep.mubr.f32.mxu1 %v6619_v2 }
 0x107   : > { %4413 = vmatprep.mubr.f32.mxu0 %v6219_v19  ;;  %4800 = vmatpush3.bf16.msra.mxu1 %v6617_v51 }
 0x108   : > { %4793 = vmatprep.subr.bf16.mxu1 %v6621_v46 }
 0x109   : > { %4070 = vmatmul.mubr.f32.gmra.mrb[12].mxu1 %v6622_v42 }
 0x10a   : > { %4414 = vmatmul.mubr.f32.gmra.mrb[28].mxu0 %v6226_v47  ;;  %4072 = vmatprep.mubr.f32.mxu1 %v6623_v38 }
 0x10b   : > { %4416 = vmatprep.mubr.f32.mxu0 %v6347_v31  ;;  %4801 = vmatpush3.bf16.msra.mxu1 %v6621_v46 }
 0x10c   : > { %4794 = vmatprep.subr.bf16.mxu1 %v6624_v10 }
 0x10d   : > { %4073 = vmatmul.mubr.f32.gmra.mrb[14].mxu1 %v6625_v39 }
 0x10e   : > { %4417 = vmatmul.mubr.f32.gmra.mrb[30].mxu0 %v6355_v6  ;;  %4075 = vmatprep.mubr.f32.mxu1 %v6626_v52 }
 0x10f   : > { %4451 = vmatprep.mubr.f32.mxu0 %v5968_v25  ;;  %4802 = vmatpush3.bf16.msra.mxu1 %v6624_v10  ;;  %v6632_v25 = vld [vmem:[#allocation34_spill] sm:$0xff] }
 0x111   : > { %4076 = vmatmul.mubr.f32.gmra.mrb[16].mxu1 %v6627_v32 }
 0x112   : > { %4452 = vmatmul.mubr.f32.vlgmr.msra.gmra.mrb[0].mxu0 %v5983_v63  ;;  %4078 = vmatprep.mubr.f32.mxu1 %v6628_v3  ;;  %v6633_v63 = vld [vmem:[#allocation37_spill] sm:$0xff] }
 0x113   : > { %4454 = vmatprep.mubr.f32.mxu0 %v5987_v5  ;;  %v6634_v5 = vld [vmem:[#allocation38_spill] sm:$0xff] }
 0x115   : > { %4079 = vmatmul.mubr.f32.gmra.mrb[18].mxu1 %v6629_v40 }
 0x116   : > { %4455 = vmatmul.mubr.f32.gmra.mrb[2].mxu0 %v6002_v15  ;;  %4081 = vmatprep.mubr.f32.mxu1 %v6630_v16  ;;  %v6635_v15 = vld [vmem:[#allocation39_spill] sm:$0xff] }
 0x117   : > { %4457 = vmatprep.mubr.f32.mxu0 %v6006_v22  ;;  %v6636_v22 = vld [vmem:[#allocation40_spill] sm:$0xff] }
 0x119   : > { %4082 = vmatmul.mubr.f32.gmra.mrb[20].mxu1 %v6631_v1 }
 0x11a   : > { %4458 = vmatmul.mubr.f32.gmra.mrb[4].mxu0 %v6021_v41  ;;  %4084 = vmatprep.mubr.f32.mxu1 %v6632_v25  ;;  %v6637_v41 = vld [vmem:[#allocation42_spill] sm:$0xff] }
 0x11b   : > { %4460 = vmatprep.mubr.f32.mxu0 %v6025_v48  ;;  %v6638_v48 = vld [vmem:[#allocation43_spill] sm:$0xff] }
 0x11d   : > { %4085 = vmatmul.mubr.f32.gmra.mrb[22].mxu1 %v6633_v63 }
 0x11e   : > { %4461 = vmatmul.mubr.f32.gmra.mrb[6].mxu0 %v6040_v60  ;;  %4087 = vmatprep.mubr.f32.mxu1 %v6634_v5  ;;  %v6639_v60 = vld [vmem:[#allocation45_spill] sm:$0xff] }
 0x11f   : > { %4463 = vmatprep.mubr.f32.mxu0 %v6044_v45  ;;  %v6640_v45 = vld [vmem:[#allocation46_spill] sm:$0xff] }
 0x121   : > { %4088 = vmatmul.mubr.f32.gmra.mrb[24].mxu1 %v6635_v15 }
 0x122   : > { %4464 = vmatmul.mubr.f32.gmra.mrb[8].mxu0 %v6059_v24  ;;  %4090 = vmatprep.mubr.f32.mxu1 %v6636_v22  ;;  %v2775_v24 = vrot.slane %v5877_v54, 2 }
 0x123   : > { %4466 = vmatprep.mubr.f32.mxu0 %v6063_v37  ;;  %v2776_v37 = vrot.slane %v5881_v17, 2 }
 0x125   : > { %4091 = vmatmul.mubr.f32.gmra.mrb[26].mxu1 %v6637_v41 }
 0x126   : > { %4467 = vmatmul.mubr.f32.gmra.mrb[10].mxu0 %v6078_v29  ;;  %4093 = vmatprep.mubr.f32.mxu1 %v6638_v48  ;;  %v2778_v29 = vrot.slane %v5902_v23, 2 }
 0x127   : > { %4469 = vmatprep.mubr.f32.mxu0 %v6082_v35  ;;  %v2777_v35 = vsel %vm2107_vm1, %v2775_v24, %v2776_v37 }
 0x128   : > { %v2779_v54 = vsel %vm2107_vm1, %v2776_v37, %v2778_v29 }
 0x129   : > { %4094 = vmatmul.mubr.f32.gmra.mrb[28].mxu1 %v6639_v60 }
 0x12a   : > { %4470 = vmatmul.mubr.f32.gmra.mrb[12].mxu0 %v6099_v53  ;;  %4096 = vmatprep.mubr.f32.mxu1 %v6640_v45  ;;  %v6641_v53 = vld [vmem:[#allocation48_spill] sm:$0xff] }
 0x12b   : > { %4472 = vmatprep.mubr.f32.mxu0 %v6103_v50 }
 0x12d   : > { %4097 = vmatmul.mubr.f32.gmra.mrb[30].mxu1 %v5893_v27 }
 0x12e   : > { %4473 = vmatmul.mubr.f32.gmra.mrb[14].mxu0 %v6120_v26  ;;  %4155 = vmatprep.mubr.f32.mxu1 %v6628_v3 }
 0x12f   : > { %4475 = vmatprep.mubr.f32.mxu0 %v6124_v9 }
 0x131   : > { %4156 = vmatmul.mubr.f32.vlgmr.msra.gmra.mrb[16].mxu1 %v6629_v40 }
 0x132   : > { %4476 = vmatmul.mubr.f32.gmra.mrb[16].mxu0 %v6139_v4  ;;  %4158 = vmatprep.mubr.f32.mxu1 %v6630_v16 }
 0x133   : > { %4478 = vmatprep.mubr.f32.mxu0 %v6143_v62 }
 0x135   : > { %4159 = vmatmul.mubr.f32.gmra.mrb[18].mxu1 %v6631_v1 }
 0x136   : > { %4479 = vmatmul.mubr.f32.gmra.mrb[18].mxu0 %v6158_v11  ;;  %4161 = vmatprep.mubr.f32.mxu1 %v6632_v25 }
 0x137   : > { %4481 = vmatprep.mubr.f32.mxu0 %v6162_v59 }
 0x139   : > { %4162 = vmatmul.mubr.f32.gmra.mrb[20].mxu1 %v6633_v63 }
 0x13a   : > { %4482 = vmatmul.mubr.f32.gmra.mrb[20].mxu0 %v6177_v13  ;;  %4164 = vmatprep.mubr.f32.mxu1 %v6634_v5 }
 0x13b   : > { %4484 = vmatprep.mubr.f32.mxu0 %v6181_v12 }
 0x13d   : > { %4165 = vmatmul.mubr.f32.gmra.mrb[22].mxu1 %v6635_v15 }
 0x13e   : > { %4485 = vmatmul.mubr.f32.gmra.mrb[22].mxu0 %v6196_v28  ;;  %4167 = vmatprep.mubr.f32.mxu1 %v6636_v22 }
 0x13f   : > { %4487 = vmatprep.mubr.f32.mxu0 %v6200_v36 }
 0x141   : > { %4168 = vmatmul.mubr.f32.gmra.mrb[24].mxu1 %v6637_v41 }
 0x142   : > { %4488 = vmatmul.mubr.f32.gmra.mrb[24].mxu0 %v6215_v56  ;;  %4170 = vmatprep.mubr.f32.mxu1 %v6638_v48 }
 0x143   : > { %4490 = vmatprep.mubr.f32.mxu0 %v6219_v19 }
 0x145   : > { %4171 = vmatmul.mubr.f32.gmra.mrb[26].mxu1 %v6639_v60 }
 0x146   : > { %4491 = vmatmul.mubr.f32.gmra.mrb[26].mxu0 %v6226_v47  ;;  %4173 = vmatprep.mubr.f32.mxu1 %v6640_v45 }
 0x147   : > { %4493 = vmatprep.mubr.f32.mxu0 %v6347_v31 }
 0x149   : > { %4174 = vmatmul.mubr.f32.gmra.mrb[28].mxu1 %v5893_v27 }
 0x14a   : > { %4494 = vmatmul.mubr.f32.gmra.mrb[28].mxu0 %v6355_v6  ;;  %4176 = vmatprep.mubr.f32.mxu1 %v6641_v53 }
 0x14b   : > { %4496 = vmatprep.mubr.f32.mxu0 %v2777_v35 }
 0x14d   : > { %4177 = vmatmul.mubr.f32.gmra.mrb[30].mxu1 %v5915_v30 }
 0x14e   : > { %4497 = vmatmul.mubr.f32.gmra.mrb[30].mxu0 %v2779_v54 }
 0x1c4   : > { %v4053_v17 = vpop.f32.mrb[0].mxu1 }
 0x1c5   : > { %v1348_v50 = vpop.f32.mrb[1].mxu1 }
 0x1c8   : > { %v4056_v26 = vpop.f32.mrb[2].mxu1 }
 0x1c9   : > { %v1358_v9 = vpop.f32.mrb[3].mxu1 }
 0x1cc   : > { %v4059_v23 = vpop.f32.mrb[4].mxu1 }
 0x1cd   : > { %v1368_v4 = vpop.f32.mrb[5].mxu1 }
 0x1d0   : > { %v4062_v62 = vpop.f32.mrb[6].mxu1 }
 0x1d1   : > { %v1378_v11 = vpop.f32.mrb[7].mxu1 }
 0x1d4   : > { %v4065_v27 = vpop.f32.mrb[8].mxu1 }
 0x1d5   : > { %v1388_v59 = vpop.f32.mrb[9].mxu1 }
 0x1d8   : > { %v4068_v13 = vpop.f32.mrb[10].mxu1 }
 0x1d9   : > { %v1398_v12 = vpop.f32.mrb[11].mxu1 }
 0x1dc   : > { %v4071_v28 = vpop.f32.mrb[12].mxu1 }
 0x1dd   : > { %v1408_v36 = vpop.f32.mrb[13].mxu1 }
 0x1e0   : > { %v4074_v56 = vpop.f32.mrb[14].mxu1 }
 0x1e1   : > { %v1418_v19 = vpop.f32.mrb[15].mxu1 }
 0x1e5   : > { %v4453_v30 = vpop.f32.mrb[0].mxu0 }
 0x1e6   : > { %v4803_v47 = vadd.f32 %v4453_v30, %v4053_v17  ;;  %v2865_v7 = vpop.f32.mrb[1].mxu0 }
 0x1e7   : > { %v4804_v21 = vadd.f32 %v2865_v7, %v1348_v50 }
 0x1e8   : > { %3057 = vst [vmem:[%s6433_s17 + $0x8] sm:$0xff] %v4803_v47 }
 0x1e9   : > { %3056 = vst [vmem:[%s6433_s17] sm:$0xff] %v4804_v21  ;;  %v4456_v57 = vpop.f32.mrb[2].mxu0 }
 0x1ea   : > { %v4805_v44 = vadd.f32 %v4456_v57, %v4056_v26  ;;  %v2875_v49 = vpop.f32.mrb[3].mxu0 }
 0x1eb   : > { %v4806_v61 = vadd.f32 %v2875_v49, %v1358_v9 }
 0x1ec   : > { %3059 = vst [vmem:[%s6433_s17 + $0x18] sm:$0xff] %v4805_v44 }
 0x1ed   : > { %3058 = vst [vmem:[%s6433_s17 + $0x10] sm:$0xff] %v4806_v61  ;;  %v4459_v18 = vpop.f32.mrb[4].mxu0 }
 0x1ee   : > { %v4807_v8 = vadd.f32 %v4459_v18, %v4059_v23  ;;  %v2885_v0 = vpop.f32.mrb[5].mxu0 }
 0x1ef   : > { %v4808_v14 = vadd.f32 %v2885_v0, %v1368_v4 }
 0x1f0   : > { %3061 = vst [vmem:[%s6433_s17 + $0x28] sm:$0xff] %v4807_v8 }
 0x1f1   : > { %3060 = vst [vmem:[%s6433_s17 + $0x20] sm:$0xff] %v4808_v14  ;;  %v4462_v43 = vpop.f32.mrb[6].mxu0 }
 0x1f2   : > { %v4809_v33 = vadd.f32 %v4462_v43, %v4062_v62  ;;  %v2895_v34 = vpop.f32.mrb[7].mxu0 }
 0x1f3   : > { %v4810_v51 = vadd.f32 %v2895_v34, %v1378_v11 }
 0x1f4   : > { %3063 = vst [vmem:[%s6433_s17 + $0x38] sm:$0xff] %v4809_v33 }
 0x1f5   : > { %3062 = vst [vmem:[%s6433_s17 + $0x30] sm:$0xff] %v4810_v51  ;;  %v4465_v58 = vpop.f32.mrb[8].mxu0 }
 0x1f6   : > { %v4811_v2 = vadd.f32 %v4465_v58, %v4065_v27  ;;  %v2905_v20 = vpop.f32.mrb[9].mxu0 }
 0x1f7   : > { %v4812_v55 = vadd.f32 %v2905_v20, %v1388_v59 }
 0x1f8   : > { %3065 = vst [vmem:[%s6433_s17 + $0x48] sm:$0xff] %v4811_v2 }
 0x1f9   : > { %3064 = vst [vmem:[%s6433_s17 + $0x40] sm:$0xff] %v4812_v55  ;;  %v4468_v31 = vpop.f32.mrb[10].mxu0 }
 0x1fa   : > { %v4813_v46 = vadd.f32 %v4468_v31, %v4068_v13  ;;  %v2915_v42 = vpop.f32.mrb[11].mxu0 }
 0x1fb   : > { %v4814_v38 = vadd.f32 %v2915_v42, %v1398_v12 }
 0x1fc   : > { %3067 = vst [vmem:[%s6433_s17 + $0x58] sm:$0xff] %v4813_v46 }
 0x1fd   : > { %3066 = vst [vmem:[%s6433_s17 + $0x50] sm:$0xff] %v4814_v38  ;;  %v4471_v6 = vpop.f32.mrb[12].mxu0 }
 0x1fe   : > { %v4815_v10 = vadd.f32 %v4471_v6, %v4071_v28  ;;  %v2925_v39 = vpop.f32.mrb[13].mxu0 }
 0x1ff   : > { %v4816_v52 = vadd.f32 %v2925_v39, %v1408_v36 }
 0x200   : > { %3069 = vst [vmem:[%s6433_s17 + $0x68] sm:$0xff] %v4815_v10 }
 0x201   : > { %3068 = vst [vmem:[%s6433_s17 + $0x60] sm:$0xff] %v4816_v52  ;;  %v4474_v32 = vpop.f32.mrb[14].mxu0 }
 0x202   : > { %v4817_v3 = vadd.f32 %v4474_v32, %v4074_v56  ;;  %v2935_v40 = vpop.f32.mrb[15].mxu0 }
 0x203   : > { %v4818_v16 = vadd.f32 %v2935_v40, %v1418_v19 }
 0x204   : > { %3071 = vst [vmem:[%s6433_s17 + $0x78] sm:$0xff] %v4817_v3  ;;  %v4157_v1 = vpop.f32.mrb[16].mxu1 }
 0x205   : > { %3070 = vst [vmem:[%s6433_s17 + $0x70] sm:$0xff] %v4818_v16  ;;  %v4477_v25 = vpop.f32.mrb[16].mxu0  ;;  %v1712_v63 = vpop.f32.mrb[17].mxu1 }
 0x206   : > { %v4819_v5 = vadd.f32 %v4477_v25, %v4157_v1  ;;  %v2945_v15 = vpop.f32.mrb[17].mxu0 }
 0x207   : > { %v4820_v22 = vadd.f32 %v2945_v15, %v1712_v63 }
 0x208   : > { %3073 = vst [vmem:[%s6433_s17 + $0x88] sm:$0xff] %v4819_v5  ;;  %v4160_v41 = vpop.f32.mrb[18].mxu1 }
 0x209   : > { %3072 = vst [vmem:[%s6433_s17 + $0x80] sm:$0xff] %v4820_v22  ;;  %v4480_v48 = vpop.f32.mrb[18].mxu0  ;;  %v1722_v60 = vpop.f32.mrb[19].mxu1 }
 0x20a   : > { %v4821_v45 = vadd.f32 %v4480_v48, %v4160_v41  ;;  %v2955_v24 = vpop.f32.mrb[19].mxu0 }
 0x20b   : > { %v4822_v37 = vadd.f32 %v2955_v24, %v1722_v60 }
 0x20c   : > { %3075 = vst [vmem:[%s6433_s17 + $0x98] sm:$0xff] %v4821_v45  ;;  %v4163_v29 = vpop.f32.mrb[20].mxu1 }
 0x20d   : > { %3074 = vst [vmem:[%s6433_s17 + $0x90] sm:$0xff] %v4822_v37  ;;  %v4483_v35 = vpop.f32.mrb[20].mxu0  ;;  %v1732_v53 = vpop.f32.mrb[21].mxu1 }
 0x20e   : > { %v4823_v54 = vadd.f32 %v4483_v35, %v4163_v29  ;;  %v2965_v17 = vpop.f32.mrb[21].mxu0 }
 0x20f   : > { %v4824_v50 = vadd.f32 %v2965_v17, %v1732_v53 }
 0x210   : > { %3077 = vst [vmem:[%s6433_s17 + $0xa8] sm:$0xff] %v4823_v54  ;;  %v4166_v26 = vpop.f32.mrb[22].mxu1 }
 0x211   : > { %3076 = vst [vmem:[%s6433_s17 + $0xa0] sm:$0xff] %v4824_v50  ;;  %v4486_v9 = vpop.f32.mrb[22].mxu0  ;;  %v1742_v23 = vpop.f32.mrb[23].mxu1 }
 0x212   : > { %v4825_v4 = vadd.f32 %v4486_v9, %v4166_v26  ;;  %v2975_v62 = vpop.f32.mrb[23].mxu0 }
 0x213   : > { %v4826_v11 = vadd.f32 %v2975_v62, %v1742_v23 }
 0x214   : > { %3079 = vst [vmem:[%s6433_s17 + $0xb8] sm:$0xff] %v4825_v4  ;;  %v4169_v27 = vpop.f32.mrb[24].mxu1 }
 0x215   : > { %3078 = vst [vmem:[%s6433_s17 + $0xb0] sm:$0xff] %v4826_v11  ;;  %v4489_v59 = vpop.f32.mrb[24].mxu0  ;;  %v1752_v13 = vpop.f32.mrb[25].mxu1 }
 0x216   : > { %v4827_v12 = vadd.f32 %v4489_v59, %v4169_v27  ;;  %v2985_v28 = vpop.f32.mrb[25].mxu0 }
 0x217   : > { %v4828_v36 = vadd.f32 %v2985_v28, %v1752_v13 }
 0x218   : > { %3081 = vst [vmem:[%s6433_s17 + $0xc8] sm:$0xff] %v4827_v12  ;;  %v4172_v56 = vpop.f32.mrb[26].mxu1 }
 0x219   : > { %3080 = vst [vmem:[%s6433_s17 + $0xc0] sm:$0xff] %v4828_v36  ;;  %v4492_v19 = vpop.f32.mrb[26].mxu0  ;;  %v1762_v30 = vpop.f32.mrb[27].mxu1 }
 0x21a   : > { %v4829_v47 = vadd.f32 %v4492_v19, %v4172_v56  ;;  %v2995_v7 = vpop.f32.mrb[27].mxu0 }
 0x21b   : > { %v4830_v21 = vadd.f32 %v2995_v7, %v1762_v30 }
 0x21c   : > { %3083 = vst [vmem:[%s6433_s17 + $0xd8] sm:$0xff] %v4829_v47  ;;  %v4175_v57 = vpop.f32.mrb[28].mxu1 }
 0x21d   : > { %3082 = vst [vmem:[%s6433_s17 + $0xd0] sm:$0xff] %v4830_v21  ;;  %v4495_v44 = vpop.f32.mrb[28].mxu0  ;;  %v1772_v49 = vpop.f32.mrb[29].mxu1 }
 0x21e   : > { %v4831_v61 = vadd.f32 %v4495_v44, %v4175_v57  ;;  %v3005_v18 = vpop.f32.mrb[29].mxu0 }
 0x21f   : > { %v4832_v8 = vadd.f32 %v3005_v18, %v1772_v49 }
 0x220   : > { %3085 = vst [vmem:[%s6433_s17 + $0xe8] sm:$0xff] %v4831_v61  ;;  %v4178_v0 = vpop.f32.mrb[30].mxu1 }
 0x221   : > { %3084 = vst [vmem:[%s6433_s17 + $0xe0] sm:$0xff] %v4832_v8  ;;  %v4498_v14 = vpop.f32.mrb[30].mxu0  ;;  %v1782_v43 = vpop.f32.mrb[31].mxu1 }
 0x222   : > { %v4833_v33 = vadd.f32 %v4498_v14, %v4178_v0  ;;  %v3015_v34 = vpop.f32.mrb[31].mxu0 }
 0x223   : > { %v4834_v51 = vadd.f32 %v3015_v34, %v1782_v43 }
 0x224   : > { %3087 = vst [vmem:[%s6433_s17 + $0xf8] sm:$0xff] %v4833_v33 }
 0x225   : > { %3086 = vst [vmem:[%s6433_s17 + $0xf0] sm:$0xff] %v4834_v51 }
 0x226 PF: > { %s13_s14 = sadd.s32 1, %s5116_s14   ;;  %s6642_s12 = smov %s5112_s13 }
 0x227   : > { %p10_p5 = scmp.ge.s32.totalorder %s13_s14, 4   ;;  %s6643_s13 = smov %s6645_s15 }
 0x229   :  { %12 = sbr.rel (!%p10_p5) target bundleno = 2 (0x2), region = 73 }

</bundles_post_ra>
